<compile_context>
chip_gen: v5e
topology: v5e:2x2
jax: 0.10.0
libtpu: 0.0.40
codegen_flags: <defaults>
</compile_context>

<pallas_src>
import math

import jax
import jax.numpy as jnp
from jax.experimental import pallas as pl
from jax.experimental.pallas import tpu as pltpu

# ---------------- config (small, consistent with the module) ----------------
B = 2          # batch
S = 16         # input sequence length
D = 32         # d_model
H = 4          # attention heads
DH = D // H    # head dim
L = 8          # projected ("packed") embedding length
F = 64         # d_ff
NUM_LAYERS = 2
EPS = 1e-5     # nn.LayerNorm default
_SCALE = 1.0 / math.sqrt(DH)

# rows of the packed per-layer bias / LayerNorm slab (lane width in parens)
ROW_BX = 0                    # fused x-projection bias [pack_K|pack_V|unpack_Q] (3D)
ROW_BP = 1                    # pack-Q bias                                      (D)
ROW_BC = 2                    # packed-context projection bias [unpack_K|unpack_V] (2D)
ROW_FB1 = 3                   # FFN bias 1                                       (F)
ROW_FB2 = 4                   # FFN bias 2                                       (D)
ROW_LNG_P, ROW_LNB_P = 5, 6   # packed-context LayerNorm gamma / beta            (D)
ROW_LNG_U, ROW_LNB_U = 7, 8   # unpacked-context LayerNorm gamma / beta          (D)
ROW_LNG_F, ROW_LNB_F = 9, 10  # feed-forward LayerNorm gamma / beta              (D)
VEC_ROWS = 16                 # padded to a sublane multiple
VEC_LANES = 128               # one full lane row per parameter vector


# --------------------------- fused Pallas kernel ------------------------------
def _luna_fused_kernel(x_ref, p_ref, mbias_ref, wx_ref, wp_ref, wc_ref,
                       w1_ref, w2_ref, vec_ref, out_ref):
    """Full Luna encoder (NUM_LAYERS layers), whole batch, one invocation.

    x_ref    : (B*S, D)   scaled + positionally-encoded input stream (batch-stacked)
    p_ref    : (B*L, D)   scaled + positionally-encoded packed stream (batch-stacked)
    mbias_ref: (B, 1, S)  additive key-padding bias (-1e9 at padded key positions)
    wx_ref   : (NUM_LAYERS, D, 3*D)  [pack_K | pack_V | unpack_Q] (all consume x)
    wp_ref   : (NUM_LAYERS, D, D)    pack_Q                       (consumes p)
    wc_ref   : (NUM_LAYERS, D, 2*D)  [unpack_K | unpack_V]        (consume packed ctx)
    w1_ref   : (NUM_LAYERS, D, F), w2_ref: (NUM_LAYERS, F, D)     FFN weights
    vec_ref  : (NUM_LAYERS, VEC_ROWS, VEC_LANES) packed biases / LayerNorm params
    out_ref  : (B*S, D)
    """
    x = x_ref[...]                                            # (B*S, D)
    p = p_ref[...]                                            # (B*L, D)

    def attention(q, k, v, bias):
        # Static head loop; per-head contexts are concatenated in registers and
        # consumed as one dense (rows_q, D) value (no masked stripe stores).
        heads = []
        for h in range(H):
            sl = slice(h * DH, (h + 1) * DH)
            qh, kh, vh = q[:, sl], k[:, sl], v[:, sl]
            # contract the last dim of BOTH operands: q @ k^T without a transpose
            scores = jax.lax.dot_general(
                qh, kh, dimension_numbers=(((1,), (1,)), ((), ())),
                preferred_element_type=jnp.float32) * _SCALE
            if bias is not None:                              # pack path only
                scores = scores + bias
            m = jnp.max(scores, axis=-1, keepdims=True)       # stable softmax
            e = jnp.exp(scores - m)
            attn = e / jnp.sum(e, axis=-1, keepdims=True)     # exact divide
            heads.append(jnp.dot(attn, vh, preferred_element_type=jnp.float32))
        return jnp.concatenate(heads, axis=-1)                # (rows_q, D)

    def layer_norm(z, gamma, beta):
        mean = jnp.mean(z, axis=-1, keepdims=True)
        zc = z - mean
        var = jnp.mean(zc * zc, axis=-1, keepdims=True)
        return zc * jax.lax.rsqrt(var + EPS) * gamma + beta

    for l in range(NUM_LAYERS):                               # static layer loop
        vec = vec_ref[l]                                      # (VEC_ROWS, 128)
        bx = vec[ROW_BX:ROW_BX + 1, 0:3 * D]
        bp = vec[ROW_BP:ROW_BP + 1, 0:D]
        bc = vec[ROW_BC:ROW_BC + 1, 0:2 * D]
        fb1 = vec[ROW_FB1:ROW_FB1 + 1, 0:F]
        fb2 = vec[ROW_FB2:ROW_FB2 + 1, 0:D]
        g_p, be_p = vec[ROW_LNG_P:ROW_LNG_P + 1, 0:D], vec[ROW_LNB_P:ROW_LNB_P + 1, 0:D]
        g_u, be_u = vec[ROW_LNG_U:ROW_LNG_U + 1, 0:D], vec[ROW_LNB_U:ROW_LNB_U + 1, 0:D]
        g_f, be_f = vec[ROW_LNG_F:ROW_LNG_F + 1, 0:D], vec[ROW_LNB_F:ROW_LNB_F + 1, 0:D]

        # fused projections over the batch-stacked streams (wide MXU pushes)
        xp = jnp.dot(x, wx_ref[l], preferred_element_type=jnp.float32) + bx   # (B*S, 3D)
        pq = jnp.dot(p, wp_ref[l], preferred_element_type=jnp.float32) + bp   # (B*L, D)

        # pack attention (queries = packed stream, keys/values = input stream, masked)
        packed_parts = []
        for b in range(B):                                    # static batch loop
            xs = xp[b * S:(b + 1) * S]                        # sublane-aligned rows
            packed_parts.append(
                attention(pq[b * L:(b + 1) * L], xs[:, 0:D], xs[:, D:2 * D],
                          mbias_ref[b]))
        packed = jnp.concatenate(packed_parts, axis=0)        # (B*L, D)

        # unpack K/V projection consumes the (pre-LayerNorm) packed context
        cp = jnp.dot(packed, wc_ref[l], preferred_element_type=jnp.float32) + bc  # (B*L, 2D)

        # unpack attention (queries = input stream, keys/values = packed ctx, no mask)
        unpacked_parts = []
        for b in range(B):
            cs = cp[b * L:(b + 1) * L]
            unpacked_parts.append(
                attention(xp[b * S:(b + 1) * S, 2 * D:3 * D],
                          cs[:, 0:D], cs[:, D:2 * D], None))
        unpacked = jnp.concatenate(unpacked_parts, axis=0)    # (B*S, D)

        # residuals + LayerNorms + ReLU FFN (all batch-stacked)
        p = layer_norm(packed + p, g_p, be_p)
        u = layer_norm(unpacked + x, g_u, be_u)
        hid = jnp.maximum(
            jnp.dot(u, w1_ref[l], preferred_element_type=jnp.float32) + fb1, 0.0)
        ff = jnp.dot(hid, w2_ref[l], preferred_element_type=jnp.float32) + fb2
        x = layer_norm(ff + u, g_f, be_f)

    out_ref[...] = x


# ------------------------------ glue (plain JAX) ------------------------------
def sinusoidal_pe(length, d_model):
    pos = jnp.arange(length, dtype=jnp.float32)[:, None]
    div = jnp.exp(jnp.arange(0, d_model, 2, dtype=jnp.float32)
                  * (-math.log(10000.0) / d_model))
    pe = jnp.zeros((length, d_model), jnp.float32)
    pe = pe.at[:, 0::2].set(jnp.sin(pos * div))
    pe = pe.at[:, 1::2].set(jnp.cos(pos * div))
    return pe


def init_params(key):
    def normal(k, shape, std):
        return std * jax.random.normal(k, shape, dtype=jnp.float32)

    k_proj, k_wx, k_wp, k_wc, k_w1, k_w2 = jax.random.split(key, 6)
    vecs = jnp.zeros((NUM_LAYERS, VEC_ROWS, VEC_LANES), jnp.float32)
    for row in (ROW_LNG_P, ROW_LNG_U, ROW_LNG_F):
        vecs = vecs.at[:, row, 0:D].set(1.0)          # LayerNorm gammas = 1
    return {
        "projected_embeddings": normal(k_proj, (L, D), D ** -0.5),
        # fused attention projections: [pack_K|pack_V|unpack_Q] consume x,
        # pack_Q consumes p, [unpack_K|unpack_V] consume the packed context.
        "wx": normal(k_wx, (NUM_LAYERS, D, 3 * D), D ** -0.5),
        "wp": normal(k_wp, (NUM_LAYERS, D, D), D ** -0.5),
        "wc": normal(k_wc, (NUM_LAYERS, D, 2 * D), D ** -0.5),
        "ffn_w1": normal(k_w1, (NUM_LAYERS, D, F), D ** -0.5),
        "ffn_w2": normal(k_w2, (NUM_LAYERS, F, D), F ** -0.5),
        # packed biases + LayerNorm params (linear biases 0, LN gamma=1/beta=0)
        "vecs": vecs,
    }


def luna_forward(params, inputs, input_lengths):
    embed_scale = math.sqrt(D)

    # get_attn_pad_mask -> additive bias: -1e9 at padded key positions, shared
    # by all L pack-attention query rows; the unpack attention is unmasked.
    pad = jnp.arange(S)[None, :] >= input_lengths[:, None]                   # (B, S)
    mask_bias = jnp.where(pad, -1e9, 0.0).astype(jnp.float32)[:, None, :]    # (B, 1, S)

    x = inputs * embed_scale + sinusoidal_pe(S, D)[None, :, :]               # (B, S, D)
    p = params["projected_embeddings"] * embed_scale + sinusoidal_pe(L, D)
    p = jnp.broadcast_to(p[None, :, :], (B, L, D))
    # TODO(synk): nn.Dropout layers omitted (eval / inference -> identity);
    # the reference's self.input_norm is constructed but never applied in forward.

    vmem_specs = [pl.BlockSpec(memory_space=pltpu.MemorySpace.VMEM) for _ in range(9)]
    out = pl.pallas_call(
        _luna_fused_kernel,
        out_shape=jax.ShapeDtypeStruct((B * S, D), jnp.float32),
        in_specs=vmem_specs,
        out_specs=pl.BlockSpec(memory_space=pltpu.MemorySpace.VMEM),
    )(x.reshape(B * S, D), p.reshape(B * L, D), mask_bias,
      params["wx"], params["wp"], params["wc"],
      params["ffn_w1"], params["ffn_w2"], params["vecs"])
    return out.reshape(B, S, D)


if __name__ == "__main__":
    key = jax.random.PRNGKey(0)
    k_param, k_in = jax.random.split(key)
    params = init_params(k_param)

    inputs = jax.random.normal(k_in, (B, S, D), dtype=jnp.float32)
    input_lengths = jnp.array([S, 10], dtype=jnp.int32)

    out = jax.jit(luna_forward)(params, inputs, input_lengths)
    out = jax.block_until_ready(out)

    assert out.shape == (B, S, D), out.shape
    assert bool(jnp.all(jnp.isfinite(out)))
    print("KERNEL_OK")
</pallas_src>

<mosaic_0001>
module attributes {stable_mosaic.version = 11 : i64} {
  func.func @_luna_fused_kernel(%arg0: memref<32x32xf32, #tpu.memory_space<vmem>>, %arg1: memref<16x32xf32, #tpu.memory_space<vmem>>, %arg2: memref<2x1x16xf32, #tpu.memory_space<vmem>>, %arg3: memref<2x32x96xf32, #tpu.memory_space<vmem>>, %arg4: memref<2x32x32xf32, #tpu.memory_space<vmem>>, %arg5: memref<2x32x64xf32, #tpu.memory_space<vmem>>, %arg6: memref<2x32x64xf32, #tpu.memory_space<vmem>>, %arg7: memref<2x64x32xf32, #tpu.memory_space<vmem>>, %arg8: memref<2x16x128xf32, #tpu.memory_space<vmem>>, %arg9: memref<32x32xf32, #tpu.memory_space<vmem>>) attributes {dimension_semantics = [], scalar_prefetch = 0 : i64, scratch_operands = 0 : i64, tpu.core_type = #tpu.core_type<tc>} {
    %c0 = arith.constant 0 : index
    %c0_0 = arith.constant 0 : index
    %0 = vector.load %arg0[%c0, %c0_0] : memref<32x32xf32, #tpu.memory_space<vmem>>, vector<32x32xf32>
    %c0_1 = arith.constant 0 : index
    %c0_2 = arith.constant 0 : index
    %1 = vector.load %arg1[%c0_1, %c0_2] : memref<16x32xf32, #tpu.memory_space<vmem>>, vector<16x32xf32>
    %c0_3 = arith.constant 0 : index
    %c0_4 = arith.constant 0 : index
    %c0_5 = arith.constant 0 : index
    %2 = vector.load %arg8[%c0_3, %c0_4, %c0_5] : memref<2x16x128xf32, #tpu.memory_space<vmem>>, vector<1x16x128xf32>
    %3 = vector.shape_cast %2 : vector<1x16x128xf32> to vector<16x128xf32>
    %4 = vector.extract_strided_slice %3 {offsets = [0, 0], sizes = [1, 96], strides = [1, 1]} : vector<16x128xf32> to vector<1x96xf32>
    %5 = vector.extract_strided_slice %3 {offsets = [1, 0], sizes = [1, 32], strides = [1, 1]} : vector<16x128xf32> to vector<1x32xf32>
    %6 = vector.extract_strided_slice %3 {offsets = [2, 0], sizes = [1, 64], strides = [1, 1]} : vector<16x128xf32> to vector<1x64xf32>
    %7 = vector.extract_strided_slice %3 {offsets = [3, 0], sizes = [1, 64], strides = [1, 1]} : vector<16x128xf32> to vector<1x64xf32>
    %8 = vector.extract_strided_slice %3 {offsets = [4, 0], sizes = [1, 32], strides = [1, 1]} : vector<16x128xf32> to vector<1x32xf32>
    %9 = vector.extract_strided_slice %3 {offsets = [5, 0], sizes = [1, 32], strides = [1, 1]} : vector<16x128xf32> to vector<1x32xf32>
    %10 = vector.extract_strided_slice %3 {offsets = [6, 0], sizes = [1, 32], strides = [1, 1]} : vector<16x128xf32> to vector<1x32xf32>
    %11 = vector.extract_strided_slice %3 {offsets = [7, 0], sizes = [1, 32], strides = [1, 1]} : vector<16x128xf32> to vector<1x32xf32>
    %12 = vector.extract_strided_slice %3 {offsets = [8, 0], sizes = [1, 32], strides = [1, 1]} : vector<16x128xf32> to vector<1x32xf32>
    %13 = vector.extract_strided_slice %3 {offsets = [9, 0], sizes = [1, 32], strides = [1, 1]} : vector<16x128xf32> to vector<1x32xf32>
    %14 = vector.extract_strided_slice %3 {offsets = [10, 0], sizes = [1, 32], strides = [1, 1]} : vector<16x128xf32> to vector<1x32xf32>
    %c0_6 = arith.constant 0 : index
    %c0_7 = arith.constant 0 : index
    %c0_8 = arith.constant 0 : index
    %15 = vector.load %arg3[%c0_6, %c0_7, %c0_8] : memref<2x32x96xf32, #tpu.memory_space<vmem>>, vector<1x32x96xf32>
    %16 = vector.shape_cast %15 : vector<1x32x96xf32> to vector<32x96xf32>
    %cst = arith.constant dense<0.000000e+00> : vector<32x96xf32>
    %17 = tpu.matmul %0, %16, %cst {dimension_numbers = #tpu.dot_dimension_numbers<[1], [0], [0], [1], [0, 0, 1, 1], [], []>} : vector<32x32xf32>, vector<32x96xf32>, vector<32x96xf32> -> vector<32x96xf32>
    %18 = vector.broadcast %4 : vector<1x96xf32> to vector<32x96xf32>
    %19 = arith.addf %17, %18 : vector<32x96xf32>
    %c0_9 = arith.constant 0 : index
    %c0_10 = arith.constant 0 : index
    %c0_11 = arith.constant 0 : index
    %20 = vector.load %arg4[%c0_9, %c0_10, %c0_11] : memref<2x32x32xf32, #tpu.memory_space<vmem>>, vector<1x32x32xf32>
    %21 = vector.shape_cast %20 : vector<1x32x32xf32> to vector<32x32xf32>
    %cst_12 = arith.constant dense<0.000000e+00> : vector<16x32xf32>
    %22 = tpu.matmul %1, %21, %cst_12 {dimension_numbers = #tpu.dot_dimension_numbers<[1], [0], [0], [1], [0, 0, 1, 1], [], []>} : vector<16x32xf32>, vector<32x32xf32>, vector<16x32xf32> -> vector<16x32xf32>
    %23 = vector.broadcast %5 : vector<1x32xf32> to vector<16x32xf32>
    %24 = arith.addf %22, %23 : vector<16x32xf32>
    %25 = vector.extract_strided_slice %19 {offsets = [0, 0], sizes = [16, 96], strides = [1, 1]} : vector<32x96xf32> to vector<16x96xf32>
    %26 = vector.extract_strided_slice %24 {offsets = [0, 0], sizes = [8, 32], strides = [1, 1]} : vector<16x32xf32> to vector<8x32xf32>
    %27 = vector.extract_strided_slice %25 {offsets = [0, 0], sizes = [16, 32], strides = [1, 1]} : vector<16x96xf32> to vector<16x32xf32>
    %28 = vector.extract_strided_slice %25 {offsets = [0, 32], sizes = [16, 32], strides = [1, 1]} : vector<16x96xf32> to vector<16x32xf32>
    %c0_13 = arith.constant 0 : index
    %c0_14 = arith.constant 0 : index
    %c0_15 = arith.constant 0 : index
    %29 = vector.load %arg2[%c0_13, %c0_14, %c0_15] : memref<2x1x16xf32, #tpu.memory_space<vmem>>, vector<1x1x16xf32>
    %30 = vector.shape_cast %29 : vector<1x1x16xf32> to vector<1x16xf32>
    %31 = vector.extract_strided_slice %26 {offsets = [0, 0], sizes = [8, 8], strides = [1, 1]} : vector<8x32xf32> to vector<8x8xf32>
    %32 = vector.extract_strided_slice %27 {offsets = [0, 0], sizes = [16, 8], strides = [1, 1]} : vector<16x32xf32> to vector<16x8xf32>
    %33 = vector.extract_strided_slice %28 {offsets = [0, 0], sizes = [16, 8], strides = [1, 1]} : vector<16x32xf32> to vector<16x8xf32>
    %cst_16 = arith.constant dense<0.000000e+00> : vector<8x16xf32>
    %34 = tpu.matmul %31, %32, %cst_16 {dimension_numbers = #tpu.dot_dimension_numbers<[1], [1], [0], [0], [0, 0, 1, 0], [], []>} : vector<8x8xf32>, vector<16x8xf32>, vector<8x16xf32> -> vector<8x16xf32>
    %cst_17 = arith.constant 0.353553385 : f32
    %35 = vector.broadcast %cst_17 : f32 to vector<8x16xf32>
    %36 = arith.mulf %34, %35 : vector<8x16xf32>
    %37 = vector.broadcast %30 : vector<1x16xf32> to vector<8x16xf32>
    %38 = arith.addf %36, %37 : vector<8x16xf32>
    %cst_18 = arith.constant dense<0xFF800000> : vector<8xf32>
    %39 = vector.multi_reduction <maximumf>, %38, %cst_18 [1] : vector<8x16xf32> to vector<8xf32>
    %40 = vector.shape_cast %39 : vector<8xf32> to vector<8x1xf32>
    %41 = vector.broadcast %40 : vector<8x1xf32> to vector<8x16xf32>
    %42 = arith.subf %38, %41 : vector<8x16xf32>
    %43 = math.exp %42 : vector<8x16xf32>
    %cst_19 = arith.constant dense<0.000000e+00> : vector<8xf32>
    %44 = vector.multi_reduction <add>, %43, %cst_19 [1] : vector<8x16xf32> to vector<8xf32>
    %45 = vector.shape_cast %44 : vector<8xf32> to vector<8x1xf32>
    %46 = vector.broadcast %45 : vector<8x1xf32> to vector<8x16xf32>
    %47 = arith.divf %43, %46 : vector<8x16xf32>
    %cst_20 = arith.constant dense<0.000000e+00> : vector<8x8xf32>
    %48 = tpu.matmul %47, %33, %cst_20 {dimension_numbers = #tpu.dot_dimension_numbers<[1], [0], [0], [1], [0, 0, 1, 1], [], []>} : vector<8x16xf32>, vector<16x8xf32>, vector<8x8xf32> -> vector<8x8xf32>
    %49 = vector.extract_strided_slice %26 {offsets = [0, 8], sizes = [8, 8], strides = [1, 1]} : vector<8x32xf32> to vector<8x8xf32>
    %50 = vector.extract_strided_slice %27 {offsets = [0, 8], sizes = [16, 8], strides = [1, 1]} : vector<16x32xf32> to vector<16x8xf32>
    %51 = vector.extract_strided_slice %28 {offsets = [0, 8], sizes = [16, 8], strides = [1, 1]} : vector<16x32xf32> to vector<16x8xf32>
    %cst_21 = arith.constant dense<0.000000e+00> : vector<8x16xf32>
    %52 = tpu.matmul %49, %50, %cst_21 {dimension_numbers = #tpu.dot_dimension_numbers<[1], [1], [0], [0], [0, 0, 1, 0], [], []>} : vector<8x8xf32>, vector<16x8xf32>, vector<8x16xf32> -> vector<8x16xf32>
    %cst_22 = arith.constant 0.353553385 : f32
    %53 = vector.broadcast %cst_22 : f32 to vector<8x16xf32>
    %54 = arith.mulf %52, %53 : vector<8x16xf32>
    %55 = vector.broadcast %30 : vector<1x16xf32> to vector<8x16xf32>
    %56 = arith.addf %54, %55 : vector<8x16xf32>
    %cst_23 = arith.constant dense<0xFF800000> : vector<8xf32>
    %57 = vector.multi_reduction <maximumf>, %56, %cst_23 [1] : vector<8x16xf32> to vector<8xf32>
    %58 = vector.shape_cast %57 : vector<8xf32> to vector<8x1xf32>
    %59 = vector.broadcast %58 : vector<8x1xf32> to vector<8x16xf32>
    %60 = arith.subf %56, %59 : vector<8x16xf32>
    %61 = math.exp %60 : vector<8x16xf32>
    %cst_24 = arith.constant dense<0.000000e+00> : vector<8xf32>
    %62 = vector.multi_reduction <add>, %61, %cst_24 [1] : vector<8x16xf32> to vector<8xf32>
    %63 = vector.shape_cast %62 : vector<8xf32> to vector<8x1xf32>
    %64 = vector.broadcast %63 : vector<8x1xf32> to vector<8x16xf32>
    %65 = arith.divf %61, %64 : vector<8x16xf32>
    %cst_25 = arith.constant dense<0.000000e+00> : vector<8x8xf32>
    %66 = tpu.matmul %65, %51, %cst_25 {dimension_numbers = #tpu.dot_dimension_numbers<[1], [0], [0], [1], [0, 0, 1, 1], [], []>} : vector<8x16xf32>, vector<16x8xf32>, vector<8x8xf32> -> vector<8x8xf32>
    %67 = vector.extract_strided_slice %26 {offsets = [0, 16], sizes = [8, 8], strides = [1, 1]} : vector<8x32xf32> to vector<8x8xf32>
    %68 = vector.extract_strided_slice %27 {offsets = [0, 16], sizes = [16, 8], strides = [1, 1]} : vector<16x32xf32> to vector<16x8xf32>
    %69 = vector.extract_strided_slice %28 {offsets = [0, 16], sizes = [16, 8], strides = [1, 1]} : vector<16x32xf32> to vector<16x8xf32>
    %cst_26 = arith.constant dense<0.000000e+00> : vector<8x16xf32>
    %70 = tpu.matmul %67, %68, %cst_26 {dimension_numbers = #tpu.dot_dimension_numbers<[1], [1], [0], [0], [0, 0, 1, 0], [], []>} : vector<8x8xf32>, vector<16x8xf32>, vector<8x16xf32> -> vector<8x16xf32>
    %cst_27 = arith.constant 0.353553385 : f32
    %71 = vector.broadcast %cst_27 : f32 to vector<8x16xf32>
    %72 = arith.mulf %70, %71 : vector<8x16xf32>
    %73 = vector.broadcast %30 : vector<1x16xf32> to vector<8x16xf32>
    %74 = arith.addf %72, %73 : vector<8x16xf32>
    %cst_28 = arith.constant dense<0xFF800000> : vector<8xf32>
    %75 = vector.multi_reduction <maximumf>, %74, %cst_28 [1] : vector<8x16xf32> to vector<8xf32>
    %76 = vector.shape_cast %75 : vector<8xf32> to vector<8x1xf32>
    %77 = vector.broadcast %76 : vector<8x1xf32> to vector<8x16xf32>
    %78 = arith.subf %74, %77 : vector<8x16xf32>
    %79 = math.exp %78 : vector<8x16xf32>
    %cst_29 = arith.constant dense<0.000000e+00> : vector<8xf32>
    %80 = vector.multi_reduction <add>, %79, %cst_29 [1] : vector<8x16xf32> to vector<8xf32>
    %81 = vector.shape_cast %80 : vector<8xf32> to vector<8x1xf32>
    %82 = vector.broadcast %81 : vector<8x1xf32> to vector<8x16xf32>
    %83 = arith.divf %79, %82 : vector<8x16xf32>
    %cst_30 = arith.constant dense<0.000000e+00> : vector<8x8xf32>
    %84 = tpu.matmul %83, %69, %cst_30 {dimension_numbers = #tpu.dot_dimension_numbers<[1], [0], [0], [1], [0, 0, 1, 1], [], []>} : vector<8x16xf32>, vector<16x8xf32>, vector<8x8xf32> -> vector<8x8xf32>
    %85 = vector.extract_strided_slice %26 {offsets = [0, 24], sizes = [8, 8], strides = [1, 1]} : vector<8x32xf32> to vector<8x8xf32>
    %86 = vector.extract_strided_slice %27 {offsets = [0, 24], sizes = [16, 8], strides = [1, 1]} : vector<16x32xf32> to vector<16x8xf32>
    %87 = vector.extract_strided_slice %28 {offsets = [0, 24], sizes = [16, 8], strides = [1, 1]} : vector<16x32xf32> to vector<16x8xf32>
    %cst_31 = arith.constant dense<0.000000e+00> : vector<8x16xf32>
    %88 = tpu.matmul %85, %86, %cst_31 {dimension_numbers = #tpu.dot_dimension_numbers<[1], [1], [0], [0], [0, 0, 1, 0], [], []>} : vector<8x8xf32>, vector<16x8xf32>, vector<8x16xf32> -> vector<8x16xf32>
    %cst_32 = arith.constant 0.353553385 : f32
    %89 = vector.broadcast %cst_32 : f32 to vector<8x16xf32>
    %90 = arith.mulf %88, %89 : vector<8x16xf32>
    %91 = vector.broadcast %30 : vector<1x16xf32> to vector<8x16xf32>
    %92 = arith.addf %90, %91 : vector<8x16xf32>
    %cst_33 = arith.constant dense<0xFF800000> : vector<8xf32>
    %93 = vector.multi_reduction <maximumf>, %92, %cst_33 [1] : vector<8x16xf32> to vector<8xf32>
    %94 = vector.shape_cast %93 : vector<8xf32> to vector<8x1xf32>
    %95 = vector.broadcast %94 : vector<8x1xf32> to vector<8x16xf32>
    %96 = arith.subf %92, %95 : vector<8x16xf32>
    %97 = math.exp %96 : vector<8x16xf32>
    %cst_34 = arith.constant dense<0.000000e+00> : vector<8xf32>
    %98 = vector.multi_reduction <add>, %97, %cst_34 [1] : vector<8x16xf32> to vector<8xf32>
    %99 = vector.shape_cast %98 : vector<8xf32> to vector<8x1xf32>
    %100 = vector.broadcast %99 : vector<8x1xf32> to vector<8x16xf32>
    %101 = arith.divf %97, %100 : vector<8x16xf32>
    %cst_35 = arith.constant dense<0.000000e+00> : vector<8x8xf32>
    %102 = tpu.matmul %101, %87, %cst_35 {dimension_numbers = #tpu.dot_dimension_numbers<[1], [0], [0], [1], [0, 0, 1, 1], [], []>} : vector<8x16xf32>, vector<16x8xf32>, vector<8x8xf32> -> vector<8x8xf32>
    %103 = tpu.concatenate %48, %66, %84, %102 in 1 : vector<8x8xf32>, vector<8x8xf32>, vector<8x8xf32>, vector<8x8xf32> -> vector<8x32xf32>
    %104 = vector.extract_strided_slice %19 {offsets = [16, 0], sizes = [16, 96], strides = [1, 1]} : vector<32x96xf32> to vector<16x96xf32>
    %105 = vector.extract_strided_slice %24 {offsets = [8, 0], sizes = [8, 32], strides = [1, 1]} : vector<16x32xf32> to vector<8x32xf32>
    %106 = vector.extract_strided_slice %104 {offsets = [0, 0], sizes = [16, 32], strides = [1, 1]} : vector<16x96xf32> to vector<16x32xf32>
    %107 = vector.extract_strided_slice %104 {offsets = [0, 32], sizes = [16, 32], strides = [1, 1]} : vector<16x96xf32> to vector<16x32xf32>
    %c1 = arith.constant 1 : index
    %c0_36 = arith.constant 0 : index
    %c0_37 = arith.constant 0 : index
    %108 = vector.load %arg2[%c1, %c0_36, %c0_37] : memref<2x1x16xf32, #tpu.memory_space<vmem>>, vector<1x1x16xf32>
    %109 = vector.shape_cast %108 : vector<1x1x16xf32> to vector<1x16xf32>
    %110 = vector.extract_strided_slice %105 {offsets = [0, 0], sizes = [8, 8], strides = [1, 1]} : vector<8x32xf32> to vector<8x8xf32>
    %111 = vector.extract_strided_slice %106 {offsets = [0, 0], sizes = [16, 8], strides = [1, 1]} : vector<16x32xf32> to vector<16x8xf32>
    %112 = vector.extract_strided_slice %107 {offsets = [0, 0], sizes = [16, 8], strides = [1, 1]} : vector<16x32xf32> to vector<16x8xf32>
    %cst_38 = arith.constant dense<0.000000e+00> : vector<8x16xf32>
    %113 = tpu.matmul %110, %111, %cst_38 {dimension_numbers = #tpu.dot_dimension_numbers<[1], [1], [0], [0], [0, 0, 1, 0], [], []>} : vector<8x8xf32>, vector<16x8xf32>, vector<8x16xf32> -> vector<8x16xf32>
    %cst_39 = arith.constant 0.353553385 : f32
    %114 = vector.broadcast %cst_39 : f32 to vector<8x16xf32>
    %115 = arith.mulf %113, %114 : vector<8x16xf32>
    %116 = vector.broadcast %109 : vector<1x16xf32> to vector<8x16xf32>
    %117 = arith.addf %115, %116 : vector<8x16xf32>
    %cst_40 = arith.constant dense<0xFF800000> : vector<8xf32>
    %118 = vector.multi_reduction <maximumf>, %117, %cst_40 [1] : vector<8x16xf32> to vector<8xf32>
    %119 = vector.shape_cast %118 : vector<8xf32> to vector<8x1xf32>
    %120 = vector.broadcast %119 : vector<8x1xf32> to vector<8x16xf32>
    %121 = arith.subf %117, %120 : vector<8x16xf32>
    %122 = math.exp %121 : vector<8x16xf32>
    %cst_41 = arith.constant dense<0.000000e+00> : vector<8xf32>
    %123 = vector.multi_reduction <add>, %122, %cst_41 [1] : vector<8x16xf32> to vector<8xf32>
    %124 = vector.shape_cast %123 : vector<8xf32> to vector<8x1xf32>
    %125 = vector.broadcast %124 : vector<8x1xf32> to vector<8x16xf32>
    %126 = arith.divf %122, %125 : vector<8x16xf32>
    %cst_42 = arith.constant dense<0.000000e+00> : vector<8x8xf32>
    %127 = tpu.matmul %126, %112, %cst_42 {dimension_numbers = #tpu.dot_dimension_numbers<[1], [0], [0], [1], [0, 0, 1, 1], [], []>} : vector<8x16xf32>, vector<16x8xf32>, vector<8x8xf32> -> vector<8x8xf32>
    %128 = vector.extract_strided_slice %105 {offsets = [0, 8], sizes = [8, 8], strides = [1, 1]} : vector<8x32xf32> to vector<8x8xf32>
    %129 = vector.extract_strided_slice %106 {offsets = [0, 8], sizes = [16, 8], strides = [1, 1]} : vector<16x32xf32> to vector<16x8xf32>
    %130 = vector.extract_strided_slice %107 {offsets = [0, 8], sizes = [16, 8], strides = [1, 1]} : vector<16x32xf32> to vector<16x8xf32>
    %cst_43 = arith.constant dense<0.000000e+00> : vector<8x16xf32>
    %131 = tpu.matmul %128, %129, %cst_43 {dimension_numbers = #tpu.dot_dimension_numbers<[1], [1], [0], [0], [0, 0, 1, 0], [], []>} : vector<8x8xf32>, vector<16x8xf32>, vector<8x16xf32> -> vector<8x16xf32>
    %cst_44 = arith.constant 0.353553385 : f32
    %132 = vector.broadcast %cst_44 : f32 to vector<8x16xf32>
    %133 = arith.mulf %131, %132 : vector<8x16xf32>
    %134 = vector.broadcast %109 : vector<1x16xf32> to vector<8x16xf32>
    %135 = arith.addf %133, %134 : vector<8x16xf32>
    %cst_45 = arith.constant dense<0xFF800000> : vector<8xf32>
    %136 = vector.multi_reduction <maximumf>, %135, %cst_45 [1] : vector<8x16xf32> to vector<8xf32>
    %137 = vector.shape_cast %136 : vector<8xf32> to vector<8x1xf32>
    %138 = vector.broadcast %137 : vector<8x1xf32> to vector<8x16xf32>
    %139 = arith.subf %135, %138 : vector<8x16xf32>
    %140 = math.exp %139 : vector<8x16xf32>
    %cst_46 = arith.constant dense<0.000000e+00> : vector<8xf32>
    %141 = vector.multi_reduction <add>, %140, %cst_46 [1] : vector<8x16xf32> to vector<8xf32>
    %142 = vector.shape_cast %141 : vector<8xf32> to vector<8x1xf32>
    %143 = vector.broadcast %142 : vector<8x1xf32> to vector<8x16xf32>
    %144 = arith.divf %140, %143 : vector<8x16xf32>
    %cst_47 = arith.constant dense<0.000000e+00> : vector<8x8xf32>
    %145 = tpu.matmul %144, %130, %cst_47 {dimension_numbers = #tpu.dot_dimension_numbers<[1], [0], [0], [1], [0, 0, 1, 1], [], []>} : vector<8x16xf32>, vector<16x8xf32>, vector<8x8xf32> -> vector<8x8xf32>
    %146 = vector.extract_strided_slice %105 {offsets = [0, 16], sizes = [8, 8], strides = [1, 1]} : vector<8x32xf32> to vector<8x8xf32>
    %147 = vector.extract_strided_slice %106 {offsets = [0, 16], sizes = [16, 8], strides = [1, 1]} : vector<16x32xf32> to vector<16x8xf32>
    %148 = vector.extract_strided_slice %107 {offsets = [0, 16], sizes = [16, 8], strides = [1, 1]} : vector<16x32xf32> to vector<16x8xf32>
    %cst_48 = arith.constant dense<0.000000e+00> : vector<8x16xf32>
    %149 = tpu.matmul %146, %147, %cst_48 {dimension_numbers = #tpu.dot_dimension_numbers<[1], [1], [0], [0], [0, 0, 1, 0], [], []>} : vector<8x8xf32>, vector<16x8xf32>, vector<8x16xf32> -> vector<8x16xf32>
    %cst_49 = arith.constant 0.353553385 : f32
    %150 = vector.broadcast %cst_49 : f32 to vector<8x16xf32>
    %151 = arith.mulf %149, %150 : vector<8x16xf32>
    %152 = vector.broadcast %109 : vector<1x16xf32> to vector<8x16xf32>
    %153 = arith.addf %151, %152 : vector<8x16xf32>
    %cst_50 = arith.constant dense<0xFF800000> : vector<8xf32>
    %154 = vector.multi_reduction <maximumf>, %153, %cst_50 [1] : vector<8x16xf32> to vector<8xf32>
    %155 = vector.shape_cast %154 : vector<8xf32> to vector<8x1xf32>
    %156 = vector.broadcast %155 : vector<8x1xf32> to vector<8x16xf32>
    %157 = arith.subf %153, %156 : vector<8x16xf32>
    %158 = math.exp %157 : vector<8x16xf32>
    %cst_51 = arith.constant dense<0.000000e+00> : vector<8xf32>
    %159 = vector.multi_reduction <add>, %158, %cst_51 [1] : vector<8x16xf32> to vector<8xf32>
    %160 = vector.shape_cast %159 : vector<8xf32> to vector<8x1xf32>
    %161 = vector.broadcast %160 : vector<8x1xf32> to vector<8x16xf32>
    %162 = arith.divf %158, %161 : vector<8x16xf32>
    %cst_52 = arith.constant dense<0.000000e+00> : vector<8x8xf32>
    %163 = tpu.matmul %162, %148, %cst_52 {dimension_numbers = #tpu.dot_dimension_numbers<[1], [0], [0], [1], [0, 0, 1, 1], [], []>} : vector<8x16xf32>, vector<16x8xf32>, vector<8x8xf32> -> vector<8x8xf32>
    %164 = vector.extract_strided_slice %105 {offsets = [0, 24], sizes = [8, 8], strides = [1, 1]} : vector<8x32xf32> to vector<8x8xf32>
    %165 = vector.extract_strided_slice %106 {offsets = [0, 24], sizes = [16, 8], strides = [1, 1]} : vector<16x32xf32> to vector<16x8xf32>
    %166 = vector.extract_strided_slice %107 {offsets = [0, 24], sizes = [16, 8], strides = [1, 1]} : vector<16x32xf32> to vector<16x8xf32>
    %cst_53 = arith.constant dense<0.000000e+00> : vector<8x16xf32>
    %167 = tpu.matmul %164, %165, %cst_53 {dimension_numbers = #tpu.dot_dimension_numbers<[1], [1], [0], [0], [0, 0, 1, 0], [], []>} : vector<8x8xf32>, vector<16x8xf32>, vector<8x16xf32> -> vector<8x16xf32>
    %cst_54 = arith.constant 0.353553385 : f32
    %168 = vector.broadcast %cst_54 : f32 to vector<8x16xf32>
    %169 = arith.mulf %167, %168 : vector<8x16xf32>
    %170 = vector.broadcast %109 : vector<1x16xf32> to vector<8x16xf32>
    %171 = arith.addf %169, %170 : vector<8x16xf32>
    %cst_55 = arith.constant dense<0xFF800000> : vector<8xf32>
    %172 = vector.multi_reduction <maximumf>, %171, %cst_55 [1] : vector<8x16xf32> to vector<8xf32>
    %173 = vector.shape_cast %172 : vector<8xf32> to vector<8x1xf32>
    %174 = vector.broadcast %173 : vector<8x1xf32> to vector<8x16xf32>
    %175 = arith.subf %171, %174 : vector<8x16xf32>
    %176 = math.exp %175 : vector<8x16xf32>
    %cst_56 = arith.constant dense<0.000000e+00> : vector<8xf32>
    %177 = vector.multi_reduction <add>, %176, %cst_56 [1] : vector<8x16xf32> to vector<8xf32>
    %178 = vector.shape_cast %177 : vector<8xf32> to vector<8x1xf32>
    %179 = vector.broadcast %178 : vector<8x1xf32> to vector<8x16xf32>
    %180 = arith.divf %176, %179 : vector<8x16xf32>
    %cst_57 = arith.constant dense<0.000000e+00> : vector<8x8xf32>
    %181 = tpu.matmul %180, %166, %cst_57 {dimension_numbers = #tpu.dot_dimension_numbers<[1], [0], [0], [1], [0, 0, 1, 1], [], []>} : vector<8x16xf32>, vector<16x8xf32>, vector<8x8xf32> -> vector<8x8xf32>
    %182 = tpu.concatenate %127, %145, %163, %181 in 1 : vector<8x8xf32>, vector<8x8xf32>, vector<8x8xf32>, vector<8x8xf32> -> vector<8x32xf32>
    %183 = tpu.concatenate %103, %182 in 0 : vector<8x32xf32>, vector<8x32xf32> -> vector<16x32xf32>
    %c0_58 = arith.constant 0 : index
    %c0_59 = arith.constant 0 : index
    %c0_60 = arith.constant 0 : index
    %184 = vector.load %arg5[%c0_58, %c0_59, %c0_60] : memref<2x32x64xf32, #tpu.memory_space<vmem>>, vector<1x32x64xf32>
    %185 = vector.shape_cast %184 : vector<1x32x64xf32> to vector<32x64xf32>
    %cst_61 = arith.constant dense<0.000000e+00> : vector<16x64xf32>
    %186 = tpu.matmul %183, %185, %cst_61 {dimension_numbers = #tpu.dot_dimension_numbers<[1], [0], [0], [1], [0, 0, 1, 1], [], []>} : vector<16x32xf32>, vector<32x64xf32>, vector<16x64xf32> -> vector<16x64xf32>
    %187 = vector.broadcast %6 : vector<1x64xf32> to vector<16x64xf32>
    %188 = arith.addf %186, %187 : vector<16x64xf32>
    %189 = vector.extract_strided_slice %188 {offsets = [0, 0], sizes = [8, 64], strides = [1, 1]} : vector<16x64xf32> to vector<8x64xf32>
    %190 = vector.extract_strided_slice %19 {offsets = [0, 64], sizes = [16, 32], strides = [1, 1]} : vector<32x96xf32> to vector<16x32xf32>
    %191 = vector.extract_strided_slice %189 {offsets = [0, 0], sizes = [8, 32], strides = [1, 1]} : vector<8x64xf32> to vector<8x32xf32>
    %192 = vector.extract_strided_slice %189 {offsets = [0, 32], sizes = [8, 32], strides = [1, 1]} : vector<8x64xf32> to vector<8x32xf32>
    %193 = vector.extract_strided_slice %190 {offsets = [0, 0], sizes = [16, 8], strides = [1, 1]} : vector<16x32xf32> to vector<16x8xf32>
    %194 = vector.extract_strided_slice %191 {offsets = [0, 0], sizes = [8, 8], strides = [1, 1]} : vector<8x32xf32> to vector<8x8xf32>
    %195 = vector.extract_strided_slice %192 {offsets = [0, 0], sizes = [8, 8], strides = [1, 1]} : vector<8x32xf32> to vector<8x8xf32>
    %cst_62 = arith.constant dense<0.000000e+00> : vector<16x8xf32>
    %196 = tpu.matmul %193, %194, %cst_62 {dimension_numbers = #tpu.dot_dimension_numbers<[1], [1], [0], [0], [0, 0, 1, 0], [], []>} : vector<16x8xf32>, vector<8x8xf32>, vector<16x8xf32> -> vector<16x8xf32>
    %cst_63 = arith.constant 0.353553385 : f32
    %197 = vector.broadcast %cst_63 : f32 to vector<16x8xf32>
    %198 = arith.mulf %196, %197 : vector<16x8xf32>
    %cst_64 = arith.constant dense<0xFF800000> : vector<16xf32>
    %199 = vector.multi_reduction <maximumf>, %198, %cst_64 [1] : vector<16x8xf32> to vector<16xf32>
    %200 = vector.shape_cast %199 : vector<16xf32> to vector<16x1xf32>
    %201 = vector.broadcast %200 : vector<16x1xf32> to vector<16x8xf32>
    %202 = arith.subf %198, %201 : vector<16x8xf32>
    %203 = math.exp %202 : vector<16x8xf32>
    %cst_65 = arith.constant dense<0.000000e+00> : vector<16xf32>
    %204 = vector.multi_reduction <add>, %203, %cst_65 [1] : vector<16x8xf32> to vector<16xf32>
    %205 = vector.shape_cast %204 : vector<16xf32> to vector<16x1xf32>
    %206 = vector.broadcast %205 : vector<16x1xf32> to vector<16x8xf32>
    %207 = arith.divf %203, %206 : vector<16x8xf32>
    %cst_66 = arith.constant dense<0.000000e+00> : vector<16x8xf32>
    %208 = tpu.matmul %207, %195, %cst_66 {dimension_numbers = #tpu.dot_dimension_numbers<[1], [0], [0], [1], [0, 0, 1, 1], [], []>} : vector<16x8xf32>, vector<8x8xf32>, vector<16x8xf32> -> vector<16x8xf32>
    %209 = vector.extract_strided_slice %190 {offsets = [0, 8], sizes = [16, 8], strides = [1, 1]} : vector<16x32xf32> to vector<16x8xf32>
    %210 = vector.extract_strided_slice %191 {offsets = [0, 8], sizes = [8, 8], strides = [1, 1]} : vector<8x32xf32> to vector<8x8xf32>
    %211 = vector.extract_strided_slice %192 {offsets = [0, 8], sizes = [8, 8], strides = [1, 1]} : vector<8x32xf32> to vector<8x8xf32>
    %cst_67 = arith.constant dense<0.000000e+00> : vector<16x8xf32>
    %212 = tpu.matmul %209, %210, %cst_67 {dimension_numbers = #tpu.dot_dimension_numbers<[1], [1], [0], [0], [0, 0, 1, 0], [], []>} : vector<16x8xf32>, vector<8x8xf32>, vector<16x8xf32> -> vector<16x8xf32>
    %cst_68 = arith.constant 0.353553385 : f32
    %213 = vector.broadcast %cst_68 : f32 to vector<16x8xf32>
    %214 = arith.mulf %212, %213 : vector<16x8xf32>
    %cst_69 = arith.constant dense<0xFF800000> : vector<16xf32>
    %215 = vector.multi_reduction <maximumf>, %214, %cst_69 [1] : vector<16x8xf32> to vector<16xf32>
    %216 = vector.shape_cast %215 : vector<16xf32> to vector<16x1xf32>
    %217 = vector.broadcast %216 : vector<16x1xf32> to vector<16x8xf32>
    %218 = arith.subf %214, %217 : vector<16x8xf32>
    %219 = math.exp %218 : vector<16x8xf32>
    %cst_70 = arith.constant dense<0.000000e+00> : vector<16xf32>
    %220 = vector.multi_reduction <add>, %219, %cst_70 [1] : vector<16x8xf32> to vector<16xf32>
    %221 = vector.shape_cast %220 : vector<16xf32> to vector<16x1xf32>
    %222 = vector.broadcast %221 : vector<16x1xf32> to vector<16x8xf32>
    %223 = arith.divf %219, %222 : vector<16x8xf32>
    %cst_71 = arith.constant dense<0.000000e+00> : vector<16x8xf32>
    %224 = tpu.matmul %223, %211, %cst_71 {dimension_numbers = #tpu.dot_dimension_numbers<[1], [0], [0], [1], [0, 0, 1, 1], [], []>} : vector<16x8xf32>, vector<8x8xf32>, vector<16x8xf32> -> vector<16x8xf32>
    %225 = vector.extract_strided_slice %190 {offsets = [0, 16], sizes = [16, 8], strides = [1, 1]} : vector<16x32xf32> to vector<16x8xf32>
    %226 = vector.extract_strided_slice %191 {offsets = [0, 16], sizes = [8, 8], strides = [1, 1]} : vector<8x32xf32> to vector<8x8xf32>
    %227 = vector.extract_strided_slice %192 {offsets = [0, 16], sizes = [8, 8], strides = [1, 1]} : vector<8x32xf32> to vector<8x8xf32>
    %cst_72 = arith.constant dense<0.000000e+00> : vector<16x8xf32>
    %228 = tpu.matmul %225, %226, %cst_72 {dimension_numbers = #tpu.dot_dimension_numbers<[1], [1], [0], [0], [0, 0, 1, 0], [], []>} : vector<16x8xf32>, vector<8x8xf32>, vector<16x8xf32> -> vector<16x8xf32>
    %cst_73 = arith.constant 0.353553385 : f32
    %229 = vector.broadcast %cst_73 : f32 to vector<16x8xf32>
    %230 = arith.mulf %228, %229 : vector<16x8xf32>
    %cst_74 = arith.constant dense<0xFF800000> : vector<16xf32>
    %231 = vector.multi_reduction <maximumf>, %230, %cst_74 [1] : vector<16x8xf32> to vector<16xf32>
    %232 = vector.shape_cast %231 : vector<16xf32> to vector<16x1xf32>
    %233 = vector.broadcast %232 : vector<16x1xf32> to vector<16x8xf32>
    %234 = arith.subf %230, %233 : vector<16x8xf32>
    %235 = math.exp %234 : vector<16x8xf32>
    %cst_75 = arith.constant dense<0.000000e+00> : vector<16xf32>
    %236 = vector.multi_reduction <add>, %235, %cst_75 [1] : vector<16x8xf32> to vector<16xf32>
    %237 = vector.shape_cast %236 : vector<16xf32> to vector<16x1xf32>
    %238 = vector.broadcast %237 : vector<16x1xf32> to vector<16x8xf32>
    %239 = arith.divf %235, %238 : vector<16x8xf32>
    %cst_76 = arith.constant dense<0.000000e+00> : vector<16x8xf32>
    %240 = tpu.matmul %239, %227, %cst_76 {dimension_numbers = #tpu.dot_dimension_numbers<[1], [0], [0], [1], [0, 0, 1, 1], [], []>} : vector<16x8xf32>, vector<8x8xf32>, vector<16x8xf32> -> vector<16x8xf32>
    %241 = vector.extract_strided_slice %190 {offsets = [0, 24], sizes = [16, 8], strides = [1, 1]} : vector<16x32xf32> to vector<16x8xf32>
    %242 = vector.extract_strided_slice %191 {offsets = [0, 24], sizes = [8, 8], strides = [1, 1]} : vector<8x32xf32> to vector<8x8xf32>
    %243 = vector.extract_strided_slice %192 {offsets = [0, 24], sizes = [8, 8], strides = [1, 1]} : vector<8x32xf32> to vector<8x8xf32>
    %cst_77 = arith.constant dense<0.000000e+00> : vector<16x8xf32>
    %244 = tpu.matmul %241, %242, %cst_77 {dimension_numbers = #tpu.dot_dimension_numbers<[1], [1], [0], [0], [0, 0, 1, 0], [], []>} : vector<16x8xf32>, vector<8x8xf32>, vector<16x8xf32> -> vector<16x8xf32>
    %cst_78 = arith.constant 0.353553385 : f32
    %245 = vector.broadcast %cst_78 : f32 to vector<16x8xf32>
    %246 = arith.mulf %244, %245 : vector<16x8xf32>
    %cst_79 = arith.constant dense<0xFF800000> : vector<16xf32>
    %247 = vector.multi_reduction <maximumf>, %246, %cst_79 [1] : vector<16x8xf32> to vector<16xf32>
    %248 = vector.shape_cast %247 : vector<16xf32> to vector<16x1xf32>
    %249 = vector.broadcast %248 : vector<16x1xf32> to vector<16x8xf32>
    %250 = arith.subf %246, %249 : vector<16x8xf32>
    %251 = math.exp %250 : vector<16x8xf32>
    %cst_80 = arith.constant dense<0.000000e+00> : vector<16xf32>
    %252 = vector.multi_reduction <add>, %251, %cst_80 [1] : vector<16x8xf32> to vector<16xf32>
    %253 = vector.shape_cast %252 : vector<16xf32> to vector<16x1xf32>
    %254 = vector.broadcast %253 : vector<16x1xf32> to vector<16x8xf32>
    %255 = arith.divf %251, %254 : vector<16x8xf32>
    %cst_81 = arith.constant dense<0.000000e+00> : vector<16x8xf32>
    %256 = tpu.matmul %255, %243, %cst_81 {dimension_numbers = #tpu.dot_dimension_numbers<[1], [0], [0], [1], [0, 0, 1, 1], [], []>} : vector<16x8xf32>, vector<8x8xf32>, vector<16x8xf32> -> vector<16x8xf32>
    %257 = tpu.concatenate %208, %224, %240, %256 in 1 : vector<16x8xf32>, vector<16x8xf32>, vector<16x8xf32>, vector<16x8xf32> -> vector<16x32xf32>
    %258 = vector.extract_strided_slice %188 {offsets = [8, 0], sizes = [8, 64], strides = [1, 1]} : vector<16x64xf32> to vector<8x64xf32>
    %259 = vector.extract_strided_slice %19 {offsets = [16, 64], sizes = [16, 32], strides = [1, 1]} : vector<32x96xf32> to vector<16x32xf32>
    %260 = vector.extract_strided_slice %258 {offsets = [0, 0], sizes = [8, 32], strides = [1, 1]} : vector<8x64xf32> to vector<8x32xf32>
    %261 = vector.extract_strided_slice %258 {offsets = [0, 32], sizes = [8, 32], strides = [1, 1]} : vector<8x64xf32> to vector<8x32xf32>
    %262 = vector.extract_strided_slice %259 {offsets = [0, 0], sizes = [16, 8], strides = [1, 1]} : vector<16x32xf32> to vector<16x8xf32>
    %263 = vector.extract_strided_slice %260 {offsets = [0, 0], sizes = [8, 8], strides = [1, 1]} : vector<8x32xf32> to vector<8x8xf32>
    %264 = vector.extract_strided_slice %261 {offsets = [0, 0], sizes = [8, 8], strides = [1, 1]} : vector<8x32xf32> to vector<8x8xf32>
    %cst_82 = arith.constant dense<0.000000e+00> : vector<16x8xf32>
    %265 = tpu.matmul %262, %263, %cst_82 {dimension_numbers = #tpu.dot_dimension_numbers<[1], [1], [0], [0], [0, 0, 1, 0], [], []>} : vector<16x8xf32>, vector<8x8xf32>, vector<16x8xf32> -> vector<16x8xf32>
    %cst_83 = arith.constant 0.353553385 : f32
    %266 = vector.broadcast %cst_83 : f32 to vector<16x8xf32>
    %267 = arith.mulf %265, %266 : vector<16x8xf32>
    %cst_84 = arith.constant dense<0xFF800000> : vector<16xf32>
    %268 = vector.multi_reduction <maximumf>, %267, %cst_84 [1] : vector<16x8xf32> to vector<16xf32>
    %269 = vector.shape_cast %268 : vector<16xf32> to vector<16x1xf32>
    %270 = vector.broadcast %269 : vector<16x1xf32> to vector<16x8xf32>
    %271 = arith.subf %267, %270 : vector<16x8xf32>
    %272 = math.exp %271 : vector<16x8xf32>
    %cst_85 = arith.constant dense<0.000000e+00> : vector<16xf32>
    %273 = vector.multi_reduction <add>, %272, %cst_85 [1] : vector<16x8xf32> to vector<16xf32>
    %274 = vector.shape_cast %273 : vector<16xf32> to vector<16x1xf32>
    %275 = vector.broadcast %274 : vector<16x1xf32> to vector<16x8xf32>
    %276 = arith.divf %272, %275 : vector<16x8xf32>
    %cst_86 = arith.constant dense<0.000000e+00> : vector<16x8xf32>
    %277 = tpu.matmul %276, %264, %cst_86 {dimension_numbers = #tpu.dot_dimension_numbers<[1], [0], [0], [1], [0, 0, 1, 1], [], []>} : vector<16x8xf32>, vector<8x8xf32>, vector<16x8xf32> -> vector<16x8xf32>
    %278 = vector.extract_strided_slice %259 {offsets = [0, 8], sizes = [16, 8], strides = [1, 1]} : vector<16x32xf32> to vector<16x8xf32>
    %279 = vector.extract_strided_slice %260 {offsets = [0, 8], sizes = [8, 8], strides = [1, 1]} : vector<8x32xf32> to vector<8x8xf32>
    %280 = vector.extract_strided_slice %261 {offsets = [0, 8], sizes = [8, 8], strides = [1, 1]} : vector<8x32xf32> to vector<8x8xf32>
    %cst_87 = arith.constant dense<0.000000e+00> : vector<16x8xf32>
    %281 = tpu.matmul %278, %279, %cst_87 {dimension_numbers = #tpu.dot_dimension_numbers<[1], [1], [0], [0], [0, 0, 1, 0], [], []>} : vector<16x8xf32>, vector<8x8xf32>, vector<16x8xf32> -> vector<16x8xf32>
    %cst_88 = arith.constant 0.353553385 : f32
    %282 = vector.broadcast %cst_88 : f32 to vector<16x8xf32>
    %283 = arith.mulf %281, %282 : vector<16x8xf32>
    %cst_89 = arith.constant dense<0xFF800000> : vector<16xf32>
    %284 = vector.multi_reduction <maximumf>, %283, %cst_89 [1] : vector<16x8xf32> to vector<16xf32>
    %285 = vector.shape_cast %284 : vector<16xf32> to vector<16x1xf32>
    %286 = vector.broadcast %285 : vector<16x1xf32> to vector<16x8xf32>
    %287 = arith.subf %283, %286 : vector<16x8xf32>
    %288 = math.exp %287 : vector<16x8xf32>
    %cst_90 = arith.constant dense<0.000000e+00> : vector<16xf32>
    %289 = vector.multi_reduction <add>, %288, %cst_90 [1] : vector<16x8xf32> to vector<16xf32>
    %290 = vector.shape_cast %289 : vector<16xf32> to vector<16x1xf32>
    %291 = vector.broadcast %290 : vector<16x1xf32> to vector<16x8xf32>
    %292 = arith.divf %288, %291 : vector<16x8xf32>
    %cst_91 = arith.constant dense<0.000000e+00> : vector<16x8xf32>
    %293 = tpu.matmul %292, %280, %cst_91 {dimension_numbers = #tpu.dot_dimension_numbers<[1], [0], [0], [1], [0, 0, 1, 1], [], []>} : vector<16x8xf32>, vector<8x8xf32>, vector<16x8xf32> -> vector<16x8xf32>
    %294 = vector.extract_strided_slice %259 {offsets = [0, 16], sizes = [16, 8], strides = [1, 1]} : vector<16x32xf32> to vector<16x8xf32>
    %295 = vector.extract_strided_slice %260 {offsets = [0, 16], sizes = [8, 8], strides = [1, 1]} : vector<8x32xf32> to vector<8x8xf32>
    %296 = vector.extract_strided_slice %261 {offsets = [0, 16], sizes = [8, 8], strides = [1, 1]} : vector<8x32xf32> to vector<8x8xf32>
    %cst_92 = arith.constant dense<0.000000e+00> : vector<16x8xf32>
    %297 = tpu.matmul %294, %295, %cst_92 {dimension_numbers = #tpu.dot_dimension_numbers<[1], [1], [0], [0], [0, 0, 1, 0], [], []>} : vector<16x8xf32>, vector<8x8xf32>, vector<16x8xf32> -> vector<16x8xf32>
    %cst_93 = arith.constant 0.353553385 : f32
    %298 = vector.broadcast %cst_93 : f32 to vector<16x8xf32>
    %299 = arith.mulf %297, %298 : vector<16x8xf32>
    %cst_94 = arith.constant dense<0xFF800000> : vector<16xf32>
    %300 = vector.multi_reduction <maximumf>, %299, %cst_94 [1] : vector<16x8xf32> to vector<16xf32>
    %301 = vector.shape_cast %300 : vector<16xf32> to vector<16x1xf32>
    %302 = vector.broadcast %301 : vector<16x1xf32> to vector<16x8xf32>
    %303 = arith.subf %299, %302 : vector<16x8xf32>
    %304 = math.exp %303 : vector<16x8xf32>
    %cst_95 = arith.constant dense<0.000000e+00> : vector<16xf32>
    %305 = vector.multi_reduction <add>, %304, %cst_95 [1] : vector<16x8xf32> to vector<16xf32>
    %306 = vector.shape_cast %305 : vector<16xf32> to vector<16x1xf32>
    %307 = vector.broadcast %306 : vector<16x1xf32> to vector<16x8xf32>
    %308 = arith.divf %304, %307 : vector<16x8xf32>
    %cst_96 = arith.constant dense<0.000000e+00> : vector<16x8xf32>
    %309 = tpu.matmul %308, %296, %cst_96 {dimension_numbers = #tpu.dot_dimension_numbers<[1], [0], [0], [1], [0, 0, 1, 1], [], []>} : vector<16x8xf32>, vector<8x8xf32>, vector<16x8xf32> -> vector<16x8xf32>
    %310 = vector.extract_strided_slice %259 {offsets = [0, 24], sizes = [16, 8], strides = [1, 1]} : vector<16x32xf32> to vector<16x8xf32>
    %311 = vector.extract_strided_slice %260 {offsets = [0, 24], sizes = [8, 8], strides = [1, 1]} : vector<8x32xf32> to vector<8x8xf32>
    %312 = vector.extract_strided_slice %261 {offsets = [0, 24], sizes = [8, 8], strides = [1, 1]} : vector<8x32xf32> to vector<8x8xf32>
    %cst_97 = arith.constant dense<0.000000e+00> : vector<16x8xf32>
    %313 = tpu.matmul %310, %311, %cst_97 {dimension_numbers = #tpu.dot_dimension_numbers<[1], [1], [0], [0], [0, 0, 1, 0], [], []>} : vector<16x8xf32>, vector<8x8xf32>, vector<16x8xf32> -> vector<16x8xf32>
    %cst_98 = arith.constant 0.353553385 : f32
    %314 = vector.broadcast %cst_98 : f32 to vector<16x8xf32>
    %315 = arith.mulf %313, %314 : vector<16x8xf32>
    %cst_99 = arith.constant dense<0xFF800000> : vector<16xf32>
    %316 = vector.multi_reduction <maximumf>, %315, %cst_99 [1] : vector<16x8xf32> to vector<16xf32>
    %317 = vector.shape_cast %316 : vector<16xf32> to vector<16x1xf32>
    %318 = vector.broadcast %317 : vector<16x1xf32> to vector<16x8xf32>
    %319 = arith.subf %315, %318 : vector<16x8xf32>
    %320 = math.exp %319 : vector<16x8xf32>
    %cst_100 = arith.constant dense<0.000000e+00> : vector<16xf32>
    %321 = vector.multi_reduction <add>, %320, %cst_100 [1] : vector<16x8xf32> to vector<16xf32>
    %322 = vector.shape_cast %321 : vector<16xf32> to vector<16x1xf32>
    %323 = vector.broadcast %322 : vector<16x1xf32> to vector<16x8xf32>
    %324 = arith.divf %320, %323 : vector<16x8xf32>
    %cst_101 = arith.constant dense<0.000000e+00> : vector<16x8xf32>
    %325 = tpu.matmul %324, %312, %cst_101 {dimension_numbers = #tpu.dot_dimension_numbers<[1], [0], [0], [1], [0, 0, 1, 1], [], []>} : vector<16x8xf32>, vector<8x8xf32>, vector<16x8xf32> -> vector<16x8xf32>
    %326 = tpu.concatenate %277, %293, %309, %325 in 1 : vector<16x8xf32>, vector<16x8xf32>, vector<16x8xf32>, vector<16x8xf32> -> vector<16x32xf32>
    %327 = tpu.concatenate %257, %326 in 0 : vector<16x32xf32>, vector<16x32xf32> -> vector<32x32xf32>
    %328 = arith.addf %183, %1 : vector<16x32xf32>
    %cst_102 = arith.constant dense<0.000000e+00> : vector<16xf32>
    %329 = vector.multi_reduction <add>, %328, %cst_102 [1] : vector<16x32xf32> to vector<16xf32>
    %330 = vector.shape_cast %329 : vector<16xf32> to vector<16x1xf32>
    %cst_103 = arith.constant 3.200000e+01 : f32
    %331 = vector.broadcast %cst_103 : f32 to vector<16x1xf32>
    %332 = arith.divf %330, %331 : vector<16x1xf32>
    %333 = vector.broadcast %332 : vector<16x1xf32> to vector<16x32xf32>
    %334 = arith.subf %328, %333 : vector<16x32xf32>
    %335 = arith.mulf %334, %334 : vector<16x32xf32>
    %cst_104 = arith.constant dense<0.000000e+00> : vector<16xf32>
    %336 = vector.multi_reduction <add>, %335, %cst_104 [1] : vector<16x32xf32> to vector<16xf32>
    %337 = vector.shape_cast %336 : vector<16xf32> to vector<16x1xf32>
    %cst_105 = arith.constant 3.200000e+01 : f32
    %338 = vector.broadcast %cst_105 : f32 to vector<16x1xf32>
    %339 = arith.divf %337, %338 : vector<16x1xf32>
    %cst_106 = arith.constant 9.99999974E-6 : f32
    %340 = vector.broadcast %cst_106 : f32 to vector<16x1xf32>
    %341 = arith.addf %339, %340 : vector<16x1xf32>
    %342 = math.rsqrt %341 : vector<16x1xf32>
    %343 = vector.broadcast %342 : vector<16x1xf32> to vector<16x32xf32>
    %344 = arith.mulf %334, %343 : vector<16x32xf32>
    %345 = vector.broadcast %9 : vector<1x32xf32> to vector<16x32xf32>
    %346 = arith.mulf %344, %345 : vector<16x32xf32>
    %347 = vector.broadcast %10 : vector<1x32xf32> to vector<16x32xf32>
    %348 = arith.addf %346, %347 : vector<16x32xf32>
    %349 = arith.addf %327, %0 : vector<32x32xf32>
    %cst_107 = arith.constant dense<0.000000e+00> : vector<32xf32>
    %350 = vector.multi_reduction <add>, %349, %cst_107 [1] : vector<32x32xf32> to vector<32xf32>
    %351 = vector.shape_cast %350 : vector<32xf32> to vector<32x1xf32>
    %cst_108 = arith.constant 3.200000e+01 : f32
    %352 = vector.broadcast %cst_108 : f32 to vector<32x1xf32>
    %353 = arith.divf %351, %352 : vector<32x1xf32>
    %354 = vector.broadcast %353 : vector<32x1xf32> to vector<32x32xf32>
    %355 = arith.subf %349, %354 : vector<32x32xf32>
    %356 = arith.mulf %355, %355 : vector<32x32xf32>
    %cst_109 = arith.constant dense<0.000000e+00> : vector<32xf32>
    %357 = vector.multi_reduction <add>, %356, %cst_109 [1] : vector<32x32xf32> to vector<32xf32>
    %358 = vector.shape_cast %357 : vector<32xf32> to vector<32x1xf32>
    %cst_110 = arith.constant 3.200000e+01 : f32
    %359 = vector.broadcast %cst_110 : f32 to vector<32x1xf32>
    %360 = arith.divf %358, %359 : vector<32x1xf32>
    %cst_111 = arith.constant 9.99999974E-6 : f32
    %361 = vector.broadcast %cst_111 : f32 to vector<32x1xf32>
    %362 = arith.addf %360, %361 : vector<32x1xf32>
    %363 = math.rsqrt %362 : vector<32x1xf32>
    %364 = vector.broadcast %363 : vector<32x1xf32> to vector<32x32xf32>
    %365 = arith.mulf %355, %364 : vector<32x32xf32>
    %366 = vector.broadcast %11 : vector<1x32xf32> to vector<32x32xf32>
    %367 = arith.mulf %365, %366 : vector<32x32xf32>
    %368 = vector.broadcast %12 : vector<1x32xf32> to vector<32x32xf32>
    %369 = arith.addf %367, %368 : vector<32x32xf32>
    %c0_112 = arith.constant 0 : index
    %c0_113 = arith.constant 0 : index
    %c0_114 = arith.constant 0 : index
    %370 = vector.load %arg6[%c0_112, %c0_113, %c0_114] : memref<2x32x64xf32, #tpu.memory_space<vmem>>, vector<1x32x64xf32>
    %371 = vector.shape_cast %370 : vector<1x32x64xf32> to vector<32x64xf32>
    %cst_115 = arith.constant dense<0.000000e+00> : vector<32x64xf32>
    %372 = tpu.matmul %369, %371, %cst_115 {dimension_numbers = #tpu.dot_dimension_numbers<[1], [0], [0], [1], [0, 0, 1, 1], [], []>} : vector<32x32xf32>, vector<32x64xf32>, vector<32x64xf32> -> vector<32x64xf32>
    %373 = vector.broadcast %7 : vector<1x64xf32> to vector<32x64xf32>
    %374 = arith.addf %372, %373 : vector<32x64xf32>
    %cst_116 = arith.constant 0.000000e+00 : f32
    %375 = vector.broadcast %cst_116 : f32 to vector<32x64xf32>
    %376 = arith.maximumf %374, %375 : vector<32x64xf32>
    %c0_117 = arith.constant 0 : index
    %c0_118 = arith.constant 0 : index
    %c0_119 = arith.constant 0 : index
    %377 = vector.load %arg7[%c0_117, %c0_118, %c0_119] : memref<2x64x32xf32, #tpu.memory_space<vmem>>, vector<1x64x32xf32>
    %378 = vector.shape_cast %377 : vector<1x64x32xf32> to vector<64x32xf32>
    %cst_120 = arith.constant dense<0.000000e+00> : vector<32x32xf32>
    %379 = tpu.matmul %376, %378, %cst_120 {dimension_numbers = #tpu.dot_dimension_numbers<[1], [0], [0], [1], [0, 0, 1, 1], [], []>} : vector<32x64xf32>, vector<64x32xf32>, vector<32x32xf32> -> vector<32x32xf32>
    %380 = vector.broadcast %8 : vector<1x32xf32> to vector<32x32xf32>
    %381 = arith.addf %379, %380 : vector<32x32xf32>
    %382 = arith.addf %381, %369 : vector<32x32xf32>
    %cst_121 = arith.constant dense<0.000000e+00> : vector<32xf32>
    %383 = vector.multi_reduction <add>, %382, %cst_121 [1] : vector<32x32xf32> to vector<32xf32>
    %384 = vector.shape_cast %383 : vector<32xf32> to vector<32x1xf32>
    %cst_122 = arith.constant 3.200000e+01 : f32
    %385 = vector.broadcast %cst_122 : f32 to vector<32x1xf32>
    %386 = arith.divf %384, %385 : vector<32x1xf32>
    %387 = vector.broadcast %386 : vector<32x1xf32> to vector<32x32xf32>
    %388 = arith.subf %382, %387 : vector<32x32xf32>
    %389 = arith.mulf %388, %388 : vector<32x32xf32>
    %cst_123 = arith.constant dense<0.000000e+00> : vector<32xf32>
    %390 = vector.multi_reduction <add>, %389, %cst_123 [1] : vector<32x32xf32> to vector<32xf32>
    %391 = vector.shape_cast %390 : vector<32xf32> to vector<32x1xf32>
    %cst_124 = arith.constant 3.200000e+01 : f32
    %392 = vector.broadcast %cst_124 : f32 to vector<32x1xf32>
    %393 = arith.divf %391, %392 : vector<32x1xf32>
    %cst_125 = arith.constant 9.99999974E-6 : f32
    %394 = vector.broadcast %cst_125 : f32 to vector<32x1xf32>
    %395 = arith.addf %393, %394 : vector<32x1xf32>
    %396 = math.rsqrt %395 : vector<32x1xf32>
    %397 = vector.broadcast %396 : vector<32x1xf32> to vector<32x32xf32>
    %398 = arith.mulf %388, %397 : vector<32x32xf32>
    %399 = vector.broadcast %13 : vector<1x32xf32> to vector<32x32xf32>
    %400 = arith.mulf %398, %399 : vector<32x32xf32>
    %401 = vector.broadcast %14 : vector<1x32xf32> to vector<32x32xf32>
    %402 = arith.addf %400, %401 : vector<32x32xf32>
    %c1_126 = arith.constant 1 : index
    %c0_127 = arith.constant 0 : index
    %c0_128 = arith.constant 0 : index
    %403 = vector.load %arg8[%c1_126, %c0_127, %c0_128] : memref<2x16x128xf32, #tpu.memory_space<vmem>>, vector<1x16x128xf32>
    %404 = vector.shape_cast %403 : vector<1x16x128xf32> to vector<16x128xf32>
    %405 = vector.extract_strided_slice %404 {offsets = [0, 0], sizes = [1, 96], strides = [1, 1]} : vector<16x128xf32> to vector<1x96xf32>
    %406 = vector.extract_strided_slice %404 {offsets = [1, 0], sizes = [1, 32], strides = [1, 1]} : vector<16x128xf32> to vector<1x32xf32>
    %407 = vector.extract_strided_slice %404 {offsets = [2, 0], sizes = [1, 64], strides = [1, 1]} : vector<16x128xf32> to vector<1x64xf32>
    %408 = vector.extract_strided_slice %404 {offsets = [3, 0], sizes = [1, 64], strides = [1, 1]} : vector<16x128xf32> to vector<1x64xf32>
    %409 = vector.extract_strided_slice %404 {offsets = [4, 0], sizes = [1, 32], strides = [1, 1]} : vector<16x128xf32> to vector<1x32xf32>
    %410 = vector.extract_strided_slice %404 {offsets = [7, 0], sizes = [1, 32], strides = [1, 1]} : vector<16x128xf32> to vector<1x32xf32>
    %411 = vector.extract_strided_slice %404 {offsets = [8, 0], sizes = [1, 32], strides = [1, 1]} : vector<16x128xf32> to vector<1x32xf32>
    %412 = vector.extract_strided_slice %404 {offsets = [9, 0], sizes = [1, 32], strides = [1, 1]} : vector<16x128xf32> to vector<1x32xf32>
    %413 = vector.extract_strided_slice %404 {offsets = [10, 0], sizes = [1, 32], strides = [1, 1]} : vector<16x128xf32> to vector<1x32xf32>
    %c1_129 = arith.constant 1 : index
    %c0_130 = arith.constant 0 : index
    %c0_131 = arith.constant 0 : index
    %414 = vector.load %arg3[%c1_129, %c0_130, %c0_131] : memref<2x32x96xf32, #tpu.memory_space<vmem>>, vector<1x32x96xf32>
    %415 = vector.shape_cast %414 : vector<1x32x96xf32> to vector<32x96xf32>
    %cst_132 = arith.constant dense<0.000000e+00> : vector<32x96xf32>
    %416 = tpu.matmul %402, %415, %cst_132 {dimension_numbers = #tpu.dot_dimension_numbers<[1], [0], [0], [1], [0, 0, 1, 1], [], []>} : vector<32x32xf32>, vector<32x96xf32>, vector<32x96xf32> -> vector<32x96xf32>
    %417 = vector.broadcast %405 : vector<1x96xf32> to vector<32x96xf32>
    %418 = arith.addf %416, %417 : vector<32x96xf32>
    %c1_133 = arith.constant 1 : index
    %c0_134 = arith.constant 0 : index
    %c0_135 = arith.constant 0 : index
    %419 = vector.load %arg4[%c1_133, %c0_134, %c0_135] : memref<2x32x32xf32, #tpu.memory_space<vmem>>, vector<1x32x32xf32>
    %420 = vector.shape_cast %419 : vector<1x32x32xf32> to vector<32x32xf32>
    %cst_136 = arith.constant dense<0.000000e+00> : vector<16x32xf32>
    %421 = tpu.matmul %348, %420, %cst_136 {dimension_numbers = #tpu.dot_dimension_numbers<[1], [0], [0], [1], [0, 0, 1, 1], [], []>} : vector<16x32xf32>, vector<32x32xf32>, vector<16x32xf32> -> vector<16x32xf32>
    %422 = vector.broadcast %406 : vector<1x32xf32> to vector<16x32xf32>
    %423 = arith.addf %421, %422 : vector<16x32xf32>
    %424 = vector.extract_strided_slice %418 {offsets = [0, 0], sizes = [16, 96], strides = [1, 1]} : vector<32x96xf32> to vector<16x96xf32>
    %425 = vector.extract_strided_slice %423 {offsets = [0, 0], sizes = [8, 32], strides = [1, 1]} : vector<16x32xf32> to vector<8x32xf32>
    %426 = vector.extract_strided_slice %424 {offsets = [0, 0], sizes = [16, 32], strides = [1, 1]} : vector<16x96xf32> to vector<16x32xf32>
    %427 = vector.extract_strided_slice %424 {offsets = [0, 32], sizes = [16, 32], strides = [1, 1]} : vector<16x96xf32> to vector<16x32xf32>
    %c0_137 = arith.constant 0 : index
    %c0_138 = arith.constant 0 : index
    %c0_139 = arith.constant 0 : index
    %428 = vector.load %arg2[%c0_137, %c0_138, %c0_139] : memref<2x1x16xf32, #tpu.memory_space<vmem>>, vector<1x1x16xf32>
    %429 = vector.shape_cast %428 : vector<1x1x16xf32> to vector<1x16xf32>
    %430 = vector.extract_strided_slice %425 {offsets = [0, 0], sizes = [8, 8], strides = [1, 1]} : vector<8x32xf32> to vector<8x8xf32>
    %431 = vector.extract_strided_slice %426 {offsets = [0, 0], sizes = [16, 8], strides = [1, 1]} : vector<16x32xf32> to vector<16x8xf32>
    %432 = vector.extract_strided_slice %427 {offsets = [0, 0], sizes = [16, 8], strides = [1, 1]} : vector<16x32xf32> to vector<16x8xf32>
    %cst_140 = arith.constant dense<0.000000e+00> : vector<8x16xf32>
    %433 = tpu.matmul %430, %431, %cst_140 {dimension_numbers = #tpu.dot_dimension_numbers<[1], [1], [0], [0], [0, 0, 1, 0], [], []>} : vector<8x8xf32>, vector<16x8xf32>, vector<8x16xf32> -> vector<8x16xf32>
    %cst_141 = arith.constant 0.353553385 : f32
    %434 = vector.broadcast %cst_141 : f32 to vector<8x16xf32>
    %435 = arith.mulf %433, %434 : vector<8x16xf32>
    %436 = vector.broadcast %429 : vector<1x16xf32> to vector<8x16xf32>
    %437 = arith.addf %435, %436 : vector<8x16xf32>
    %cst_142 = arith.constant dense<0xFF800000> : vector<8xf32>
    %438 = vector.multi_reduction <maximumf>, %437, %cst_142 [1] : vector<8x16xf32> to vector<8xf32>
    %439 = vector.shape_cast %438 : vector<8xf32> to vector<8x1xf32>
    %440 = vector.broadcast %439 : vector<8x1xf32> to vector<8x16xf32>
    %441 = arith.subf %437, %440 : vector<8x16xf32>
    %442 = math.exp %441 : vector<8x16xf32>
    %cst_143 = arith.constant dense<0.000000e+00> : vector<8xf32>
    %443 = vector.multi_reduction <add>, %442, %cst_143 [1] : vector<8x16xf32> to vector<8xf32>
    %444 = vector.shape_cast %443 : vector<8xf32> to vector<8x1xf32>
    %445 = vector.broadcast %444 : vector<8x1xf32> to vector<8x16xf32>
    %446 = arith.divf %442, %445 : vector<8x16xf32>
    %cst_144 = arith.constant dense<0.000000e+00> : vector<8x8xf32>
    %447 = tpu.matmul %446, %432, %cst_144 {dimension_numbers = #tpu.dot_dimension_numbers<[1], [0], [0], [1], [0, 0, 1, 1], [], []>} : vector<8x16xf32>, vector<16x8xf32>, vector<8x8xf32> -> vector<8x8xf32>
    %448 = vector.extract_strided_slice %425 {offsets = [0, 8], sizes = [8, 8], strides = [1, 1]} : vector<8x32xf32> to vector<8x8xf32>
    %449 = vector.extract_strided_slice %426 {offsets = [0, 8], sizes = [16, 8], strides = [1, 1]} : vector<16x32xf32> to vector<16x8xf32>
    %450 = vector.extract_strided_slice %427 {offsets = [0, 8], sizes = [16, 8], strides = [1, 1]} : vector<16x32xf32> to vector<16x8xf32>
    %cst_145 = arith.constant dense<0.000000e+00> : vector<8x16xf32>
    %451 = tpu.matmul %448, %449, %cst_145 {dimension_numbers = #tpu.dot_dimension_numbers<[1], [1], [0], [0], [0, 0, 1, 0], [], []>} : vector<8x8xf32>, vector<16x8xf32>, vector<8x16xf32> -> vector<8x16xf32>
    %cst_146 = arith.constant 0.353553385 : f32
    %452 = vector.broadcast %cst_146 : f32 to vector<8x16xf32>
    %453 = arith.mulf %451, %452 : vector<8x16xf32>
    %454 = vector.broadcast %429 : vector<1x16xf32> to vector<8x16xf32>
    %455 = arith.addf %453, %454 : vector<8x16xf32>
    %cst_147 = arith.constant dense<0xFF800000> : vector<8xf32>
    %456 = vector.multi_reduction <maximumf>, %455, %cst_147 [1] : vector<8x16xf32> to vector<8xf32>
    %457 = vector.shape_cast %456 : vector<8xf32> to vector<8x1xf32>
    %458 = vector.broadcast %457 : vector<8x1xf32> to vector<8x16xf32>
    %459 = arith.subf %455, %458 : vector<8x16xf32>
    %460 = math.exp %459 : vector<8x16xf32>
    %cst_148 = arith.constant dense<0.000000e+00> : vector<8xf32>
    %461 = vector.multi_reduction <add>, %460, %cst_148 [1] : vector<8x16xf32> to vector<8xf32>
    %462 = vector.shape_cast %461 : vector<8xf32> to vector<8x1xf32>
    %463 = vector.broadcast %462 : vector<8x1xf32> to vector<8x16xf32>
    %464 = arith.divf %460, %463 : vector<8x16xf32>
    %cst_149 = arith.constant dense<0.000000e+00> : vector<8x8xf32>
    %465 = tpu.matmul %464, %450, %cst_149 {dimension_numbers = #tpu.dot_dimension_numbers<[1], [0], [0], [1], [0, 0, 1, 1], [], []>} : vector<8x16xf32>, vector<16x8xf32>, vector<8x8xf32> -> vector<8x8xf32>
    %466 = vector.extract_strided_slice %425 {offsets = [0, 16], sizes = [8, 8], strides = [1, 1]} : vector<8x32xf32> to vector<8x8xf32>
    %467 = vector.extract_strided_slice %426 {offsets = [0, 16], sizes = [16, 8], strides = [1, 1]} : vector<16x32xf32> to vector<16x8xf32>
    %468 = vector.extract_strided_slice %427 {offsets = [0, 16], sizes = [16, 8], strides = [1, 1]} : vector<16x32xf32> to vector<16x8xf32>
    %cst_150 = arith.constant dense<0.000000e+00> : vector<8x16xf32>
    %469 = tpu.matmul %466, %467, %cst_150 {dimension_numbers = #tpu.dot_dimension_numbers<[1], [1], [0], [0], [0, 0, 1, 0], [], []>} : vector<8x8xf32>, vector<16x8xf32>, vector<8x16xf32> -> vector<8x16xf32>
    %cst_151 = arith.constant 0.353553385 : f32
    %470 = vector.broadcast %cst_151 : f32 to vector<8x16xf32>
    %471 = arith.mulf %469, %470 : vector<8x16xf32>
    %472 = vector.broadcast %429 : vector<1x16xf32> to vector<8x16xf32>
    %473 = arith.addf %471, %472 : vector<8x16xf32>
    %cst_152 = arith.constant dense<0xFF800000> : vector<8xf32>
    %474 = vector.multi_reduction <maximumf>, %473, %cst_152 [1] : vector<8x16xf32> to vector<8xf32>
    %475 = vector.shape_cast %474 : vector<8xf32> to vector<8x1xf32>
    %476 = vector.broadcast %475 : vector<8x1xf32> to vector<8x16xf32>
    %477 = arith.subf %473, %476 : vector<8x16xf32>
    %478 = math.exp %477 : vector<8x16xf32>
    %cst_153 = arith.constant dense<0.000000e+00> : vector<8xf32>
    %479 = vector.multi_reduction <add>, %478, %cst_153 [1] : vector<8x16xf32> to vector<8xf32>
    %480 = vector.shape_cast %479 : vector<8xf32> to vector<8x1xf32>
    %481 = vector.broadcast %480 : vector<8x1xf32> to vector<8x16xf32>
    %482 = arith.divf %478, %481 : vector<8x16xf32>
    %cst_154 = arith.constant dense<0.000000e+00> : vector<8x8xf32>
    %483 = tpu.matmul %482, %468, %cst_154 {dimension_numbers = #tpu.dot_dimension_numbers<[1], [0], [0], [1], [0, 0, 1, 1], [], []>} : vector<8x16xf32>, vector<16x8xf32>, vector<8x8xf32> -> vector<8x8xf32>
    %484 = vector.extract_strided_slice %425 {offsets = [0, 24], sizes = [8, 8], strides = [1, 1]} : vector<8x32xf32> to vector<8x8xf32>
    %485 = vector.extract_strided_slice %426 {offsets = [0, 24], sizes = [16, 8], strides = [1, 1]} : vector<16x32xf32> to vector<16x8xf32>
    %486 = vector.extract_strided_slice %427 {offsets = [0, 24], sizes = [16, 8], strides = [1, 1]} : vector<16x32xf32> to vector<16x8xf32>
    %cst_155 = arith.constant dense<0.000000e+00> : vector<8x16xf32>
    %487 = tpu.matmul %484, %485, %cst_155 {dimension_numbers = #tpu.dot_dimension_numbers<[1], [1], [0], [0], [0, 0, 1, 0], [], []>} : vector<8x8xf32>, vector<16x8xf32>, vector<8x16xf32> -> vector<8x16xf32>
    %cst_156 = arith.constant 0.353553385 : f32
    %488 = vector.broadcast %cst_156 : f32 to vector<8x16xf32>
    %489 = arith.mulf %487, %488 : vector<8x16xf32>
    %490 = vector.broadcast %429 : vector<1x16xf32> to vector<8x16xf32>
    %491 = arith.addf %489, %490 : vector<8x16xf32>
    %cst_157 = arith.constant dense<0xFF800000> : vector<8xf32>
    %492 = vector.multi_reduction <maximumf>, %491, %cst_157 [1] : vector<8x16xf32> to vector<8xf32>
    %493 = vector.shape_cast %492 : vector<8xf32> to vector<8x1xf32>
    %494 = vector.broadcast %493 : vector<8x1xf32> to vector<8x16xf32>
    %495 = arith.subf %491, %494 : vector<8x16xf32>
    %496 = math.exp %495 : vector<8x16xf32>
    %cst_158 = arith.constant dense<0.000000e+00> : vector<8xf32>
    %497 = vector.multi_reduction <add>, %496, %cst_158 [1] : vector<8x16xf32> to vector<8xf32>
    %498 = vector.shape_cast %497 : vector<8xf32> to vector<8x1xf32>
    %499 = vector.broadcast %498 : vector<8x1xf32> to vector<8x16xf32>
    %500 = arith.divf %496, %499 : vector<8x16xf32>
    %cst_159 = arith.constant dense<0.000000e+00> : vector<8x8xf32>
    %501 = tpu.matmul %500, %486, %cst_159 {dimension_numbers = #tpu.dot_dimension_numbers<[1], [0], [0], [1], [0, 0, 1, 1], [], []>} : vector<8x16xf32>, vector<16x8xf32>, vector<8x8xf32> -> vector<8x8xf32>
    %502 = tpu.concatenate %447, %465, %483, %501 in 1 : vector<8x8xf32>, vector<8x8xf32>, vector<8x8xf32>, vector<8x8xf32> -> vector<8x32xf32>
    %503 = vector.extract_strided_slice %418 {offsets = [16, 0], sizes = [16, 96], strides = [1, 1]} : vector<32x96xf32> to vector<16x96xf32>
    %504 = vector.extract_strided_slice %423 {offsets = [8, 0], sizes = [8, 32], strides = [1, 1]} : vector<16x32xf32> to vector<8x32xf32>
    %505 = vector.extract_strided_slice %503 {offsets = [0, 0], sizes = [16, 32], strides = [1, 1]} : vector<16x96xf32> to vector<16x32xf32>
    %506 = vector.extract_strided_slice %503 {offsets = [0, 32], sizes = [16, 32], strides = [1, 1]} : vector<16x96xf32> to vector<16x32xf32>
    %c1_160 = arith.constant 1 : index
    %c0_161 = arith.constant 0 : index
    %c0_162 = arith.constant 0 : index
    %507 = vector.load %arg2[%c1_160, %c0_161, %c0_162] : memref<2x1x16xf32, #tpu.memory_space<vmem>>, vector<1x1x16xf32>
    %508 = vector.shape_cast %507 : vector<1x1x16xf32> to vector<1x16xf32>
    %509 = vector.extract_strided_slice %504 {offsets = [0, 0], sizes = [8, 8], strides = [1, 1]} : vector<8x32xf32> to vector<8x8xf32>
    %510 = vector.extract_strided_slice %505 {offsets = [0, 0], sizes = [16, 8], strides = [1, 1]} : vector<16x32xf32> to vector<16x8xf32>
    %511 = vector.extract_strided_slice %506 {offsets = [0, 0], sizes = [16, 8], strides = [1, 1]} : vector<16x32xf32> to vector<16x8xf32>
    %cst_163 = arith.constant dense<0.000000e+00> : vector<8x16xf32>
    %512 = tpu.matmul %509, %510, %cst_163 {dimension_numbers = #tpu.dot_dimension_numbers<[1], [1], [0], [0], [0, 0, 1, 0], [], []>} : vector<8x8xf32>, vector<16x8xf32>, vector<8x16xf32> -> vector<8x16xf32>
    %cst_164 = arith.constant 0.353553385 : f32
    %513 = vector.broadcast %cst_164 : f32 to vector<8x16xf32>
    %514 = arith.mulf %512, %513 : vector<8x16xf32>
    %515 = vector.broadcast %508 : vector<1x16xf32> to vector<8x16xf32>
    %516 = arith.addf %514, %515 : vector<8x16xf32>
    %cst_165 = arith.constant dense<0xFF800000> : vector<8xf32>
    %517 = vector.multi_reduction <maximumf>, %516, %cst_165 [1] : vector<8x16xf32> to vector<8xf32>
    %518 = vector.shape_cast %517 : vector<8xf32> to vector<8x1xf32>
    %519 = vector.broadcast %518 : vector<8x1xf32> to vector<8x16xf32>
    %520 = arith.subf %516, %519 : vector<8x16xf32>
    %521 = math.exp %520 : vector<8x16xf32>
    %cst_166 = arith.constant dense<0.000000e+00> : vector<8xf32>
    %522 = vector.multi_reduction <add>, %521, %cst_166 [1] : vector<8x16xf32> to vector<8xf32>
    %523 = vector.shape_cast %522 : vector<8xf32> to vector<8x1xf32>
    %524 = vector.broadcast %523 : vector<8x1xf32> to vector<8x16xf32>
    %525 = arith.divf %521, %524 : vector<8x16xf32>
    %cst_167 = arith.constant dense<0.000000e+00> : vector<8x8xf32>
    %526 = tpu.matmul %525, %511, %cst_167 {dimension_numbers = #tpu.dot_dimension_numbers<[1], [0], [0], [1], [0, 0, 1, 1], [], []>} : vector<8x16xf32>, vector<16x8xf32>, vector<8x8xf32> -> vector<8x8xf32>
    %527 = vector.extract_strided_slice %504 {offsets = [0, 8], sizes = [8, 8], strides = [1, 1]} : vector<8x32xf32> to vector<8x8xf32>
    %528 = vector.extract_strided_slice %505 {offsets = [0, 8], sizes = [16, 8], strides = [1, 1]} : vector<16x32xf32> to vector<16x8xf32>
    %529 = vector.extract_strided_slice %506 {offsets = [0, 8], sizes = [16, 8], strides = [1, 1]} : vector<16x32xf32> to vector<16x8xf32>
    %cst_168 = arith.constant dense<0.000000e+00> : vector<8x16xf32>
    %530 = tpu.matmul %527, %528, %cst_168 {dimension_numbers = #tpu.dot_dimension_numbers<[1], [1], [0], [0], [0, 0, 1, 0], [], []>} : vector<8x8xf32>, vector<16x8xf32>, vector<8x16xf32> -> vector<8x16xf32>
    %cst_169 = arith.constant 0.353553385 : f32
    %531 = vector.broadcast %cst_169 : f32 to vector<8x16xf32>
    %532 = arith.mulf %530, %531 : vector<8x16xf32>
    %533 = vector.broadcast %508 : vector<1x16xf32> to vector<8x16xf32>
    %534 = arith.addf %532, %533 : vector<8x16xf32>
    %cst_170 = arith.constant dense<0xFF800000> : vector<8xf32>
    %535 = vector.multi_reduction <maximumf>, %534, %cst_170 [1] : vector<8x16xf32> to vector<8xf32>
    %536 = vector.shape_cast %535 : vector<8xf32> to vector<8x1xf32>
    %537 = vector.broadcast %536 : vector<8x1xf32> to vector<8x16xf32>
    %538 = arith.subf %534, %537 : vector<8x16xf32>
    %539 = math.exp %538 : vector<8x16xf32>
    %cst_171 = arith.constant dense<0.000000e+00> : vector<8xf32>
    %540 = vector.multi_reduction <add>, %539, %cst_171 [1] : vector<8x16xf32> to vector<8xf32>
    %541 = vector.shape_cast %540 : vector<8xf32> to vector<8x1xf32>
    %542 = vector.broadcast %541 : vector<8x1xf32> to vector<8x16xf32>
    %543 = arith.divf %539, %542 : vector<8x16xf32>
    %cst_172 = arith.constant dense<0.000000e+00> : vector<8x8xf32>
    %544 = tpu.matmul %543, %529, %cst_172 {dimension_numbers = #tpu.dot_dimension_numbers<[1], [0], [0], [1], [0, 0, 1, 1], [], []>} : vector<8x16xf32>, vector<16x8xf32>, vector<8x8xf32> -> vector<8x8xf32>
    %545 = vector.extract_strided_slice %504 {offsets = [0, 16], sizes = [8, 8], strides = [1, 1]} : vector<8x32xf32> to vector<8x8xf32>
    %546 = vector.extract_strided_slice %505 {offsets = [0, 16], sizes = [16, 8], strides = [1, 1]} : vector<16x32xf32> to vector<16x8xf32>
    %547 = vector.extract_strided_slice %506 {offsets = [0, 16], sizes = [16, 8], strides = [1, 1]} : vector<16x32xf32> to vector<16x8xf32>
    %cst_173 = arith.constant dense<0.000000e+00> : vector<8x16xf32>
    %548 = tpu.matmul %545, %546, %cst_173 {dimension_numbers = #tpu.dot_dimension_numbers<[1], [1], [0], [0], [0, 0, 1, 0], [], []>} : vector<8x8xf32>, vector<16x8xf32>, vector<8x16xf32> -> vector<8x16xf32>
    %cst_174 = arith.constant 0.353553385 : f32
    %549 = vector.broadcast %cst_174 : f32 to vector<8x16xf32>
    %550 = arith.mulf %548, %549 : vector<8x16xf32>
    %551 = vector.broadcast %508 : vector<1x16xf32> to vector<8x16xf32>
    %552 = arith.addf %550, %551 : vector<8x16xf32>
    %cst_175 = arith.constant dense<0xFF800000> : vector<8xf32>
    %553 = vector.multi_reduction <maximumf>, %552, %cst_175 [1] : vector<8x16xf32> to vector<8xf32>
    %554 = vector.shape_cast %553 : vector<8xf32> to vector<8x1xf32>
    %555 = vector.broadcast %554 : vector<8x1xf32> to vector<8x16xf32>
    %556 = arith.subf %552, %555 : vector<8x16xf32>
    %557 = math.exp %556 : vector<8x16xf32>
    %cst_176 = arith.constant dense<0.000000e+00> : vector<8xf32>
    %558 = vector.multi_reduction <add>, %557, %cst_176 [1] : vector<8x16xf32> to vector<8xf32>
    %559 = vector.shape_cast %558 : vector<8xf32> to vector<8x1xf32>
    %560 = vector.broadcast %559 : vector<8x1xf32> to vector<8x16xf32>
    %561 = arith.divf %557, %560 : vector<8x16xf32>
    %cst_177 = arith.constant dense<0.000000e+00> : vector<8x8xf32>
    %562 = tpu.matmul %561, %547, %cst_177 {dimension_numbers = #tpu.dot_dimension_numbers<[1], [0], [0], [1], [0, 0, 1, 1], [], []>} : vector<8x16xf32>, vector<16x8xf32>, vector<8x8xf32> -> vector<8x8xf32>
    %563 = vector.extract_strided_slice %504 {offsets = [0, 24], sizes = [8, 8], strides = [1, 1]} : vector<8x32xf32> to vector<8x8xf32>
    %564 = vector.extract_strided_slice %505 {offsets = [0, 24], sizes = [16, 8], strides = [1, 1]} : vector<16x32xf32> to vector<16x8xf32>
    %565 = vector.extract_strided_slice %506 {offsets = [0, 24], sizes = [16, 8], strides = [1, 1]} : vector<16x32xf32> to vector<16x8xf32>
    %cst_178 = arith.constant dense<0.000000e+00> : vector<8x16xf32>
    %566 = tpu.matmul %563, %564, %cst_178 {dimension_numbers = #tpu.dot_dimension_numbers<[1], [1], [0], [0], [0, 0, 1, 0], [], []>} : vector<8x8xf32>, vector<16x8xf32>, vector<8x16xf32> -> vector<8x16xf32>
    %cst_179 = arith.constant 0.353553385 : f32
    %567 = vector.broadcast %cst_179 : f32 to vector<8x16xf32>
    %568 = arith.mulf %566, %567 : vector<8x16xf32>
    %569 = vector.broadcast %508 : vector<1x16xf32> to vector<8x16xf32>
    %570 = arith.addf %568, %569 : vector<8x16xf32>
    %cst_180 = arith.constant dense<0xFF800000> : vector<8xf32>
    %571 = vector.multi_reduction <maximumf>, %570, %cst_180 [1] : vector<8x16xf32> to vector<8xf32>
    %572 = vector.shape_cast %571 : vector<8xf32> to vector<8x1xf32>
    %573 = vector.broadcast %572 : vector<8x1xf32> to vector<8x16xf32>
    %574 = arith.subf %570, %573 : vector<8x16xf32>
    %575 = math.exp %574 : vector<8x16xf32>
    %cst_181 = arith.constant dense<0.000000e+00> : vector<8xf32>
    %576 = vector.multi_reduction <add>, %575, %cst_181 [1] : vector<8x16xf32> to vector<8xf32>
    %577 = vector.shape_cast %576 : vector<8xf32> to vector<8x1xf32>
    %578 = vector.broadcast %577 : vector<8x1xf32> to vector<8x16xf32>
    %579 = arith.divf %575, %578 : vector<8x16xf32>
    %cst_182 = arith.constant dense<0.000000e+00> : vector<8x8xf32>
    %580 = tpu.matmul %579, %565, %cst_182 {dimension_numbers = #tpu.dot_dimension_numbers<[1], [0], [0], [1], [0, 0, 1, 1], [], []>} : vector<8x16xf32>, vector<16x8xf32>, vector<8x8xf32> -> vector<8x8xf32>
    %581 = tpu.concatenate %526, %544, %562, %580 in 1 : vector<8x8xf32>, vector<8x8xf32>, vector<8x8xf32>, vector<8x8xf32> -> vector<8x32xf32>
    %582 = tpu.concatenate %502, %581 in 0 : vector<8x32xf32>, vector<8x32xf32> -> vector<16x32xf32>
    %c1_183 = arith.constant 1 : index
    %c0_184 = arith.constant 0 : index
    %c0_185 = arith.constant 0 : index
    %583 = vector.load %arg5[%c1_183, %c0_184, %c0_185] : memref<2x32x64xf32, #tpu.memory_space<vmem>>, vector<1x32x64xf32>
    %584 = vector.shape_cast %583 : vector<1x32x64xf32> to vector<32x64xf32>
    %cst_186 = arith.constant dense<0.000000e+00> : vector<16x64xf32>
    %585 = tpu.matmul %582, %584, %cst_186 {dimension_numbers = #tpu.dot_dimension_numbers<[1], [0], [0], [1], [0, 0, 1, 1], [], []>} : vector<16x32xf32>, vector<32x64xf32>, vector<16x64xf32> -> vector<16x64xf32>
    %586 = vector.broadcast %407 : vector<1x64xf32> to vector<16x64xf32>
    %587 = arith.addf %585, %586 : vector<16x64xf32>
    %588 = vector.extract_strided_slice %587 {offsets = [0, 0], sizes = [8, 64], strides = [1, 1]} : vector<16x64xf32> to vector<8x64xf32>
    %589 = vector.extract_strided_slice %418 {offsets = [0, 64], sizes = [16, 32], strides = [1, 1]} : vector<32x96xf32> to vector<16x32xf32>
    %590 = vector.extract_strided_slice %588 {offsets = [0, 0], sizes = [8, 32], strides = [1, 1]} : vector<8x64xf32> to vector<8x32xf32>
    %591 = vector.extract_strided_slice %588 {offsets = [0, 32], sizes = [8, 32], strides = [1, 1]} : vector<8x64xf32> to vector<8x32xf32>
    %592 = vector.extract_strided_slice %589 {offsets = [0, 0], sizes = [16, 8], strides = [1, 1]} : vector<16x32xf32> to vector<16x8xf32>
    %593 = vector.extract_strided_slice %590 {offsets = [0, 0], sizes = [8, 8], strides = [1, 1]} : vector<8x32xf32> to vector<8x8xf32>
    %594 = vector.extract_strided_slice %591 {offsets = [0, 0], sizes = [8, 8], strides = [1, 1]} : vector<8x32xf32> to vector<8x8xf32>
    %cst_187 = arith.constant dense<0.000000e+00> : vector<16x8xf32>
    %595 = tpu.matmul %592, %593, %cst_187 {dimension_numbers = #tpu.dot_dimension_numbers<[1], [1], [0], [0], [0, 0, 1, 0], [], []>} : vector<16x8xf32>, vector<8x8xf32>, vector<16x8xf32> -> vector<16x8xf32>
    %cst_188 = arith.constant 0.353553385 : f32
    %596 = vector.broadcast %cst_188 : f32 to vector<16x8xf32>
    %597 = arith.mulf %595, %596 : vector<16x8xf32>
    %cst_189 = arith.constant dense<0xFF800000> : vector<16xf32>
    %598 = vector.multi_reduction <maximumf>, %597, %cst_189 [1] : vector<16x8xf32> to vector<16xf32>
    %599 = vector.shape_cast %598 : vector<16xf32> to vector<16x1xf32>
    %600 = vector.broadcast %599 : vector<16x1xf32> to vector<16x8xf32>
    %601 = arith.subf %597, %600 : vector<16x8xf32>
    %602 = math.exp %601 : vector<16x8xf32>
    %cst_190 = arith.constant dense<0.000000e+00> : vector<16xf32>
    %603 = vector.multi_reduction <add>, %602, %cst_190 [1] : vector<16x8xf32> to vector<16xf32>
    %604 = vector.shape_cast %603 : vector<16xf32> to vector<16x1xf32>
    %605 = vector.broadcast %604 : vector<16x1xf32> to vector<16x8xf32>
    %606 = arith.divf %602, %605 : vector<16x8xf32>
    %cst_191 = arith.constant dense<0.000000e+00> : vector<16x8xf32>
    %607 = tpu.matmul %606, %594, %cst_191 {dimension_numbers = #tpu.dot_dimension_numbers<[1], [0], [0], [1], [0, 0, 1, 1], [], []>} : vector<16x8xf32>, vector<8x8xf32>, vector<16x8xf32> -> vector<16x8xf32>
    %608 = vector.extract_strided_slice %589 {offsets = [0, 8], sizes = [16, 8], strides = [1, 1]} : vector<16x32xf32> to vector<16x8xf32>
    %609 = vector.extract_strided_slice %590 {offsets = [0, 8], sizes = [8, 8], strides = [1, 1]} : vector<8x32xf32> to vector<8x8xf32>
    %610 = vector.extract_strided_slice %591 {offsets = [0, 8], sizes = [8, 8], strides = [1, 1]} : vector<8x32xf32> to vector<8x8xf32>
    %cst_192 = arith.constant dense<0.000000e+00> : vector<16x8xf32>
    %611 = tpu.matmul %608, %609, %cst_192 {dimension_numbers = #tpu.dot_dimension_numbers<[1], [1], [0], [0], [0, 0, 1, 0], [], []>} : vector<16x8xf32>, vector<8x8xf32>, vector<16x8xf32> -> vector<16x8xf32>
    %cst_193 = arith.constant 0.353553385 : f32
    %612 = vector.broadcast %cst_193 : f32 to vector<16x8xf32>
    %613 = arith.mulf %611, %612 : vector<16x8xf32>
    %cst_194 = arith.constant dense<0xFF800000> : vector<16xf32>
    %614 = vector.multi_reduction <maximumf>, %613, %cst_194 [1] : vector<16x8xf32> to vector<16xf32>
    %615 = vector.shape_cast %614 : vector<16xf32> to vector<16x1xf32>
    %616 = vector.broadcast %615 : vector<16x1xf32> to vector<16x8xf32>
    %617 = arith.subf %613, %616 : vector<16x8xf32>
    %618 = math.exp %617 : vector<16x8xf32>
    %cst_195 = arith.constant dense<0.000000e+00> : vector<16xf32>
    %619 = vector.multi_reduction <add>, %618, %cst_195 [1] : vector<16x8xf32> to vector<16xf32>
    %620 = vector.shape_cast %619 : vector<16xf32> to vector<16x1xf32>
    %621 = vector.broadcast %620 : vector<16x1xf32> to vector<16x8xf32>
    %622 = arith.divf %618, %621 : vector<16x8xf32>
    %cst_196 = arith.constant dense<0.000000e+00> : vector<16x8xf32>
    %623 = tpu.matmul %622, %610, %cst_196 {dimension_numbers = #tpu.dot_dimension_numbers<[1], [0], [0], [1], [0, 0, 1, 1], [], []>} : vector<16x8xf32>, vector<8x8xf32>, vector<16x8xf32> -> vector<16x8xf32>
    %624 = vector.extract_strided_slice %589 {offsets = [0, 16], sizes = [16, 8], strides = [1, 1]} : vector<16x32xf32> to vector<16x8xf32>
    %625 = vector.extract_strided_slice %590 {offsets = [0, 16], sizes = [8, 8], strides = [1, 1]} : vector<8x32xf32> to vector<8x8xf32>
    %626 = vector.extract_strided_slice %591 {offsets = [0, 16], sizes = [8, 8], strides = [1, 1]} : vector<8x32xf32> to vector<8x8xf32>
    %cst_197 = arith.constant dense<0.000000e+00> : vector<16x8xf32>
    %627 = tpu.matmul %624, %625, %cst_197 {dimension_numbers = #tpu.dot_dimension_numbers<[1], [1], [0], [0], [0, 0, 1, 0], [], []>} : vector<16x8xf32>, vector<8x8xf32>, vector<16x8xf32> -> vector<16x8xf32>
    %cst_198 = arith.constant 0.353553385 : f32
    %628 = vector.broadcast %cst_198 : f32 to vector<16x8xf32>
    %629 = arith.mulf %627, %628 : vector<16x8xf32>
    %cst_199 = arith.constant dense<0xFF800000> : vector<16xf32>
    %630 = vector.multi_reduction <maximumf>, %629, %cst_199 [1] : vector<16x8xf32> to vector<16xf32>
    %631 = vector.shape_cast %630 : vector<16xf32> to vector<16x1xf32>
    %632 = vector.broadcast %631 : vector<16x1xf32> to vector<16x8xf32>
    %633 = arith.subf %629, %632 : vector<16x8xf32>
    %634 = math.exp %633 : vector<16x8xf32>
    %cst_200 = arith.constant dense<0.000000e+00> : vector<16xf32>
    %635 = vector.multi_reduction <add>, %634, %cst_200 [1] : vector<16x8xf32> to vector<16xf32>
    %636 = vector.shape_cast %635 : vector<16xf32> to vector<16x1xf32>
    %637 = vector.broadcast %636 : vector<16x1xf32> to vector<16x8xf32>
    %638 = arith.divf %634, %637 : vector<16x8xf32>
    %cst_201 = arith.constant dense<0.000000e+00> : vector<16x8xf32>
    %639 = tpu.matmul %638, %626, %cst_201 {dimension_numbers = #tpu.dot_dimension_numbers<[1], [0], [0], [1], [0, 0, 1, 1], [], []>} : vector<16x8xf32>, vector<8x8xf32>, vector<16x8xf32> -> vector<16x8xf32>
    %640 = vector.extract_strided_slice %589 {offsets = [0, 24], sizes = [16, 8], strides = [1, 1]} : vector<16x32xf32> to vector<16x8xf32>
    %641 = vector.extract_strided_slice %590 {offsets = [0, 24], sizes = [8, 8], strides = [1, 1]} : vector<8x32xf32> to vector<8x8xf32>
    %642 = vector.extract_strided_slice %591 {offsets = [0, 24], sizes = [8, 8], strides = [1, 1]} : vector<8x32xf32> to vector<8x8xf32>
    %cst_202 = arith.constant dense<0.000000e+00> : vector<16x8xf32>
    %643 = tpu.matmul %640, %641, %cst_202 {dimension_numbers = #tpu.dot_dimension_numbers<[1], [1], [0], [0], [0, 0, 1, 0], [], []>} : vector<16x8xf32>, vector<8x8xf32>, vector<16x8xf32> -> vector<16x8xf32>
    %cst_203 = arith.constant 0.353553385 : f32
    %644 = vector.broadcast %cst_203 : f32 to vector<16x8xf32>
    %645 = arith.mulf %643, %644 : vector<16x8xf32>
    %cst_204 = arith.constant dense<0xFF800000> : vector<16xf32>
    %646 = vector.multi_reduction <maximumf>, %645, %cst_204 [1] : vector<16x8xf32> to vector<16xf32>
    %647 = vector.shape_cast %646 : vector<16xf32> to vector<16x1xf32>
    %648 = vector.broadcast %647 : vector<16x1xf32> to vector<16x8xf32>
    %649 = arith.subf %645, %648 : vector<16x8xf32>
    %650 = math.exp %649 : vector<16x8xf32>
    %cst_205 = arith.constant dense<0.000000e+00> : vector<16xf32>
    %651 = vector.multi_reduction <add>, %650, %cst_205 [1] : vector<16x8xf32> to vector<16xf32>
    %652 = vector.shape_cast %651 : vector<16xf32> to vector<16x1xf32>
    %653 = vector.broadcast %652 : vector<16x1xf32> to vector<16x8xf32>
    %654 = arith.divf %650, %653 : vector<16x8xf32>
    %cst_206 = arith.constant dense<0.000000e+00> : vector<16x8xf32>
    %655 = tpu.matmul %654, %642, %cst_206 {dimension_numbers = #tpu.dot_dimension_numbers<[1], [0], [0], [1], [0, 0, 1, 1], [], []>} : vector<16x8xf32>, vector<8x8xf32>, vector<16x8xf32> -> vector<16x8xf32>
    %656 = tpu.concatenate %607, %623, %639, %655 in 1 : vector<16x8xf32>, vector<16x8xf32>, vector<16x8xf32>, vector<16x8xf32> -> vector<16x32xf32>
    %657 = vector.extract_strided_slice %587 {offsets = [8, 0], sizes = [8, 64], strides = [1, 1]} : vector<16x64xf32> to vector<8x64xf32>
    %658 = vector.extract_strided_slice %418 {offsets = [16, 64], sizes = [16, 32], strides = [1, 1]} : vector<32x96xf32> to vector<16x32xf32>
    %659 = vector.extract_strided_slice %657 {offsets = [0, 0], sizes = [8, 32], strides = [1, 1]} : vector<8x64xf32> to vector<8x32xf32>
    %660 = vector.extract_strided_slice %657 {offsets = [0, 32], sizes = [8, 32], strides = [1, 1]} : vector<8x64xf32> to vector<8x32xf32>
    %661 = vector.extract_strided_slice %658 {offsets = [0, 0], sizes = [16, 8], strides = [1, 1]} : vector<16x32xf32> to vector<16x8xf32>
    %662 = vector.extract_strided_slice %659 {offsets = [0, 0], sizes = [8, 8], strides = [1, 1]} : vector<8x32xf32> to vector<8x8xf32>
    %663 = vector.extract_strided_slice %660 {offsets = [0, 0], sizes = [8, 8], strides = [1, 1]} : vector<8x32xf32> to vector<8x8xf32>
    %cst_207 = arith.constant dense<0.000000e+00> : vector<16x8xf32>
    %664 = tpu.matmul %661, %662, %cst_207 {dimension_numbers = #tpu.dot_dimension_numbers<[1], [1], [0], [0], [0, 0, 1, 0], [], []>} : vector<16x8xf32>, vector<8x8xf32>, vector<16x8xf32> -> vector<16x8xf32>
    %cst_208 = arith.constant 0.353553385 : f32
    %665 = vector.broadcast %cst_208 : f32 to vector<16x8xf32>
    %666 = arith.mulf %664, %665 : vector<16x8xf32>
    %cst_209 = arith.constant dense<0xFF800000> : vector<16xf32>
    %667 = vector.multi_reduction <maximumf>, %666, %cst_209 [1] : vector<16x8xf32> to vector<16xf32>
    %668 = vector.shape_cast %667 : vector<16xf32> to vector<16x1xf32>
    %669 = vector.broadcast %668 : vector<16x1xf32> to vector<16x8xf32>
    %670 = arith.subf %666, %669 : vector<16x8xf32>
    %671 = math.exp %670 : vector<16x8xf32>
    %cst_210 = arith.constant dense<0.000000e+00> : vector<16xf32>
    %672 = vector.multi_reduction <add>, %671, %cst_210 [1] : vector<16x8xf32> to vector<16xf32>
    %673 = vector.shape_cast %672 : vector<16xf32> to vector<16x1xf32>
    %674 = vector.broadcast %673 : vector<16x1xf32> to vector<16x8xf32>
    %675 = arith.divf %671, %674 : vector<16x8xf32>
    %cst_211 = arith.constant dense<0.000000e+00> : vector<16x8xf32>
    %676 = tpu.matmul %675, %663, %cst_211 {dimension_numbers = #tpu.dot_dimension_numbers<[1], [0], [0], [1], [0, 0, 1, 1], [], []>} : vector<16x8xf32>, vector<8x8xf32>, vector<16x8xf32> -> vector<16x8xf32>
    %677 = vector.extract_strided_slice %658 {offsets = [0, 8], sizes = [16, 8], strides = [1, 1]} : vector<16x32xf32> to vector<16x8xf32>
    %678 = vector.extract_strided_slice %659 {offsets = [0, 8], sizes = [8, 8], strides = [1, 1]} : vector<8x32xf32> to vector<8x8xf32>
    %679 = vector.extract_strided_slice %660 {offsets = [0, 8], sizes = [8, 8], strides = [1, 1]} : vector<8x32xf32> to vector<8x8xf32>
    %cst_212 = arith.constant dense<0.000000e+00> : vector<16x8xf32>
    %680 = tpu.matmul %677, %678, %cst_212 {dimension_numbers = #tpu.dot_dimension_numbers<[1], [1], [0], [0], [0, 0, 1, 0], [], []>} : vector<16x8xf32>, vector<8x8xf32>, vector<16x8xf32> -> vector<16x8xf32>
    %cst_213 = arith.constant 0.353553385 : f32
    %681 = vector.broadcast %cst_213 : f32 to vector<16x8xf32>
    %682 = arith.mulf %680, %681 : vector<16x8xf32>
    %cst_214 = arith.constant dense<0xFF800000> : vector<16xf32>
    %683 = vector.multi_reduction <maximumf>, %682, %cst_214 [1] : vector<16x8xf32> to vector<16xf32>
    %684 = vector.shape_cast %683 : vector<16xf32> to vector<16x1xf32>
    %685 = vector.broadcast %684 : vector<16x1xf32> to vector<16x8xf32>
    %686 = arith.subf %682, %685 : vector<16x8xf32>
    %687 = math.exp %686 : vector<16x8xf32>
    %cst_215 = arith.constant dense<0.000000e+00> : vector<16xf32>
    %688 = vector.multi_reduction <add>, %687, %cst_215 [1] : vector<16x8xf32> to vector<16xf32>
    %689 = vector.shape_cast %688 : vector<16xf32> to vector<16x1xf32>
    %690 = vector.broadcast %689 : vector<16x1xf32> to vector<16x8xf32>
    %691 = arith.divf %687, %690 : vector<16x8xf32>
    %cst_216 = arith.constant dense<0.000000e+00> : vector<16x8xf32>
    %692 = tpu.matmul %691, %679, %cst_216 {dimension_numbers = #tpu.dot_dimension_numbers<[1], [0], [0], [1], [0, 0, 1, 1], [], []>} : vector<16x8xf32>, vector<8x8xf32>, vector<16x8xf32> -> vector<16x8xf32>
    %693 = vector.extract_strided_slice %658 {offsets = [0, 16], sizes = [16, 8], strides = [1, 1]} : vector<16x32xf32> to vector<16x8xf32>
    %694 = vector.extract_strided_slice %659 {offsets = [0, 16], sizes = [8, 8], strides = [1, 1]} : vector<8x32xf32> to vector<8x8xf32>
    %695 = vector.extract_strided_slice %660 {offsets = [0, 16], sizes = [8, 8], strides = [1, 1]} : vector<8x32xf32> to vector<8x8xf32>
    %cst_217 = arith.constant dense<0.000000e+00> : vector<16x8xf32>
    %696 = tpu.matmul %693, %694, %cst_217 {dimension_numbers = #tpu.dot_dimension_numbers<[1], [1], [0], [0], [0, 0, 1, 0], [], []>} : vector<16x8xf32>, vector<8x8xf32>, vector<16x8xf32> -> vector<16x8xf32>
    %cst_218 = arith.constant 0.353553385 : f32
    %697 = vector.broadcast %cst_218 : f32 to vector<16x8xf32>
    %698 = arith.mulf %696, %697 : vector<16x8xf32>
    %cst_219 = arith.constant dense<0xFF800000> : vector<16xf32>
    %699 = vector.multi_reduction <maximumf>, %698, %cst_219 [1] : vector<16x8xf32> to vector<16xf32>
    %700 = vector.shape_cast %699 : vector<16xf32> to vector<16x1xf32>
    %701 = vector.broadcast %700 : vector<16x1xf32> to vector<16x8xf32>
    %702 = arith.subf %698, %701 : vector<16x8xf32>
    %703 = math.exp %702 : vector<16x8xf32>
    %cst_220 = arith.constant dense<0.000000e+00> : vector<16xf32>
    %704 = vector.multi_reduction <add>, %703, %cst_220 [1] : vector<16x8xf32> to vector<16xf32>
    %705 = vector.shape_cast %704 : vector<16xf32> to vector<16x1xf32>
    %706 = vector.broadcast %705 : vector<16x1xf32> to vector<16x8xf32>
    %707 = arith.divf %703, %706 : vector<16x8xf32>
    %cst_221 = arith.constant dense<0.000000e+00> : vector<16x8xf32>
    %708 = tpu.matmul %707, %695, %cst_221 {dimension_numbers = #tpu.dot_dimension_numbers<[1], [0], [0], [1], [0, 0, 1, 1], [], []>} : vector<16x8xf32>, vector<8x8xf32>, vector<16x8xf32> -> vector<16x8xf32>
    %709 = vector.extract_strided_slice %658 {offsets = [0, 24], sizes = [16, 8], strides = [1, 1]} : vector<16x32xf32> to vector<16x8xf32>
    %710 = vector.extract_strided_slice %659 {offsets = [0, 24], sizes = [8, 8], strides = [1, 1]} : vector<8x32xf32> to vector<8x8xf32>
    %711 = vector.extract_strided_slice %660 {offsets = [0, 24], sizes = [8, 8], strides = [1, 1]} : vector<8x32xf32> to vector<8x8xf32>
    %cst_222 = arith.constant dense<0.000000e+00> : vector<16x8xf32>
    %712 = tpu.matmul %709, %710, %cst_222 {dimension_numbers = #tpu.dot_dimension_numbers<[1], [1], [0], [0], [0, 0, 1, 0], [], []>} : vector<16x8xf32>, vector<8x8xf32>, vector<16x8xf32> -> vector<16x8xf32>
    %cst_223 = arith.constant 0.353553385 : f32
    %713 = vector.broadcast %cst_223 : f32 to vector<16x8xf32>
    %714 = arith.mulf %712, %713 : vector<16x8xf32>
    %cst_224 = arith.constant dense<0xFF800000> : vector<16xf32>
    %715 = vector.multi_reduction <maximumf>, %714, %cst_224 [1] : vector<16x8xf32> to vector<16xf32>
    %716 = vector.shape_cast %715 : vector<16xf32> to vector<16x1xf32>
    %717 = vector.broadcast %716 : vector<16x1xf32> to vector<16x8xf32>
    %718 = arith.subf %714, %717 : vector<16x8xf32>
    %719 = math.exp %718 : vector<16x8xf32>
    %cst_225 = arith.constant dense<0.000000e+00> : vector<16xf32>
    %720 = vector.multi_reduction <add>, %719, %cst_225 [1] : vector<16x8xf32> to vector<16xf32>
    %721 = vector.shape_cast %720 : vector<16xf32> to vector<16x1xf32>
    %722 = vector.broadcast %721 : vector<16x1xf32> to vector<16x8xf32>
    %723 = arith.divf %719, %722 : vector<16x8xf32>
    %cst_226 = arith.constant dense<0.000000e+00> : vector<16x8xf32>
    %724 = tpu.matmul %723, %711, %cst_226 {dimension_numbers = #tpu.dot_dimension_numbers<[1], [0], [0], [1], [0, 0, 1, 1], [], []>} : vector<16x8xf32>, vector<8x8xf32>, vector<16x8xf32> -> vector<16x8xf32>
    %725 = tpu.concatenate %676, %692, %708, %724 in 1 : vector<16x8xf32>, vector<16x8xf32>, vector<16x8xf32>, vector<16x8xf32> -> vector<16x32xf32>
    %726 = tpu.concatenate %656, %725 in 0 : vector<16x32xf32>, vector<16x32xf32> -> vector<32x32xf32>
    %727 = arith.addf %726, %402 : vector<32x32xf32>
    %cst_227 = arith.constant dense<0.000000e+00> : vector<32xf32>
    %728 = vector.multi_reduction <add>, %727, %cst_227 [1] : vector<32x32xf32> to vector<32xf32>
    %729 = vector.shape_cast %728 : vector<32xf32> to vector<32x1xf32>
    %cst_228 = arith.constant 3.200000e+01 : f32
    %730 = vector.broadcast %cst_228 : f32 to vector<32x1xf32>
    %731 = arith.divf %729, %730 : vector<32x1xf32>
    %732 = vector.broadcast %731 : vector<32x1xf32> to vector<32x32xf32>
    %733 = arith.subf %727, %732 : vector<32x32xf32>
    %734 = arith.mulf %733, %733 : vector<32x32xf32>
    %cst_229 = arith.constant dense<0.000000e+00> : vector<32xf32>
    %735 = vector.multi_reduction <add>, %734, %cst_229 [1] : vector<32x32xf32> to vector<32xf32>
    %736 = vector.shape_cast %735 : vector<32xf32> to vector<32x1xf32>
    %cst_230 = arith.constant 3.200000e+01 : f32
    %737 = vector.broadcast %cst_230 : f32 to vector<32x1xf32>
    %738 = arith.divf %736, %737 : vector<32x1xf32>
    %cst_231 = arith.constant 9.99999974E-6 : f32
    %739 = vector.broadcast %cst_231 : f32 to vector<32x1xf32>
    %740 = arith.addf %738, %739 : vector<32x1xf32>
    %741 = math.rsqrt %740 : vector<32x1xf32>
    %742 = vector.broadcast %741 : vector<32x1xf32> to vector<32x32xf32>
    %743 = arith.mulf %733, %742 : vector<32x32xf32>
    %744 = vector.broadcast %410 : vector<1x32xf32> to vector<32x32xf32>
    %745 = arith.mulf %743, %744 : vector<32x32xf32>
    %746 = vector.broadcast %411 : vector<1x32xf32> to vector<32x32xf32>
    %747 = arith.addf %745, %746 : vector<32x32xf32>
    %c1_232 = arith.constant 1 : index
    %c0_233 = arith.constant 0 : index
    %c0_234 = arith.constant 0 : index
    %748 = vector.load %arg6[%c1_232, %c0_233, %c0_234] : memref<2x32x64xf32, #tpu.memory_space<vmem>>, vector<1x32x64xf32>
    %749 = vector.shape_cast %748 : vector<1x32x64xf32> to vector<32x64xf32>
    %cst_235 = arith.constant dense<0.000000e+00> : vector<32x64xf32>
    %750 = tpu.matmul %747, %749, %cst_235 {dimension_numbers = #tpu.dot_dimension_numbers<[1], [0], [0], [1], [0, 0, 1, 1], [], []>} : vector<32x32xf32>, vector<32x64xf32>, vector<32x64xf32> -> vector<32x64xf32>
    %751 = vector.broadcast %408 : vector<1x64xf32> to vector<32x64xf32>
    %752 = arith.addf %750, %751 : vector<32x64xf32>
    %cst_236 = arith.constant 0.000000e+00 : f32
    %753 = vector.broadcast %cst_236 : f32 to vector<32x64xf32>
    %754 = arith.maximumf %752, %753 : vector<32x64xf32>
    %c1_237 = arith.constant 1 : index
    %c0_238 = arith.constant 0 : index
    %c0_239 = arith.constant 0 : index
    %755 = vector.load %arg7[%c1_237, %c0_238, %c0_239] : memref<2x64x32xf32, #tpu.memory_space<vmem>>, vector<1x64x32xf32>
    %756 = vector.shape_cast %755 : vector<1x64x32xf32> to vector<64x32xf32>
    %cst_240 = arith.constant dense<0.000000e+00> : vector<32x32xf32>
    %757 = tpu.matmul %754, %756, %cst_240 {dimension_numbers = #tpu.dot_dimension_numbers<[1], [0], [0], [1], [0, 0, 1, 1], [], []>} : vector<32x64xf32>, vector<64x32xf32>, vector<32x32xf32> -> vector<32x32xf32>
    %758 = vector.broadcast %409 : vector<1x32xf32> to vector<32x32xf32>
    %759 = arith.addf %757, %758 : vector<32x32xf32>
    %760 = arith.addf %759, %747 : vector<32x32xf32>
    %cst_241 = arith.constant dense<0.000000e+00> : vector<32xf32>
    %761 = vector.multi_reduction <add>, %760, %cst_241 [1] : vector<32x32xf32> to vector<32xf32>
    %762 = vector.shape_cast %761 : vector<32xf32> to vector<32x1xf32>
    %cst_242 = arith.constant 3.200000e+01 : f32
    %763 = vector.broadcast %cst_242 : f32 to vector<32x1xf32>
    %764 = arith.divf %762, %763 : vector<32x1xf32>
    %765 = vector.broadcast %764 : vector<32x1xf32> to vector<32x32xf32>
    %766 = arith.subf %760, %765 : vector<32x32xf32>
    %767 = arith.mulf %766, %766 : vector<32x32xf32>
    %cst_243 = arith.constant dense<0.000000e+00> : vector<32xf32>
    %768 = vector.multi_reduction <add>, %767, %cst_243 [1] : vector<32x32xf32> to vector<32xf32>
    %769 = vector.shape_cast %768 : vector<32xf32> to vector<32x1xf32>
    %cst_244 = arith.constant 3.200000e+01 : f32
    %770 = vector.broadcast %cst_244 : f32 to vector<32x1xf32>
    %771 = arith.divf %769, %770 : vector<32x1xf32>
    %cst_245 = arith.constant 9.99999974E-6 : f32
    %772 = vector.broadcast %cst_245 : f32 to vector<32x1xf32>
    %773 = arith.addf %771, %772 : vector<32x1xf32>
    %774 = math.rsqrt %773 : vector<32x1xf32>
    %775 = vector.broadcast %774 : vector<32x1xf32> to vector<32x32xf32>
    %776 = arith.mulf %766, %775 : vector<32x32xf32>
    %777 = vector.broadcast %412 : vector<1x32xf32> to vector<32x32xf32>
    %778 = arith.mulf %776, %777 : vector<32x32xf32>
    %779 = vector.broadcast %413 : vector<1x32xf32> to vector<32x32xf32>
    %780 = arith.addf %778, %779 : vector<32x32xf32>
    %c0_246 = arith.constant 0 : index
    %c0_247 = arith.constant 0 : index
    %781 = vector.load %arg9[%c0_246, %c0_247] : memref<32x32xf32, #tpu.memory_space<vmem>>, vector<32x32xf32>
    tpu.vector_store %arg9[%c0_246, %c0_247], %780 {strides = array<i32>} : memref<32x32xf32, #tpu.memory_space<vmem>>, vector<32x32xf32>,
    return
  }
}

</mosaic_0001>

<bundles_post_ra>
// kernel: luna_forward.1
= control target key start
LH: loop header
LB: loop body
LE: loop exit
PB: predicated region body
PF: predicated region fallthrough
CT: control target
= control target key end

     0   :  { %vm46_vm0 = vcmask 261120   ;;  %s6584_s0 = inlined_call_operand.vmem [shape: f32[32,32], index: 0, kind: input, shape index: {}]   ;;  %s6585_s1 = inlined_call_operand.vmem [shape: f32[16,32], index: 1, kind: input, shape index: {}]   ;;  %s6586_s2 = inlined_call_operand.vmem [shape: f32[2,1,16], index: 2, kind: input, shape index: {}]   ;;  %s6587_s3 = inlined_call_operand.vmem [shape: f32[2,32,96], index: 3, kind: input, shape index: {}]   ;;  %s6588_s4 = inlined_call_operand.vmem [shape: f32[2,32,32], index: 4, kind: input, shape index: {}]   ;;  %s6589_s5 = inlined_call_operand.vmem [shape: f32[2,32,64], index: 5, kind: input, shape index: {}]   ;;  %s6590_s6 = inlined_call_operand.vmem [shape: f32[2,32,64], index: 6, kind: input, shape index: {}]   ;;  %s6591_s7 = inlined_call_operand.vmem [shape: f32[2,64,32], index: 7, kind: input, shape index: {}]   ;;  %s6592_s8 = inlined_call_operand.vmem [shape: f32[2,16,128], index: 8, kind: input, shape index: {}]   ;;  %s6593_s9 = inlined_call_operand.hbm [shape: f32[32,32], index: 9, kind: output, shape index: {}]  }
   0x1   :  { %v44_v0 = vld [vmem:[%s6587_s3 + $0x18] sm:$0xff]  ;;  %v43_v1 = vld [vmem:[%s6587_s3 + $0x10] sm:$0xff]  ;;  %v42_v3 = vld [vmem:[%s6587_s3 + $0x8] sm:$0xff] }
   0x2   :  { %71 = vmatpush.msra.mxu0 %v44_v0  ;;  %v91_v2 = vld [vmem:[%s6588_s4 + $0x18] sm:$0xff]  ;;  %v90_v4 = vld [vmem:[%s6588_s4 + $0x10] sm:$0xff]  ;;  %v89_v5 = vld [vmem:[%s6588_s4 + $0x8] sm:$0xff] }
   0x3   :  { %111 = vmatpush.msra.mxu1 %v91_v2  ;;  %v41_v6 = vld [vmem:[%s6587_s3] sm:$0xff] }
   0x4   :  { %72 = vmatpush.msra.mxu0 %v43_v1  ;;  %v33_v7 = vld [vmem:[%s6584_s0] sm:$0xff] }
   0x5   :  { %112 = vmatpush.msra.mxu1 %v90_v4  ;;  %v88_v8 = vld [vmem:[%s6588_s4] sm:$0xff] }
   0x6   :  { %73 = vmatpush.msra.mxu0 %v42_v3 }
   0x7   :  { %14 = vsyncpa [#allocation3], 0  ;;  %113 = vmatpush.msra.mxu1 %v89_v5  ;;  %v37_v9 = vld [vmem:[%s6585_s1] sm:$0xff]  ;;  %v34_v10 = vld [vmem:[%s6584_s0 + $0x8] sm:$0xff]  ;;  %s4982_s14 = smov 120   ;;  %vm123_vm1 = vcmask 64512  }
   0x8   :  { %74 = vmatpush.msra.mxu0 %v41_v6  ;;  %v38_v11 = vld [vmem:[%s6585_s1 + $0x8] sm:$0xff]  ;;  %v5092_v12 = vld [vmem:[%s6592_s8] sm:$0xff]  ;;  %s4983_s15 = smov 96   ;;  %s4984_s16 = smov 88   ;;  %vm158_vm2 = vcmask 130048   ;;  %v35_v62 = vld [vmem:[%s6584_s0 + $0x10] sm:$0xff] }
   0x9   :  { %4408 = vmatmul.msk.f32.vlgmr.msra.gmra.mxu0 %vm46_vm0, %v33_v7  ;;  %114 = vmatpush.msra.mxu1 %v88_v8  ;;  %v5095_v13 = vperm.slane %v5092_v12, 0  ;;  %v92_v16 = vperm.slane %v5092_v12, 1  ;;  %s4985_s17 = smov 104   ;;  %s4986_s18 = smov 112   ;;  %v5147_v35 = vld [vmem:[%s6586_s2] ss:$0 sm:$0xff] }
   0xa   :  { %4412 = vmatmul.msk.f32.vlgmr.msra.gmra.mxu1 %vm46_vm0, %v37_v9  ;;  %v36_v6 = vld [vmem:[%s6584_s0 + $0x18] sm:$0xff]  ;;  %s4987_s25 = smov 72   ;;  %s4988_s26 = smov 8  }
   0xb   :  { %s4989_s27 = smov 80   ;;  %s4990_s28 = smov 16  }
   0xc   :  { %s4991_s10 = smov 24   ;;  %s4992_s24 = smov 64  }
   0xd   :  { %s4993_s29 = smov 56   ;;  %s4994_s30 = smov 48  }
   0xe   :  { %s4995_s11 = smov 40  }
  0x11   :  { %4409 = vmatmul.msk.f32.gmra.mxu0 %vm46_vm0, %v34_v10 }
  0x12   :  { %4413 = vmatmul.msk.f32.gmra.mxu1 %vm46_vm0, %v38_v11 }
  0x19   :  { %4410 = vmatmul.msk.f32.gmra.mxu0 %vm46_vm0, %v35_v62 }
  0x21   :  { %4411 = vmatmul.msk.f32.gmra.mxu0 %vm46_vm0, %v36_v6 }
  0x86   :  { %v76_v14 = vpop.f32.mrf.mxu0 }
  0x87   :  { %v5098_v15 = vadd.f32 %v76_v14, %v5095_v13  ;;  %v116_v17 = vpop.f32.mrf.mxu1 }
  0x88   :  { %v5105_v18 = vadd.f32 %v116_v17, %v92_v16 }
  0x89   :  { %214 = vrot.lane.b32.xlu2 %v5098_v15, %s4982_s14 }
  0x8e   :  { %v79_v19 = vpop.f32.mrf.mxu0 }
  0x8f   :  { %v5108_v20 = vadd.f32 %v79_v19, %v5095_v13  ;;  %v5139_v33 = vpop.f32.mrf.mxu1 }
  0x91   :  { %4414 = vmatpush.xpose.msk.msrb.mxu1 %vm123_vm1, %v5108_v20  ;;  %212 = vrot.lane.b32.xlu2 %v5105_v18, %s4982_s14  ;;  %v5116_v21 = vpack.i.bf16 %v5098_v15, %v5108_v20 }
  0x93   :  { %4629 = vrot.lane.b32.xlu1 %v5116_v21, %s4983_s15 }
  0x95   :  { %4415 = vmatpush.xpose.msk.msrb.mxu1 %vm123_vm1, %v5098_v15 }
  0x98   :  { %4416 = vmatmul.msk.f32.vlgmr.msrb.gmra.mxu1 %vm123_vm1, %v5105_v18 }
  0x99   :  { %4634 = vrot.lane.b32.xlu2 %v5116_v21, %s4984_s16 }
  0x9b   :  { %216 = vrot.lane.b32.xlu1 %v5108_v20, %s4982_s14 }
  0xa1   :  { %390 = vrot.lane.b32.xlu2 %v5108_v20, %s4985_s17 }
  0xa9   :  { %301 = vrot.lane.b32.xlu2 %v5098_v15, %s4986_s18 }
  0xb1   :  { %388 = vrot.lane.b32.xlu2 %v5098_v15, %s4985_s17 }
  0xb9   :  { %386 = vrot.lane.b32.xlu2 %v5105_v18, %s4985_s17 }
  0xe3   :  { %v215_v22 = vpop.permute.xlu2 %214 }
  0xeb   :  { %v213_v23 = vpop.permute.xlu2 %212 }
  0xf3   :  { %v4635_v24 = vpop.permute.xlu2 %4634 }
  0xf4   :  { %v4636_v25 = vunpack.i.l.bf16 %v4635_v24  ;;  %v4637_v26 = vunpack.i.h.bf16 %v4635_v24 }
  0xf6   :  { %293 = vmatpush.msra.mxu2 %v4636_v25 }
  0xf8   :  { %294 = vmatpush.msra.mxu2 %v4637_v26 }
  0xfb   :  { %v391_v27 = vpop.permute.xlu2 %390 }
  0xfc   :  { %4426 = vmatpush.xpose.msk.msrb.mxu2 %vm123_vm1, %v391_v27 }
 0x103   :  { %v5137_v28 = vpop.permute.xlu2 %301 }
 0x105   :  { %v4630_v29 = vpop.permute.xlu1 %4629 }
 0x106   :  { %v4631_v30 = vunpack.i.l.bf16 %v4630_v29  ;;  %v4632_v31 = vunpack.i.h.bf16 %v4630_v29 }
 0x108   :  { %206 = vmatpush.msra.mxu3 %v4631_v30  ;;  %v82_v30 = vpop.f32.mrf.mxu0 }
 0x10a   :  { %207 = vmatpush.msra.mxu3 %v4632_v31 }
 0x10b   :  { %v389_v32 = vpop.permute.xlu2 %388 }
 0x10c   :  { %4427 = vmatpush.xpose.msk.msrb.mxu2 %vm123_vm1, %v389_v32 }
 0x10d   :  { %v217_v34 = vpop.permute.xlu1 %216 }
 0x10e   :  { %4418 = vmatpush.xpose.msk.msrb.mxu3 %vm123_vm1, %v217_v34  ;;  %v5187_v34 = vadd.f32 %v82_v30, %v5095_v13 }
 0x110   :  { %v85_v31 = vpop.f32.mrf.mxu0 }
 0x111   :  { %v5182_v32 = vadd.f32 %v85_v31, %v5095_v13 }
 0x112   :  { %4419 = vmatpush.xpose.msk.msrb.mxu3 %vm123_vm1, %v215_v22 }
 0x113   :  { %v387_v25 = vpop.permute.xlu2 %386 }
 0x115   :  { %v150_v36 = vpop.f32.mrf.mxu1 }
 0x116   :  { %v153_v37 = vmul.f32 0.35355338, %v150_v36 }
 0x118   :  { %v157_v38 = vadd.f32 %v5147_v35, %v153_v37 }
 0x11a   :  { %v159_v39 = vsel %vm158_vm2, %v157_v38, -inf }
 0x11b   :  { %160 = vmax.xlane.f32.xlu0 %v159_v39 }
 0x18e   :  { %v161_v40 = vpop.xlane.xlu0 %160 }
 0x18f   :  { %v162_v41 = vsub.f32 %v157_v38, %v161_v40 }
 0x191   :  { %v163_v42 = vmul.f32 1.442695, %v162_v41 }
 0x193   :  { %4715 = vpow2.f32 %v163_v42 }
 0x199   :  { %v4716_v43 = vpop.eup %4715 }
 0x19a   :  { %v165_v44 = vsel %vm158_vm2, %v4716_v43, 0.0 }
 0x19b   :  { %166 = vadd.xlane.f32.xlu0 %v165_v44 }
 0x20e   :  { %v167_v45 = vpop.xlane.xlu0 %166 }
 0x20f   :  { %4717 = vrcp.f32 %v167_v45  ;;  %v179_v49 = vand.u32 2147483648, %v167_v45  ;;  %v177_v51 = vand.u32 2147483647, %v167_v45  ;;  %vm173_vm4 = vweird.f32 %v167_v45 }
 0x211   :  { %v180_v53 = vor.u32 1.1754944e-38, %v179_v49  ;;  %vm178_vm6 = vcmp.eq.f32.partialorder %v177_v51, 8.507059e+37 }
 0x215   :  { %v4718_v46 = vpop.eup %4717 }
 0x216   :  { %v169_v47 = vmul.f32 %v4718_v46, %v167_v45  ;;  %vm174_vm3 = vweird.f32 %v4718_v46 }
 0x217   :  { %vm175_vm5 = vmor %vm173_vm4, %vm174_vm3 }
 0x218   :  { %v170_v48 = vsub.f32 1.0, %v169_v47 }
 0x21a   :  { %v171_v50 = vmul.f32 %v4718_v46, %v170_v48 }
 0x21c   :  { %v172_v52 = vadd.f32 %v4718_v46, %v171_v50 }
 0x21e   :  { %v176_v54 = vsel %vm175_vm5, %v4718_v46, %v172_v52 }
 0x21f   :  { %v181_v55 = vsel %vm178_vm6, %v180_v53, %v176_v54  ;;  %vm487_vm6 = vcmask 195584  }
 0x220   :  { %v182_v56 = vmul.f32 %v4716_v43, %v181_v55 }
 0x222   :  { %4417 = vmatmul.msk.f32.vlgmr.msra.gmra.mxu3 %vm158_vm2, %v182_v56 }
 0x22a   :  { %4420 = vmatmul.msk.f32.vlgmr.msrb.gmra.mxu3 %vm123_vm1, %v213_v23 }
 0x2a5   :  { %v5154_v57 = vpop.f32.mrf.mxu3 }
 0x2ad   :  { %v241_v58 = vpop.f32.mrf.mxu3 }
 0x2ae   :  { %v244_v59 = vmul.f32 0.35355338, %v241_v58 }
 0x2b0   :  { %v245_v60 = vadd.f32 %v5147_v35, %v244_v59 }
 0x2b2   :  { %v246_v61 = vsel %vm158_vm2, %v245_v60, -inf }
 0x2b3   :  { %247 = vmax.xlane.f32.xlu0 %v246_v61 }
 0x2c7   :  { %303 = vrot.lane.b32.xlu0 %v5108_v20, %s4986_s18 }
 0x2cf   :  { %299 = vrot.lane.b32.xlu0 %v5105_v18, %s4986_s18 }
 0x326   :  { %v248_v63 = vpop.xlane.xlu0 %247 }
 0x327   :  { %v249_v0 = vsub.f32 %v245_v60, %v248_v63 }
 0x329   :  { %v250_v1 = vmul.f32 1.442695, %v249_v0 }
 0x32b   :  { %4719 = vpow2.f32 %v250_v1 }
 0x331   :  { %v4720_v2 = vpop.eup %4719 }
 0x332   :  { %v252_v3 = vsel %vm158_vm2, %v4720_v2, 0.0 }
 0x333   :  { %253 = vadd.xlane.f32.xlu1 %v252_v3 }
 0x339   :  { %v304_v4 = vpop.permute.xlu0 %303 }
 0x33a   :  { %4422 = vmatpush.xpose.msk.msra.mxu3 %vm123_vm1, %v304_v4 }
 0x33e   :  { %4423 = vmatpush.xpose.msk.msra.mxu3 %vm123_vm1, %v5137_v28 }
 0x341   :  { %v300_v5 = vpop.permute.xlu0 %299 }
 0x342   :  { %4424 = vmatmul.msk.f32.vlgmr.msra.gmra.mxu3 %vm123_vm1, %v300_v5 }
 0x3a6   :  { %v254_v7 = vpop.xlane.xlu1 %253 }
 0x3a7   :  { %4721 = vrcp.f32 %v254_v7  ;;  %v266_v11 = vand.u32 2147483648, %v254_v7  ;;  %v264_v17 = vand.u32 2147483647, %v254_v7  ;;  %vm260_vm8 = vweird.f32 %v254_v7 }
 0x3a9   :  { %v267_v19 = vor.u32 1.1754944e-38, %v266_v11  ;;  %vm265_vm10 = vcmp.eq.f32.partialorder %v264_v17, 8.507059e+37 }
 0x3ad   :  { %v4722_v8 = vpop.eup %4721 }
 0x3ae   :  { %v256_v9 = vmul.f32 %v4722_v8, %v254_v7  ;;  %vm261_vm7 = vweird.f32 %v4722_v8 }
 0x3af   :  { %vm262_vm9 = vmor %vm260_vm8, %vm261_vm7 }
 0x3b0   :  { %v257_v10 = vsub.f32 1.0, %v256_v9 }
 0x3b2   :  { %v258_v14 = vmul.f32 %v4722_v8, %v257_v10 }
 0x3b4   :  { %v259_v18 = vadd.f32 %v4722_v8, %v258_v14 }
 0x3b6   :  { %v263_v22 = vsel %vm262_vm9, %v4722_v8, %v259_v18 }
 0x3b7   :  { %v268_v23 = vsel %vm265_vm10, %v267_v19, %v263_v22 }
 0x3b8   :  { %v269_v24 = vmul.f32 %v4720_v2, %v268_v23 }
 0x3ba   :  { %4421 = vmatmul.msk.f32.vlgmr.msra.gmra.mxu2 %vm158_vm2, %v269_v24 }
 0x3c2   :  { %4428 = vmatmul.msk.f32.vlgmr.msrb.gmra.mxu2 %vm123_vm1, %v387_v25 }
 0x3c5   :  { %v328_v26 = vpop.f32.mrf.mxu3 }
 0x3c6   :  { %v331_v27 = vmul.f32 0.35355338, %v328_v26 }
 0x3c8   :  { %v332_v28 = vadd.f32 %v5147_v35, %v331_v27 }
 0x3ca   :  { %v333_v29 = vsel %vm158_vm2, %v332_v28, -inf }
 0x3cb   :  { %334 = vmax.xlane.f32.xlu0 %v333_v29  ;;  %v4714_v29 = vld [vmem:[%s6586_s2 + $0x1] ss:$0 sm:$0xff] }
 0x3df   :  { %4644 = vrot.lane.b32.xlu0 %v5116_v21, %s4987_s25 }
 0x3e7   :  { %669 = vrot.lane.b32.xlu0 %v5182_v32, %s4986_s18 }
 0x3ef   :  { %754 = vrot.lane.b32.xlu0 %v5187_v34, %s4985_s17 }
 0x43d   :  { %v296_v36 = vpop.f32.mrf.mxu2 }
 0x43e   :  { %474 = vrot.lane.b32.xlu0 %v296_v36, %s4988_s26  ;;  %v335_v37 = vpop.xlane.xlu0 %334 }
 0x43f   :  { %v336_v38 = vsub.f32 %v332_v28, %v335_v37 }
 0x441   :  { %v337_v39 = vmul.f32 1.442695, %v336_v38 }
 0x443   :  { %4723 = vpow2.f32 %v337_v39 }
 0x445   :  { %v415_v40 = vpop.f32.mrf.mxu2 }
 0x446   :  { %v418_v41 = vmul.f32 0.35355338, %v415_v40 }
 0x448   :  { %v419_v42 = vadd.f32 %v5147_v35, %v418_v41  ;;  %v120_v35 = vadd.f32 %v5139_v33, %v92_v16 }
 0x449   :  { %v4724_v43 = vpop.eup %4723 }
 0x44a   :  { %v420_v44 = vsel %vm158_vm2, %v419_v42, -inf  ;;  %v339_v13 = vsel %vm158_vm2, %v4724_v43, 0.0 }
 0x44b   :  { %421 = vmax.xlane.f32.xlu2 %v420_v44  ;;  %340 = vadd.xlane.f32.xlu1 %v339_v13 }
 0x451   :  { %v4645_v45 = vpop.permute.xlu0 %4644 }
 0x452   :  { %v4646_v46 = vunpack.i.l.bf16 %v4645_v45  ;;  %v4647_v47 = vunpack.i.h.bf16 %v4645_v45  ;;  %v857_v45 = vld [vmem:[%s6589_s5 + $0x18] sm:$0xff] }
 0x454   :  { %467 = vmatpush.msrb.mxu3 %v4646_v46  ;;  %v856_v46 = vld [vmem:[%s6589_s5 + $0x10] sm:$0xff] }
 0x456   :  { %468 = vmatpush.msrb.mxu3 %v4647_v47 }
 0x459   :  { %v670_v4 = vpop.permute.xlu0 %669 }
 0x461   :  { %v755_v26 = vpop.permute.xlu0 %754 }
 0x463   :  { %582 = vrot.lane.b32.xlu2 %v5182_v32, %s4982_s14 }
 0x464   :  { %4639 = vrot.lane.b32.xlu1 %v5116_v21, %s4989_s27 }
 0x46b   :  { %667 = vrot.lane.b32.xlu2 %v5187_v34, %s4986_s18 }
 0x46c   :  { %580 = vrot.lane.b32.xlu1 %v5187_v34, %s4982_s14 }
 0x473   :  { %752 = vrot.lane.b32.xlu2 %v120_v35, %s4985_s17 }
 0x474   :  { %578 = vrot.lane.b32.xlu1 %v120_v35, %s4982_s14 }
 0x47c   :  { %756 = vrot.lane.b32.xlu1 %v5182_v32, %s4985_s17 }
 0x4b0   :  { %v475_v39 = vpop.permute.xlu0 %474 }
 0x4be   :  { %v422_v48 = vpop.xlane.xlu2 %421  ;;  %v341_v49 = vpop.xlane.xlu1 %340 }
 0x4bf   :  { %v423_v21 = vsub.f32 %v419_v42, %v422_v48  ;;  %4725 = vrcp.f32 %v341_v49  ;;  %v353_v58 = vand.u32 2147483648, %v341_v49  ;;  %vm347_vm12 = vweird.f32 %v341_v49 }
 0x4c0   :  { %v351_v59 = vand.u32 2147483647, %v341_v49 }
 0x4c1   :  { %v424_v50 = vmul.f32 1.442695, %v423_v21  ;;  %v354_v61 = vor.u32 1.1754944e-38, %v353_v58 }
 0x4c2   :  { %vm352_vm14 = vcmp.eq.f32.partialorder %v351_v59, 8.507059e+37  ;;  %v485_v59 = vsel %vm123_vm1, %v5154_v57, %v475_v39 }
 0x4c3   :  { %4727 = vpow2.f32 %v424_v50 }
 0x4c5   :  { %v4726_v51 = vpop.eup %4725 }
 0x4c6   :  { %v343_v52 = vmul.f32 %v4726_v51, %v341_v49  ;;  %v583_v53 = vpop.permute.xlu2 %582  ;;  %vm348_vm11 = vweird.f32 %v4726_v51 }
 0x4c7   :  { %4435 = vmatpush.xpose.msk.msra.mxu3 %vm123_vm1, %v583_v53  ;;  %vm349_vm13 = vmor %vm347_vm12, %vm348_vm11 }
 0x4c8   :  { %v344_v54 = vsub.f32 1.0, %v343_v52 }
 0x4c9   :  { %v4728_v16 = vpop.eup %4727 }
 0x4ca   :  { %v426_v33 = vsel %vm158_vm2, %v4728_v16, 0.0  ;;  %v345_v55 = vmul.f32 %v4726_v51, %v344_v54 }
 0x4cb   :  { %427 = vadd.xlane.f32.xlu1 %v426_v33 }
 0x4cc   :  { %v346_v56 = vadd.f32 %v4726_v51, %v345_v55 }
 0x4ce   :  { %v350_v60 = vsel %vm349_vm13, %v4726_v51, %v346_v56  ;;  %v668_v5 = vpop.permute.xlu2 %667  ;;  %v854_v56 = vld [vmem:[%s6589_s5] sm:$0xff] }
 0x4cf   :  { %v355_v0 = vsel %vm352_vm14, %v354_v61, %v350_v60 }
 0x4d0   :  { %v356_v2 = vmul.f32 %v4724_v43, %v355_v0 }
 0x4d6   :  { %v4640_v62 = vpop.permute.xlu1 %4639  ;;  %v753_v30 = vpop.permute.xlu2 %752 }
 0x4d7   :  { %v4641_v63 = vunpack.i.l.bf16 %v4640_v62  ;;  %v4642_v1 = vunpack.i.h.bf16 %v4640_v62 }
 0x4d9   :  { %380 = vmatpush.msra.mxu1 %v4641_v63 }
 0x4db   :  { %381 = vmatpush.msra.mxu1 %v4642_v1 }
 0x4dc   :  { %4425 = vmatmul.msk.f32.vlgmr.msra.gmra.mxu1 %vm158_vm2, %v356_v2 }
 0x4dd   :  { %4431 = vmatpush.xpose.msk.msrb.mxu1 %vm123_vm1, %v5182_v32 }
 0x4de   :  { %v581_v3 = vpop.permute.xlu1 %580 }
 0x4df   :  { %4436 = vmatpush.xpose.msk.msra.mxu3 %vm123_vm1, %v581_v3 }
 0x4e1   :  { %4432 = vmatpush.xpose.msk.msrb.mxu1 %vm123_vm1, %v5187_v34 }
 0x4e4   :  { %665 = vrot.lane.b32.xlu1 %v120_v35, %s4986_s18  ;;  %4433 = vmatmul.msk.f32.vlgmr.msrb.gmra.mxu1 %vm123_vm1, %v120_v35  ;;  %v855_v35 = vld [vmem:[%s6589_s5 + $0x8] sm:$0xff] }
 0x4e5   :  { %4439 = vmatpush.xpose.msk.msra.mxu1 %vm123_vm1, %v670_v4 }
 0x4e6   :  { %v579_v6 = vpop.permute.xlu1 %578 }
 0x4e9   :  { %4440 = vmatpush.xpose.msk.msra.mxu1 %vm123_vm1, %v668_v5 }
 0x4ed   :  { %877 = vmatpush.msrb.mxu1 %v857_v45 }
 0x4ee   :  { %v757_v7 = vpop.permute.xlu1 %756 }
 0x4ef   :  { %878 = vmatpush.msrb.mxu1 %v856_v46 }
 0x4f1   :  { %879 = vmatpush.msrb.mxu1 %v855_v35 }
 0x4f3   :  { %880 = vmatpush.msrb.mxu1 %v854_v56 }
 0x53e   :  { %v428_v8 = vpop.xlane.xlu1 %427 }
 0x53f   :  { %4729 = vrcp.f32 %v428_v8  ;;  %v440_v14 = vand.u32 2147483648, %v428_v8  ;;  %v438_v18 = vand.u32 2147483647, %v428_v8  ;;  %vm434_vm3 = vweird.f32 %v428_v8 }
 0x541   :  { %v441_v22 = vor.u32 1.1754944e-38, %v440_v14  ;;  %vm439_vm5 = vcmp.eq.f32.partialorder %v438_v18, 8.507059e+37 }
 0x545   :  { %v4730_v9 = vpop.eup %4729 }
 0x546   :  { %v430_v10 = vmul.f32 %v4730_v9, %v428_v8  ;;  %vm435_vm15 = vweird.f32 %v4730_v9 }
 0x547   :  { %vm436_vm4 = vmor %vm434_vm3, %vm435_vm15 }
 0x548   :  { %v431_v11 = vsub.f32 1.0, %v430_v10 }
 0x54a   :  { %v432_v17 = vmul.f32 %v4730_v9, %v431_v11  ;;  %v4648_v11 = vpack.i.bf16 %v5187_v34, %v5182_v32 }
 0x54c   :  { %v433_v19 = vadd.f32 %v4730_v9, %v432_v17 }
 0x54e   :  { %v437_v23 = vsel %vm436_vm4, %v4730_v9, %v433_v19 }
 0x54f   :  { %v442_v24 = vsel %vm439_vm5, %v441_v22, %v437_v23 }
 0x550   :  { %v443_v25 = vmul.f32 %v4728_v16, %v442_v24 }
 0x552   :  { %4429 = vmatmul.msk.f32.vlgmr.msrb.gmra.mxu3 %vm158_vm2, %v443_v25 }
 0x553   :  { %4443 = vmatpush.xpose.msk.msrb.mxu3 %vm123_vm1, %v757_v7 }
 0x556   :  { %v666_v27 = vpop.permute.xlu1 %665 }
 0x557   :  { %4444 = vmatpush.xpose.msk.msrb.mxu3 %vm123_vm1, %v755_v26  ;;  %4441 = vmatmul.msk.f32.vlgmr.msra.gmra.mxu1 %vm123_vm1, %v666_v27 }
 0x559   :  { %v383_v28 = vpop.f32.mrf.mxu1 }
 0x55a   :  { %478 = vrot.lane.b32.xlu1 %v383_v28, %s4990_s28  ;;  %4437 = vmatmul.msk.f32.vlgmr.msra.gmra.mxu3 %vm123_vm1, %v579_v6 }
 0x561   :  { %v517_v31 = vpop.f32.mrf.mxu1 }
 0x562   :  { %v520_v36 = vmul.f32 0.35355338, %v517_v31  ;;  %4445 = vmatmul.msk.f32.vlgmr.msrb.gmra.mxu3 %vm123_vm1, %v753_v30 }
 0x564   :  { %v524_v37 = vadd.f32 %v4714_v29, %v520_v36 }
 0x566   :  { %v525_v38 = vsel %vm158_vm2, %v524_v37, -inf }
 0x567   :  { %526 = vmax.xlane.f32.xlu0 %v525_v38 }
 0x5cc   :  { %v479_v58 = vpop.permute.xlu1 %478 }
 0x5cd   :  { %v486_v60 = vsel %vm158_vm2, %v485_v59, %v479_v58 }
 0x5d4   :  { %v694_v54 = vpop.f32.mrf.mxu1 }
 0x5d5   :  { %v470_v40 = vpop.f32.mrf.mxu3  ;;  %v697_v16 = vmul.f32 0.35355338, %v694_v54 }
 0x5d6   :  { %482 = vrot.lane.b32.xlu2 %v470_v40, %s4991_s10 }
 0x5d7   :  { %v698_v33 = vadd.f32 %v4714_v29, %v697_v16 }
 0x5d9   :  { %v699_v55 = vsel %vm158_vm2, %v698_v33, -inf }
 0x5da   :  { %v527_v41 = vpop.xlane.xlu0 %526 }
 0x5db   :  { %v528_v42 = vsub.f32 %v524_v37, %v527_v41 }
 0x5dd   :  { %v529_v43 = vmul.f32 1.442695, %v528_v42  ;;  %v607_v44 = vpop.f32.mrf.mxu3 }
 0x5de   :  { %v610_v13 = vmul.f32 0.35355338, %v607_v44  ;;  %v858_v44 = vperm.slane %v5092_v12, 2 }
 0x5df   :  { %4731 = vpow2.f32 %v529_v43 }
 0x5e0   :  { %v611_v47 = vadd.f32 %v4714_v29, %v610_v13 }
 0x5e2   :  { %v612_v48 = vsel %vm158_vm2, %v611_v47, -inf }
 0x5e3   :  { %613 = vmax.xlane.f32.xlu1 %v612_v48 }
 0x5e5   :  { %v781_v49 = vpop.f32.mrf.mxu3  ;;  %v5244_v50 = vpop.eup %4731 }
 0x5e6   :  { %v784_v21 = vmul.f32 0.35355338, %v781_v49  ;;  %v531_v53 = vsel %vm158_vm2, %v5244_v50, 0.0 }
 0x5e8   :  { %v785_v51 = vadd.f32 %v4714_v29, %v784_v21 }
 0x5ea   :  { %v786_v52 = vsel %vm158_vm2, %v785_v51, -inf }
 0x5eb   :  { %787 = vmax.xlane.f32.xlu0 %v786_v52  ;;  %532 = vadd.xlane.f32.xlu1 %v531_v53 }
 0x5ff   :  { %700 = vmax.xlane.f32.xlu2 %v699_v55 }
 0x630   :  { %v483_v61 = vpop.permute.xlu2 %482 }
 0x631   :  { %v5257_v62 = vsel %vm487_vm6, %v486_v60, %v483_v61 }
 0x632   :  { %4447 = vmatmul.msk.f32.vlgmr.msrb.gmra.mxu1 %vm46_vm0, %v5257_v62 }
 0x656   :  { %v614_v63 = vpop.xlane.xlu1 %613 }
 0x657   :  { %v615_v0 = vsub.f32 %v611_v47, %v614_v63 }
 0x659   :  { %v616_v1 = vmul.f32 1.442695, %v615_v0 }
 0x65b   :  { %4733 = vpow2.f32 %v616_v1 }
 0x65e   :  { %v788_v2 = vpop.xlane.xlu0 %787  ;;  %v533_v18 = vpop.xlane.xlu1 %532 }
 0x65f   :  { %v789_v3 = vsub.f32 %v785_v51, %v788_v2  ;;  %v545_v27 = vand.u32 2147483648, %v533_v18  ;;  %vm539_vm8 = vweird.f32 %v533_v18  ;;  %v543_v28 = vand.u32 2147483647, %v533_v18 }
 0x661   :  { %v5261_v4 = vpop.eup %4733  ;;  %v790_v5 = vmul.f32 1.442695, %v789_v3  ;;  %v546_v30 = vor.u32 1.1754944e-38, %v545_v27  ;;  %vm544_vm10 = vcmp.eq.f32.partialorder %v543_v28, 8.507059e+37 }
 0x662   :  { %v618_v57 = vsel %vm158_vm2, %v5261_v4, 0.0 }
 0x663   :  { %4735 = vpow2.f32 %v790_v5  ;;  %619 = vadd.xlane.f32.xlu2 %v618_v57 }
 0x669   :  { %v5265_v6 = vpop.eup %4735 }
 0x66a   :  { %v792_v7 = vsel %vm158_vm2, %v5265_v6, 0.0 }
 0x66b   :  { %793 = vadd.xlane.f32.xlu1 %v792_v7 }
 0x672   :  { %v701_v8 = vpop.xlane.xlu2 %700 }
 0x673   :  { %v702_v9 = vsub.f32 %v698_v33, %v701_v8 }
 0x675   :  { %v703_v10 = vmul.f32 1.442695, %v702_v9 }
 0x677   :  { %4737 = vpow2.f32 %v703_v10 }
 0x678   :  { %4739 = vrcp.f32 %v533_v18 }
 0x67b   :  { %4649 = vrot.lane.b32.xlu2 %v4648_v11, %s4983_s15 }
 0x67d   :  { %v5272_v14 = vpop.eup %4737 }
 0x67e   :  { %v705_v17 = vsel %vm158_vm2, %v5272_v14, 0.0  ;;  %v4740_v19 = vpop.eup %4739 }
 0x67f   :  { %706 = vadd.xlane.f32.xlu0 %v705_v17  ;;  %v535_v22 = vmul.f32 %v4740_v19, %v533_v18  ;;  %vm540_vm7 = vweird.f32 %v4740_v19 }
 0x680   :  { %vm541_vm9 = vmor %vm539_vm8, %vm540_vm7 }
 0x681   :  { %v536_v23 = vsub.f32 1.0, %v535_v22 }
 0x683   :  { %888 = vrot.lane.b32.xlu2 %v5098_v15, %s4992_s24  ;;  %v537_v24 = vmul.f32 %v4740_v19, %v536_v23 }
 0x684   :  { %4659 = vrot.lane.b32.xlu1 %v4648_v11, %s4989_s27 }
 0x685   :  { %v538_v26 = vadd.f32 %v4740_v19, %v537_v24 }
 0x687   :  { %v542_v29 = vsel %vm541_vm9, %v4740_v19, %v538_v26 }
 0x688   :  { %v547_v37 = vsel %vm544_vm10, %v546_v30, %v542_v29 }
 0x689   :  { %v548_v39 = vmul.f32 %v5244_v50, %v547_v37 }
 0x68c   :  { %890 = vrot.lane.b32.xlu1 %v5108_v20, %s4992_s24 }
 0x693   :  { %4654 = vrot.lane.b32.xlu0 %v4648_v11, %s4984_s16 }
 0x69b   :  { %4664 = vrot.lane.b32.xlu0 %v4648_v11, %s4987_s25 }
 0x6af   :  { %v882_v45 = vpop.f32.mrf.mxu1 }
 0x6b0   :  { %v5292_v21 = vadd.f32 %v882_v45, %v858_v44 }
 0x6d6   :  { %v5283_v25 = vpop.xlane.xlu2 %619 }
 0x6d7   :  { %4741 = vrcp.f32 %v5283_v25  ;;  %v632_v58 = vand.u32 2147483648, %v5283_v25  ;;  %vm626_vm14 = vweird.f32 %v5283_v25  ;;  %v630_v61 = vand.u32 2147483647, %v5283_v25 }
 0x6d9   :  { %v633_v3 = vor.u32 1.1754944e-38, %v632_v58  ;;  %vm631_vm5 = vcmp.eq.f32.partialorder %v630_v61, 8.507059e+37 }
 0x6dd   :  { %v4742_v41 = vpop.eup %4741 }
 0x6de   :  { %v4650_v31 = vpop.permute.xlu2 %4649  ;;  %v794_v40 = vpop.xlane.xlu1 %793  ;;  %v622_v43 = vmul.f32 %v4742_v41, %v5283_v25  ;;  %vm627_vm12 = vweird.f32 %v4742_v41 }
 0x6df   :  { %v4651_v36 = vunpack.i.l.bf16 %v4650_v31  ;;  %v4652_v38 = vunpack.i.h.bf16 %v4650_v31  ;;  %4743 = vrcp.f32 %v794_v40  ;;  %vm628_vm3 = vmor %vm626_vm14, %vm627_vm12  ;;  %v806_v10 = vand.u32 2147483648, %v794_v40 }
 0x6e0   :  { %v623_v46 = vsub.f32 1.0, %v622_v43  ;;  %vm800_vm8 = vweird.f32 %v794_v40  ;;  %v804_v17 = vand.u32 2147483647, %v794_v40 }
 0x6e1   :  { %572 = vmatpush.msra.mxu2 %v4651_v36 }
 0x6e2   :  { %v624_v51 = vmul.f32 %v4742_v41, %v623_v46  ;;  %vm805_vm10 = vcmp.eq.f32.partialorder %v804_v17, 8.507059e+37 }
 0x6e3   :  { %573 = vmatpush.msra.mxu2 %v4652_v38 }
 0x6e4   :  { %4434 = vmatmul.msk.f32.vlgmr.msra.gmra.mxu2 %vm158_vm2, %v548_v39  ;;  %v625_v56 = vadd.f32 %v4742_v41, %v624_v51 }
 0x6e5   :  { %v4744_v35 = vpop.eup %4743 }
 0x6e6   :  { %v796_v52 = vmul.f32 %v4744_v35, %v794_v40  ;;  %v629_v2 = vsel %vm628_vm3, %v4742_v41, %v625_v56  ;;  %vm801_vm7 = vweird.f32 %v4744_v35  ;;  %v889_v22 = vpop.permute.xlu2 %888 }
 0x6e7   :  { %v634_v8 = vsel %vm631_vm5, %v633_v3, %v629_v2  ;;  %vm802_vm9 = vmor %vm800_vm8, %vm801_vm7 }
 0x6e8   :  { %v797_v55 = vsub.f32 1.0, %v796_v52  ;;  %v635_v18 = vmul.f32 %v5261_v4, %v634_v8 }
 0x6ea   :  { %v798_v0 = vmul.f32 %v4744_v35, %v797_v55 }
 0x6ec   :  { %v799_v9 = vadd.f32 %v4744_v35, %v798_v0 }
 0x6ee   :  { %v803_v19 = vsel %vm802_vm9, %v4744_v35, %v799_v9 }
 0x6f2   :  { %v707_v42 = vpop.xlane.xlu0 %706 }
 0x6f3   :  { %4745 = vrcp.f32 %v707_v42  ;;  %v719_v54 = vand.u32 2147483648, %v707_v42  ;;  %v717_v33 = vand.u32 2147483647, %v707_v42  ;;  %vm713_vm13 = vweird.f32 %v707_v42 }
 0x6f5   :  { %v720_v60 = vor.u32 1.1754944e-38, %v719_v54  ;;  %vm718_vm4 = vcmp.eq.f32.partialorder %v717_v33, 8.507059e+37 }
 0x6f6   :  { %v4660_v13 = vpop.permute.xlu1 %4659 }
 0x6f7   :  { %v4661_v47 = vunpack.i.l.bf16 %v4660_v13  ;;  %v4662_v49 = vunpack.i.h.bf16 %v4660_v13 }
 0x6f9   :  { %v4746_v48 = vpop.eup %4745  ;;  %746 = vmatpush.msrb.mxu2 %v4661_v47 }
 0x6fa   :  { %v709_v50 = vmul.f32 %v4746_v48, %v707_v42  ;;  %vm714_vm11 = vweird.f32 %v4746_v48 }
 0x6fb   :  { %747 = vmatpush.msrb.mxu2 %v4662_v49  ;;  %vm715_vm15 = vmor %vm713_vm13, %vm714_vm11 }
 0x6fc   :  { %v710_v53 = vsub.f32 1.0, %v709_v50 }
 0x6fd   :  { %4449 = vmatpush.xpose.msk.msra.mxu2 %vm123_vm1, %v5292_v21 }
 0x6fe   :  { %v711_v16 = vmul.f32 %v4746_v48, %v710_v53  ;;  %v891_v4 = vpop.permute.xlu1 %890 }
 0x700   :  { %v712_v59 = vadd.f32 %v4746_v48, %v711_v16 }
 0x702   :  { %v716_v63 = vsel %vm715_vm15, %v4746_v48, %v712_v59 }
 0x703   :  { %v721_v1 = vsel %vm718_vm4, %v720_v60, %v716_v63 }
 0x704   :  { %v722_v5 = vmul.f32 %v5272_v14, %v721_v1  ;;  %v807_v14 = vor.u32 1.1754944e-38, %v806_v10 }
 0x705   :  { %v4655_v57 = vpop.permute.xlu0 %4654 }
 0x706   :  { %4442 = vmatmul.msk.f32.vlgmr.msrb.gmra.mxu2 %vm158_vm2, %v722_v5  ;;  %v4656_v7 = vunpack.i.l.bf16 %v4655_v57  ;;  %v4657_v11 = vunpack.i.h.bf16 %v4655_v57  ;;  %v808_v25 = vsel %vm805_vm10, %v807_v14, %v803_v19 }
 0x707   :  { %v809_v27 = vmul.f32 %v5265_v6, %v808_v25 }
 0x708   :  { %659 = vmatpush.msrb.mxu0 %v4656_v7 }
 0x70a   :  { %660 = vmatpush.msrb.mxu0 %v4657_v11 }
 0x70b   :  { %4438 = vmatmul.msk.f32.vlgmr.msrb.gmra.mxu0 %vm158_vm2, %v635_v18 }
 0x70d   :  { %v4665_v23 = vpop.permute.xlu0 %4664 }
 0x70e   :  { %v4666_v24 = vunpack.i.l.bf16 %v4665_v23  ;;  %4450 = vmatmul.msk.f32.vlgmr.msra.gmra.mxu2 %vm123_vm1, %v889_v22  ;;  %v4667_v26 = vunpack.i.h.bf16 %v4665_v23 }
 0x710   :  { %833 = vmatpush.msra.mxu0 %v4666_v24 }
 0x712   :  { %834 = vmatpush.msra.mxu0 %v4667_v26 }
 0x713   :  { %4446 = vmatmul.msk.f32.vlgmr.msra.gmra.mxu0 %vm158_vm2, %v809_v27 }
 0x716   :  { %4451 = vmatmul.msk.f32.gmra.mxu2 %vm123_vm1, %v891_v4 }
 0x767   :  { %v575_v28 = vpop.f32.mrf.mxu2 }
 0x788   :  { %v662_v29 = vpop.f32.mrf.mxu0 }
 0x789   :  { %840 = vrot.lane.b32.xlu0 %v662_v29, %s4988_s26  ;;  %v749_v30 = vpop.f32.mrf.mxu2 }
 0x78a   :  { %844 = vrot.lane.b32.xlu2 %v749_v30, %s4990_s28 }
 0x790   :  { %v836_v31 = vpop.f32.mrf.mxu0 }
 0x791   :  { %848 = vrot.lane.b32.xlu1 %v836_v31, %s4991_s10  ;;  %v916_v36 = vpop.f32.mrf.mxu2 }
 0x792   :  { %v922_v38 = vmul.f32 0.35355338, %v916_v36 }
 0x794   :  { %v924_v39 = vsel %vm123_vm1, %v922_v38, -inf }
 0x799   :  { %v919_v37 = vpop.f32.mrf.mxu2 }
 0x79a   :  { %v923_v6 = vmul.f32 0.35355338, %v919_v37 }
 0x79c   :  { %v927_v40 = vsel %vm123_vm1, %v923_v6, -inf }
 0x7b3   :  { %925 = vmax.xlane.f32.xlu0 %v924_v39  ;;  %928 = vmax.xlane.f32.xlu2 %v927_v40 }
 0x7c7   :  { %1004 = vrot.lane.b32.xlu0 %v5098_v15, %s4993_s29 }
 0x7cb   :  { %972 = vrot.lane.b32.xlu2 %v5292_v21, %s4983_s15 }
 0x7cf   :  { %1121 = vrot.lane.b32.xlu0 %v5098_v15, %s4994_s30 }
 0x7d3   :  { %1125 = vrot.lane.b32.xlu2 %v5292_v21, %s4986_s18 }
 0x7db   :  { %1123 = vrot.lane.b32.xlu2 %v5108_v20, %s4994_s30 }
 0x7e3   :  { %1385 = vrot.lane.b32.xlu2 %v5187_v34, %s4992_s24 }
 0x7e4   :  { %v845_v43 = vpop.permute.xlu2 %844 }
 0x7fb   :  { %v841_v41 = vpop.permute.xlu0 %840 }
 0x7fc   :  { %v851_v42 = vsel %vm123_vm1, %v575_v28, %v841_v41 }
 0x7fd   :  { %v852_v45 = vsel %vm158_vm2, %v851_v42, %v845_v43 }
 0x803   :  { %v849_v13 = vpop.permute.xlu1 %848 }
 0x804   :  { %v5327_v46 = vsel %vm487_vm6, %v852_v45, %v849_v13 }
 0x805   :  { %4448 = vmatmul.msk.f32.gmra.mxu1 %vm46_vm0, %v5327_v46 }
 0x826   :  { %v926_v47 = vpop.xlane.xlu0 %925  ;;  %v929_v35 = vpop.xlane.xlu2 %928 }
 0x827   :  { %v930_v48 = vsub.f32 %v922_v38, %v926_v47  ;;  %v931_v49 = vsub.f32 %v923_v6, %v929_v35 }
 0x829   :  { %v932_v50 = vmul.f32 1.442695, %v930_v48  ;;  %v934_v51 = vmul.f32 1.442695, %v931_v49 }
 0x82b   :  { %4747 = vpow2.f32 %v932_v50 }
 0x82c   :  { %4749 = vpow2.f32 %v934_v51 }
 0x82e   :  { %v973_v52 = vpop.permute.xlu2 %972 }
 0x82f   :  { %996 = vmatpush.msrb.mxu0 %v973_v52 }
 0x831   :  { %v4748_v53 = vpop.eup %4747 }
 0x832   :  { %v5331_v54 = vpop.eup %4749  ;;  %v936_v16 = vsel %vm123_vm1, %v4748_v53, 0.0 }
 0x833   :  { %937 = vadd.xlane.f32.xlu1 %v936_v16  ;;  %v939_v33 = vsel %vm123_vm1, %v5331_v54, 0.0 }
 0x834   :  { %940 = vadd.xlane.f32.xlu0 %v939_v33 }
 0x836   :  { %v1126_v55 = vpop.permute.xlu2 %1125 }
 0x837   :  { %4459 = vmatpush.xpose.msk.msrb.mxu2 %vm123_vm1, %v1126_v55 }
 0x839   :  { %v5337_v56 = vpop.permute.xlu0 %1004 }
 0x83e   :  { %v1124_v59 = vpop.permute.xlu2 %1123 }
 0x841   :  { %v1122_v58 = vpop.permute.xlu0 %1121 }
 0x842   :  { %4460 = vmatmul.msk.f32.vlgmr.msrb.gmra.mxu2 %vm123_vm1, %v1122_v58 }
 0x848   :  { %1242 = vrot.lane.b32.xlu0 %v5292_v21, %s4985_s17 }
 0x84a   :  { %4461 = vmatmul.msk.f32.gmra.mxu2 %vm123_vm1, %v1124_v59 }
 0x84c   :  { %1008 = vrot.lane.b32.xlu1 %v5292_v21, %s4982_s14 }
 0x850   :  { %1240 = vrot.lane.b32.xlu0 %v5108_v20, %s4995_s11 }
 0x854   :  { %1006 = vrot.lane.b32.xlu1 %v5108_v20, %s4993_s29 }
 0x858   :  { %1501 = vrot.lane.b32.xlu0 %v5187_v34, %s4993_s29 }
 0x85c   :  { %1238 = vrot.lane.b32.xlu1 %v5098_v15, %s4995_s11  ;;  %v1386_v15 = vpop.permute.xlu2 %1385 }
 0x860   :  { %1503 = vrot.lane.b32.xlu0 %v5182_v32, %s4993_s29 }
 0x864   :  { %1387 = vrot.lane.b32.xlu1 %v5182_v32, %s4992_s24 }
 0x868   :  { %1735 = vrot.lane.b32.xlu0 %v5187_v34, %s4995_s11 }
 0x882   :  { %v885_v60 = vpop.f32.mrf.mxu1 }
 0x883   :  { %v5361_v61 = vadd.f32 %v885_v60, %v858_v44 }
 0x885   :  { %1622 = vrot.lane.b32.xlu1 %v5361_v61, %s4986_s18  ;;  %1505 = vrot.lane.b32.xlu2 %v5361_v61, %s4982_s14 }
 0x886   :  { %4469 = vmatpush.xpose.msk.msra.mxu2 %vm123_vm1, %v5361_v61 }
 0x889   :  { %4470 = vmatmul.msk.f32.vlgmr.msra.gmra.mxu2 %vm123_vm1, %v1386_v15 }
 0x88d   :  { %1620 = vrot.lane.b32.xlu1 %v5182_v32, %s4994_s30  ;;  %1618 = vrot.lane.b32.xlu2 %v5187_v34, %s4994_s30 }
 0x895   :  { %1737 = vrot.lane.b32.xlu1 %v5182_v32, %s4995_s11  ;;  %1739 = vrot.lane.b32.xlu2 %v5361_v61, %s4985_s17 }
 0x8a6   :  { %v938_v12 = vpop.xlane.xlu1 %937 }
 0x8a7   :  { %4751 = vrcp.f32 %v938_v12  ;;  %v941_v20 = vpop.xlane.xlu0 %940  ;;  %v953_v3 = vand.u32 2147483648, %v938_v12  ;;  %v951_v34 = vand.u32 2147483647, %v938_v12  ;;  %vm947_vm12 = vweird.f32 %v938_v12 }
 0x8a8   :  { %4753 = vrcp.f32 %v941_v20  ;;  %v968_v17 = vand.u32 2147483648, %v941_v20  ;;  %vm962_vm3 = vweird.f32 %v941_v20  ;;  %v966_v19 = vand.u32 2147483647, %v941_v20 }
 0x8a9   :  { %v954_v32 = vor.u32 1.1754944e-38, %v953_v3  ;;  %vm952_vm14 = vcmp.eq.f32.partialorder %v951_v34, 8.507059e+37 }
 0x8aa   :  { %v969_v22 = vor.u32 1.1754944e-38, %v968_v17  ;;  %vm967_vm5 = vcmp.eq.f32.partialorder %v966_v19, 8.507059e+37 }
 0x8ad   :  { %v4752_v44 = vpop.eup %4751 }
 0x8ae   :  { %v4754_v63 = vpop.eup %4753  ;;  %v943_v0 = vmul.f32 %v4752_v44, %v938_v12  ;;  %vm948_vm11 = vweird.f32 %v4752_v44 }
 0x8af   :  { %v958_v1 = vmul.f32 %v4754_v63, %v941_v20  ;;  %vm949_vm13 = vmor %vm947_vm12, %vm948_vm11  ;;  %vm963_vm15 = vweird.f32 %v4754_v63 }
 0x8b0   :  { %v944_v2 = vsub.f32 1.0, %v943_v0  ;;  %vm964_vm4 = vmor %vm962_vm3, %vm963_vm15 }
 0x8b1   :  { %v959_v5 = vsub.f32 1.0, %v958_v1 }
 0x8b2   :  { %v945_v57 = vmul.f32 %v4752_v44, %v944_v2 }
 0x8b3   :  { %v960_v7 = vmul.f32 %v4754_v63, %v959_v5 }
 0x8b4   :  { %v946_v8 = vadd.f32 %v4752_v44, %v945_v57 }
 0x8b5   :  { %v961_v10 = vadd.f32 %v4754_v63, %v960_v7 }
 0x8b6   :  { %v950_v9 = vsel %vm949_vm13, %v4752_v44, %v946_v8 }
 0x8b7   :  { %v955_v11 = vsel %vm952_vm14, %v954_v32, %v950_v9  ;;  %v965_v14 = vsel %vm964_vm4, %v4754_v63, %v961_v10 }
 0x8b8   :  { %v956_v18 = vmul.f32 %v4748_v53, %v955_v11  ;;  %v970_v23 = vsel %vm967_vm5, %v969_v22, %v965_v14 }
 0x8b9   :  { %v971_v26 = vmul.f32 %v5331_v54, %v970_v23 }
 0x8ba   :  { %4452 = vmatmul.msk.f32.vlgmr.msrb.gmra.mxu0 %vm123_vm1, %v956_v18  ;;  %v1243_v25 = vpop.permute.xlu0 %1242 }
 0x8be   :  { %v1009_v24 = vpop.permute.xlu1 %1008 }
 0x8bf   :  { %4454 = vmatpush.xpose.msk.msra.mxu0 %vm123_vm1, %v1009_v24 }
 0x8c2   :  { %4453 = vmatmul.msk.f32.gmra.mxu0 %vm123_vm1, %v971_v26  ;;  %v1241_v6 = vpop.permute.xlu0 %1240 }
 0x8c3   :  { %4464 = vmatpush.xpose.msk.msrb.mxu0 %vm123_vm1, %v1243_v25 }
 0x8c5   :  { %v1150_v27 = vpop.f32.mrf.mxu2 }
 0x8c6   :  { %v1156_v4 = vmul.f32 0.35355338, %v1150_v27  ;;  %v1007_v28 = vpop.permute.xlu1 %1006 }
 0x8c8   :  { %v1158_v29 = vsel %vm123_vm1, %v1156_v4, -inf }
 0x8c9   :  { %1159 = vmax.xlane.f32.xlu1 %v1158_v29 }
 0x8ca   :  { %4455 = vmatmul.msk.f32.vlgmr.msra.gmra.mxu0 %vm123_vm1, %v5337_v56  ;;  %v1502_v40 = vpop.permute.xlu0 %1501 }
 0x8cd   :  { %v1153_v30 = vpop.f32.mrf.mxu2 }
 0x8ce   :  { %v1157_v31 = vmul.f32 0.35355338, %v1153_v30  ;;  %v1239_v36 = vpop.permute.xlu1 %1238 }
 0x8d0   :  { %v1161_v37 = vsel %vm123_vm1, %v1157_v31, -inf }
 0x8d1   :  { %1162 = vmax.xlane.f32.xlu0 %v1161_v37 }
 0x8d2   :  { %4456 = vmatmul.msk.f32.gmra.mxu0 %vm123_vm1, %v1007_v28  ;;  %v1504_v42 = vpop.permute.xlu0 %1503 }
 0x8d6   :  { %v1388_v38 = vpop.permute.xlu1 %1387 }
 0x8d7   :  { %4471 = vmatmul.msk.f32.gmra.mxu2 %vm123_vm1, %v1388_v38 }
 0x8da   :  { %4465 = vmatmul.msk.f32.vlgmr.msrb.gmra.mxu0 %vm123_vm1, %v1239_v36  ;;  %v1736_v45 = vpop.permute.xlu0 %1735 }
 0x8df   :  { %v1506_v39 = vpop.permute.xlu2 %1505 }
 0x8e0   :  { %4474 = vmatpush.xpose.msk.msra.mxu0 %vm123_vm1, %v1506_v39 }
 0x8e2   :  { %4466 = vmatmul.msk.f32.gmra.mxu0 %vm123_vm1, %v1241_v6  ;;  %1206 = vrot.lane.b32.xlu1 %v5292_v21, %s4989_s27 }
 0x8e7   :  { %v1619_v41 = vpop.permute.xlu2 %1618 }
 0x8ea   :  { %4475 = vmatmul.msk.f32.vlgmr.msra.gmra.mxu0 %vm123_vm1, %v1502_v40 }
 0x8ef   :  { %v1740_v43 = vpop.permute.xlu2 %1739 }
 0x8f0   :  { %4484 = vmatpush.xpose.msk.msrb.mxu0 %vm123_vm1, %v1740_v43 }
 0x8f2   :  { %4476 = vmatmul.msk.f32.gmra.mxu0 %vm123_vm1, %v1504_v42 }
 0x8f7   :  { %v1623_v13 = vpop.permute.xlu1 %1622 }
 0x8f8   :  { %4479 = vmatpush.xpose.msk.msrb.mxu2 %vm123_vm1, %v1623_v13 }
 0x8fa   :  { %4485 = vmatmul.msk.f32.vlgmr.msrb.gmra.mxu0 %vm123_vm1, %v1736_v45 }
 0x8fb   :  { %4480 = vmatmul.msk.f32.vlgmr.msrb.gmra.mxu2 %vm123_vm1, %v1619_v41 }
 0x8ff   :  { %v1621_v47 = vpop.permute.xlu1 %1620 }
 0x903   :  { %4481 = vmatmul.msk.f32.gmra.mxu2 %vm123_vm1, %v1621_v47 }
 0x907   :  { %v1738_v35 = vpop.permute.xlu1 %1737 }
 0x908   :  { %4486 = vmatmul.msk.f32.gmra.mxu0 %vm123_vm1, %v1738_v35 }
 0x90c   :  { %v1413_v15 = vpop.f32.mrf.mxu2 }
 0x90d   :  { %v5448_v24 = vmul.f32 0.35355338, %v1413_v15 }
 0x90f   :  { %v1421_v26 = vsel %vm123_vm1, %v5448_v24, -inf }
 0x937   :  { %v5402_v48 = vpop.f32.mrf.mxu0 }
 0x93c   :  { %v1160_v49 = vpop.xlane.xlu1 %1159 }
 0x93d   :  { %v1164_v50 = vsub.f32 %v1156_v4, %v1160_v49 }
 0x93f   :  { %v1166_v51 = vmul.f32 1.442695, %v1164_v50  ;;  %v5404_v52 = vpop.f32.mrf.mxu0 }
 0x941   :  { %4755 = vpow2.f32 %v1166_v51 }
 0x944   :  { %v1163_v53 = vpop.xlane.xlu0 %1162 }
 0x945   :  { %v1165_v54 = vsub.f32 %v1157_v31, %v1163_v53 }
 0x947   :  { %v5406_v16 = vpop.eup %4755  ;;  %v1168_v33 = vmul.f32 1.442695, %v1165_v54  ;;  %v1033_v55 = vpop.f32.mrf.mxu0 }
 0x948   :  { %v1170_v56 = vsel %vm123_vm1, %v5406_v16, 0.0  ;;  %v5440_v18 = vmul.f32 0.35355338, %v1033_v55 }
 0x949   :  { %4757 = vpow2.f32 %v1168_v33  ;;  %1171 = vadd.xlane.f32.xlu0 %v1170_v56 }
 0x94a   :  { %v1041_v22 = vsel %vm123_vm1, %v5440_v18, -inf }
 0x94f   :  { %v5410_v58 = vpop.eup %4757  ;;  %v1036_v59 = vpop.f32.mrf.mxu0 }
 0x950   :  { %v1173_v60 = vsel %vm123_vm1, %v5410_v58, 0.0  ;;  %v5430_v32 = vmul.f32 0.35355338, %v1036_v59 }
 0x951   :  { %1174 = vadd.xlane.f32.xlu2 %v1173_v60 }
 0x952   :  { %v1044_v11 = vsel %vm123_vm1, %v5430_v32, -inf }
 0x954   :  { %v1207_v12 = vpop.permute.xlu1 %1206 }
 0x955   :  { %1230 = vmatpush.msra.mxu3 %v1207_v12 }
 0x957   :  { %v1267_v20 = vpop.f32.mrf.mxu0 }
 0x958   :  { %v5454_v27 = vmul.f32 0.35355338, %v1267_v20 }
 0x95a   :  { %v1416_v44 = vpop.f32.mrf.mxu2  ;;  %v1275_v4 = vsel %vm123_vm1, %v5454_v27, -inf }
 0x95b   :  { %v5414_v63 = vmul.f32 0.35355338, %v1416_v44 }
 0x95d   :  { %1089 = vrot.lane.b32.xlu0 %v5292_v21, %s4984_s16  ;;  %v1424_v0 = vsel %vm123_vm1, %v5414_v63, -inf }
 0x95e   :  { %1425 = vmax.xlane.f32.xlu1 %v1424_v0 }
 0x95f   :  { %v1270_v1 = vpop.f32.mrf.mxu0 }
 0x960   :  { %v5420_v2 = vmul.f32 0.35355338, %v1270_v1 }
 0x962   :  { %v1278_v3 = vsel %vm123_vm1, %v5420_v2, -inf }
 0x966   :  { %1279 = vmax.xlane.f32.xlu1 %v1278_v3 }
 0x967   :  { %v1530_v5 = vpop.f32.mrf.mxu0 }
 0x968   :  { %v5438_v17 = vmul.f32 0.35355338, %v1530_v5 }
 0x969   :  { %1323 = vrot.lane.b32.xlu2 %v5292_v21, %s4987_s25 }
 0x96a   :  { %v1538_v19 = vsel %vm123_vm1, %v5438_v17, -inf }
 0x96f   :  { %v1533_v57 = vpop.f32.mrf.mxu0 }
 0x970   :  { %v5458_v28 = vmul.f32 0.35355338, %v1533_v57 }
 0x972   :  { %v1541_v29 = vsel %vm123_vm1, %v5458_v28, -inf }
 0x977   :  { %v1764_v34 = vpop.f32.mrf.mxu0 }
 0x978   :  { %v5426_v7 = vmul.f32 0.35355338, %v1764_v34 }
 0x97a   :  { %v1772_v8 = vsel %vm123_vm1, %v5426_v7, -inf }
 0x97b   :  { %1773 = vmax.xlane.f32.xlu1 %v1772_v8 }
 0x97e   :  { %v1647_v14 = vpop.f32.mrf.mxu2 }
 0x97f   :  { %v5446_v23 = vmul.f32 0.35355338, %v1647_v14 }
 0x981   :  { %v1655_v25 = vsel %vm123_vm1, %v5446_v23, -inf }
 0x985   :  { %v1767_v9 = vpop.f32.mrf.mxu0 }
 0x986   :  { %v5432_v10 = vmul.f32 0.35355338, %v1767_v9  ;;  %v1650_v30 = vpop.f32.mrf.mxu2 }
 0x987   :  { %1045 = vmax.xlane.f32.xlu0 %v1044_v11  ;;  %v5462_v31 = vmul.f32 0.35355338, %v1650_v30 }
 0x988   :  { %v1775_v21 = vsel %vm123_vm1, %v5432_v10, -inf }
 0x989   :  { %1776 = vmax.xlane.f32.xlu1 %v1775_v21  ;;  %v1658_v36 = vsel %vm123_vm1, %v5462_v31, -inf }
 0x98f   :  { %1539 = vmax.xlane.f32.xlu0 %v1538_v19 }
 0x992   :  { %1042 = vmax.xlane.f32.xlu2 %v1041_v22 }
 0x997   :  { %1656 = vmax.xlane.f32.xlu0 %v1655_v25 }
 0x99a   :  { %1422 = vmax.xlane.f32.xlu2 %v1421_v26 }
 0x9a2   :  { %1276 = vmax.xlane.f32.xlu2 %v1275_v4 }
 0x9aa   :  { %1542 = vmax.xlane.f32.xlu2 %v1541_v29 }
 0x9b2   :  { %1659 = vmax.xlane.f32.xlu2 %v1658_v36 }
 0x9bc   :  { %v1172_v37 = vpop.xlane.xlu0 %1171 }
 0x9bd   :  { %4759 = vrcp.f32 %v1172_v37  ;;  %v1187_v41 = vand.u32 2147483648, %v1172_v37  ;;  %v1185_v43 = vand.u32 2147483647, %v1172_v37  ;;  %vm1181_vm8 = vweird.f32 %v1172_v37 }
 0x9bf   :  { %v1188_v47 = vor.u32 1.1754944e-38, %v1187_v41  ;;  %vm1186_vm10 = vcmp.eq.f32.partialorder %v1185_v43, 8.507059e+37 }
 0x9c3   :  { %v4760_v38 = vpop.eup %4759 }
 0x9c4   :  { %v1177_v6 = vmul.f32 %v4760_v38, %v1172_v37  ;;  %v1175_v39 = vpop.xlane.xlu2 %1174  ;;  %vm1182_vm7 = vweird.f32 %v4760_v38 }
 0x9c5   :  { %4761 = vrcp.f32 %v1175_v39  ;;  %vm1183_vm9 = vmor %vm1181_vm8, %vm1182_vm7  ;;  %v1202_v33 = vand.u32 2147483648, %v1175_v39  ;;  %v1200_v59 = vand.u32 2147483647, %v1175_v39  ;;  %vm1196_vm12 = vweird.f32 %v1175_v39 }
 0x9c6   :  { %v1178_v40 = vsub.f32 1.0, %v1177_v6 }
 0x9c7   :  { %v1203_v15 = vor.u32 1.1754944e-38, %v1202_v33  ;;  %vm1201_vm14 = vcmp.eq.f32.partialorder %v1200_v59, 8.507059e+37 }
 0x9c8   :  { %v1179_v42 = vmul.f32 %v4760_v38, %v1178_v40 }
 0x9ca   :  { %v1180_v13 = vadd.f32 %v4760_v38, %v1179_v42 }
 0x9cb   :  { %v4762_v45 = vpop.eup %4761 }
 0x9cc   :  { %v1184_v35 = vsel %vm1183_vm9, %v4760_v38, %v1180_v13  ;;  %v1192_v49 = vmul.f32 %v4762_v45, %v1175_v39  ;;  %v1324_v55 = vpop.permute.xlu2 %1323  ;;  %vm1197_vm11 = vweird.f32 %v4762_v45 }
 0x9cd   :  { %v1189_v50 = vsel %vm1186_vm10, %v1188_v47, %v1184_v35  ;;  %vm1198_vm13 = vmor %vm1196_vm12, %vm1197_vm11 }
 0x9ce   :  { %v1193_v51 = vsub.f32 1.0, %v1192_v49  ;;  %v1190_v53 = vmul.f32 %v5406_v16, %v1189_v50 }
 0x9cf   :  { %v1090_v54 = vpop.permute.xlu0 %1089 }
 0x9d0   :  { %1113 = vmatpush.msra.mxu1 %v1090_v54  ;;  %4462 = vmatmul.msk.f32.vlgmr.msra.gmra.mxu3 %vm123_vm1, %v1190_v53  ;;  %v1194_v56 = vmul.f32 %v4762_v45, %v1193_v51 }
 0x9d1   :  { %v1426_v16 = vpop.xlane.xlu1 %1425 }
 0x9d2   :  { %1347 = vmatpush.msrb.mxu1 %v1324_v55  ;;  %v1195_v60 = vadd.f32 %v4762_v45, %v1194_v56  ;;  %v1428_v3 = vsub.f32 %v5414_v63, %v1426_v16 }
 0x9d4   :  { %v1199_v12 = vsel %vm1198_vm13, %v4762_v45, %v1195_v60  ;;  %v1431_v34 = vmul.f32 1.442695, %v1428_v3 }
 0x9d5   :  { %v1204_v20 = vsel %vm1201_vm14, %v1203_v15, %v1199_v12 }
 0x9d6   :  { %v1205_v44 = vmul.f32 %v5410_v58, %v1204_v20 }
 0x9d8   :  { %4463 = vmatmul.msk.f32.gmra.mxu3 %vm123_vm1, %v1205_v44 }
 0x9d9   :  { %v1280_v63 = vpop.xlane.xlu1 %1279 }
 0x9ee   :  { %v1774_v47 = vpop.xlane.xlu1 %1773 }
 0x9fa   :  { %v1046_v5 = vpop.xlane.xlu0 %1045 }
 0x9fb   :  { %v1048_v58 = vsub.f32 %v5430_v32, %v1046_v5 }
 0x9fc   :  { %v1777_v53 = vpop.xlane.xlu1 %1776 }
 0xa02   :  { %v1540_v14 = vpop.xlane.xlu0 %1539 }
 0xa03   :  { %v1544_v32 = vsub.f32 %v5438_v17, %v1540_v14 }
 0xa05   :  { %v1043_v0 = vpop.xlane.xlu2 %1042  ;;  %v1546_v38 = vmul.f32 1.442695, %v1544_v32 }
 0xa06   :  { %v1047_v1 = vsub.f32 %v5440_v18, %v1043_v0  ;;  %v1051_v18 = vmul.f32 1.442695, %v1048_v58 }
 0xa08   :  { %v1049_v57 = vmul.f32 1.442695, %v1047_v1 }
 0xa0a   :  { %4763 = vpow2.f32 %v1049_v57 }
 0xa0b   :  { %4765 = vpow2.f32 %v1431_v34 }
 0xa0d   :  { %v1423_v8 = vpop.xlane.xlu2 %1422 }
 0xa0e   :  { %v1427_v9 = vsub.f32 %v5448_v24, %v1423_v8  ;;  %v1282_v24 = vsub.f32 %v5420_v2, %v1280_v63 }
 0xa10   :  { %v5473_v11 = vpop.eup %4763  ;;  %v1429_v21 = vmul.f32 1.442695, %v1427_v9  ;;  %v1285_v37 = vmul.f32 1.442695, %v1282_v24 }
 0xa11   :  { %v1053_v19 = vsel %vm123_vm1, %v5473_v11, 0.0  ;;  %v5478_v25 = vpop.eup %4765 }
 0xa12   :  { %4767 = vpow2.f32 %v1429_v21  ;;  %1054 = vadd.xlane.f32.xlu0 %v1053_v19  ;;  %v1436_v30 = vsel %vm123_vm1, %v5478_v25, 0.0 }
 0xa13   :  { %4769 = vpow2.f32 %v1051_v18 }
 0xa15   :  { %v1277_v22 = vpop.xlane.xlu2 %1276 }
 0xa16   :  { %v1281_v26 = vsub.f32 %v5454_v27, %v1277_v22  ;;  %v1657_v27 = vpop.xlane.xlu0 %1656 }
 0xa17   :  { %v1661_v39 = vsub.f32 %v5446_v23, %v1657_v27  ;;  %v1778_v23 = vsub.f32 %v5426_v7, %v1774_v47  ;;  %v1779_v7 = vsub.f32 %v5432_v10, %v1777_v53 }
 0xa18   :  { %v5482_v4 = vpop.eup %4767  ;;  %v1283_v29 = vmul.f32 1.442695, %v1281_v26 }
 0xa19   :  { %v1433_v36 = vsel %vm123_vm1, %v5482_v4, 0.0  ;;  %v5489_v2 = vpop.eup %4769  ;;  %v1663_v43 = vmul.f32 1.442695, %v1661_v39  ;;  %v1780_v50 = vmul.f32 1.442695, %v1778_v23 }
 0xa1a   :  { %4771 = vpow2.f32 %v1283_v29  ;;  %1437 = vadd.xlane.f32.xlu0 %v1436_v30  ;;  %1434 = vadd.xlane.f32.xlu2 %v1433_v36  ;;  %v1056_v41 = vsel %vm123_vm1, %v5489_v2, 0.0  ;;  %v1782_v56 = vmul.f32 1.442695, %v1779_v7 }
 0xa1b   :  { %4773 = vpow2.f32 %v1285_v37 }
 0xa1c   :  { %4775 = vpow2.f32 %v1546_v38 }
 0xa1d   :  { %v1543_v6 = vpop.xlane.xlu2 %1542  ;;  %4777 = vpow2.f32 %v1663_v43 }
 0xa1e   :  { %v1545_v40 = vsub.f32 %v5458_v28, %v1543_v6 }
 0xa20   :  { %v5492_v17 = vpop.eup %4771  ;;  %v1548_v13 = vmul.f32 1.442695, %v1545_v40 }
 0xa21   :  { %v1287_v42 = vsel %vm123_vm1, %v5492_v17, 0.0  ;;  %v5499_v45 = vpop.eup %4773 }
 0xa22   :  { %1057 = vadd.xlane.f32.xlu2 %v1056_v41  ;;  %1288 = vadd.xlane.f32.xlu1 %v1287_v42  ;;  %v5501_v35 = vpop.eup %4775  ;;  %4779 = vpow2.f32 %v1548_v13  ;;  %v1290_v49 = vsel %vm123_vm1, %v5499_v45, 0.0 }
 0xa23   :  { %v1550_v28 = vsel %vm123_vm1, %v5501_v35, 0.0  ;;  %v5508_v51 = vpop.eup %4777  ;;  %4781 = vpow2.f32 %v1780_v50 }
 0xa24   :  { %v1667_v33 = vsel %vm123_vm1, %v5508_v51, 0.0  ;;  %4783 = vpow2.f32 %v1782_v56 }
 0xa25   :  { %v1660_v12 = vpop.xlane.xlu2 %1659 }
 0xa26   :  { %v1662_v20 = vsub.f32 %v5462_v31, %v1660_v12 }
 0xa28   :  { %v5510_v54 = vpop.eup %4779  ;;  %v1665_v44 = vmul.f32 1.442695, %v1662_v20 }
 0xa29   :  { %v1553_v55 = vsel %vm123_vm1, %v5510_v54, 0.0  ;;  %v5519_v59 = vpop.eup %4781 }
 0xa2a   :  { %1551 = vadd.xlane.f32.xlu2 %v1550_v28  ;;  %1291 = vadd.xlane.f32.xlu1 %v1290_v49  ;;  %v1784_v60 = vsel %vm123_vm1, %v5519_v59, 0.0  ;;  %v5523_v15 = vpop.eup %4783  ;;  %4785 = vpow2.f32 %v1665_v44 }
 0xa2b   :  { %v1787_v10 = vsel %vm123_vm1, %v5523_v15, 0.0 }
 0xa2e   :  { %1469 = vrot.lane.b32.xlu0 %v5361_v61, %s4983_s15 }
 0xa30   :  { %v5532_v16 = vpop.eup %4785 }
 0xa31   :  { %v1670_v0 = vsel %vm123_vm1, %v5532_v16, 0.0 }
 0xa32   :  { %1668 = vadd.xlane.f32.xlu2 %v1667_v33  ;;  %1554 = vadd.xlane.f32.xlu1 %v1553_v55 }
 0xa3a   :  { %1785 = vadd.xlane.f32.xlu1 %v1784_v60 }
 0xa42   :  { %1788 = vadd.xlane.f32.xlu1 %v1787_v10 }
 0xa4a   :  { %1586 = vrot.lane.b32.xlu2 %v5361_v61, %s4984_s16 }
 0xa52   :  { %1820 = vrot.lane.b32.xlu2 %v5361_v61, %s4987_s25 }
 0xa53   :  { %v1232_v1 = vpop.f32.mrf.mxu3 }
 0xa58   :  { %1671 = vadd.xlane.f32.xlu0 %v1670_v0 }
 0xa5b   :  { %1703 = vrot.lane.b32.xlu1 %v5361_v61, %s4989_s27  ;;  %v1235_v31 = vpop.f32.mrf.mxu3 }
 0xa63   :  { %1365 = vrot.lane.b32.xlu1 %v1232_v1, %s4990_s28 }
 0xa6b   :  { %1367 = vrot.lane.b32.xlu1 %v1235_v31, %s4990_s28 }
 0xa85   :  { %v1055_v3 = vpop.xlane.xlu0 %1054 }
 0xa86   :  { %4787 = vrcp.f32 %v1055_v3  ;;  %v1070_v61 = vand.u32 2147483648, %v1055_v3  ;;  %vm1064_vm3 = vweird.f32 %v1055_v3  ;;  %v1068_v19 = vand.u32 2147483647, %v1055_v3 }
 0xa88   :  { %v1071_v32 = vor.u32 1.1754944e-38, %v1070_v61  ;;  %vm1069_vm5 = vcmp.eq.f32.partialorder %v1068_v19, 8.507059e+37 }
 0xa8c   :  { %v4788_v5 = vpop.eup %4787 }
 0xa8d   :  { %v1060_v57 = vmul.f32 %v4788_v5, %v1055_v3  ;;  %v5540_v34 = vpop.xlane.xlu0 %1437  ;;  %v1435_v8 = vpop.xlane.xlu2 %1434  ;;  %vm1065_vm15 = vweird.f32 %v4788_v5 }
 0xa8e   :  { %4789 = vrcp.f32 %v5540_v34  ;;  %vm1066_vm4 = vmor %vm1064_vm3, %vm1065_vm15  ;;  %v1450_v6 = vand.u32 2147483648, %v1435_v8  ;;  %v1448_v39 = vand.u32 2147483647, %v1435_v8  ;;  %vm1444_vm8 = vweird.f32 %v1435_v8 }
 0xa8f   :  { %v1061_v9 = vsub.f32 1.0, %v1060_v57  ;;  %4791 = vrcp.f32 %v1435_v8  ;;  %v1465_v56 = vand.u32 2147483648, %v5540_v34  ;;  %vm1459_vm12 = vweird.f32 %v5540_v34 }
 0xa90   :  { %v1451_v28 = vor.u32 1.1754944e-38, %v1450_v6  ;;  %vm1449_vm10 = vcmp.eq.f32.partialorder %v1448_v39, 8.507059e+37  ;;  %v1463_v10 = vand.u32 2147483647, %v5540_v34 }
 0xa91   :  { %v1062_v58 = vmul.f32 %v4788_v5, %v1061_v9 }
 0xa92   :  { %vm1464_vm15 = vcmp.eq.f32.partialorder %v1463_v10, 8.507059e+37 }
 0xa93   :  { %v1063_v21 = vadd.f32 %v4788_v5, %v1062_v58 }
 0xa94   :  { %v5543_v14 = vpop.eup %4789 }
 0xa95   :  { %v4792_v63 = vpop.eup %4791  ;;  %v1067_v18 = vsel %vm1066_vm4, %v4788_v5, %v1063_v21  ;;  %v1455_v22 = vmul.f32 %v5543_v14, %v5540_v34  ;;  %v5547_v26 = vpop.xlane.xlu1 %1288  ;;  %vm1460_vm11 = vweird.f32 %v5543_v14  ;;  %v1466_v5 = vor.u32 1.1754944e-38, %v1465_v56 }
 0xa96   :  { %v1058_v24 = vpop.xlane.xlu2 %1057  ;;  %v1440_v29 = vmul.f32 %v4792_v63, %v1435_v8  ;;  %4793 = vrcp.f32 %v5547_v26  ;;  %v1072_v37 = vsel %vm1069_vm5, %v1071_v32, %v1067_v18  ;;  %vm1445_vm7 = vweird.f32 %v4792_v63  ;;  %vm5568_vm13 = vmor %vm1459_vm12, %vm1460_vm11 }
 0xa97   :  { %v1456_v30 = vsub.f32 1.0, %v1455_v22  ;;  %4795 = vrcp.f32 %v1058_v24  ;;  %v1073_v38 = vmul.f32 %v5473_v11, %v1072_v37  ;;  %vm1446_vm9 = vmor %vm1444_vm8, %vm1445_vm7  ;;  %v1083_v44 = vand.u32 2147483647, %v1058_v24 }
 0xa98   :  { %v1441_v36 = vsub.f32 1.0, %v1440_v29  ;;  %v1085_v0 = vand.u32 2147483648, %v1058_v24  ;;  %vm1079_vm3 = vweird.f32 %v1058_v24  ;;  %vm1298_vm8 = vweird.f32 %v5547_v26 }
 0xa99   :  { %4457 = vmatmul.msk.f32.vlgmr.msra.gmra.mxu1 %vm123_vm1, %v1073_v38  ;;  %v1457_v40 = vmul.f32 %v5543_v14, %v1456_v30  ;;  %vm1084_vm5 = vcmp.eq.f32.partialorder %v1083_v44, 8.507059e+37 }
 0xa9a   :  { %v1442_v27 = vmul.f32 %v4792_v63, %v1441_v36  ;;  %v1086_v58 = vor.u32 1.1754944e-38, %v1085_v0 }
 0xa9b   :  { %v1458_v50 = vadd.f32 %v5543_v14, %v1457_v40 }
 0xa9c   :  { %v5553_v41 = vpop.eup %4793  ;;  %v1443_v42 = vadd.f32 %v4792_v63, %v1442_v27 }
 0xa9d   :  { %v4796_v43 = vpop.eup %4795  ;;  %v1294_v13 = vmul.f32 %v5553_v41, %v5547_v26  ;;  %v5557_v47 = vpop.xlane.xlu1 %1291  ;;  %v1462_v1 = vsel %vm5568_vm13, %v5543_v14, %v1458_v50  ;;  %vm1299_vm7 = vweird.f32 %v5553_v41 }
 0xa9e   :  { %v5559_v11 = vpop.xlane.xlu2 %1551  ;;  %v1447_v23 = vsel %vm1446_vm9, %v4792_v63, %v1443_v42  ;;  %v1075_v49 = vmul.f32 %v4796_v43, %v1058_v24  ;;  %4797 = vrcp.f32 %v5557_v47  ;;  %vm1080_vm14 = vweird.f32 %v4796_v43  ;;  %vm1300_vm9 = vmor %vm1298_vm8, %vm1299_vm7 }
 0xa9f   :  { %v1295_v53 = vsub.f32 1.0, %v1294_v13  ;;  %v1452_v55 = vsel %vm1449_vm10, %v1451_v28, %v1447_v23  ;;  %4799 = vrcp.f32 %v5559_v11  ;;  %v1467_v9 = vsel %vm1464_vm15, %v1466_v5, %v1462_v1  ;;  %vm1081_vm4 = vmor %vm1079_vm3, %vm1080_vm14 }
 0xaa0   :  { %v1076_v7 = vsub.f32 1.0, %v1075_v49  ;;  %v1470_v33 = vpop.permute.xlu0 %1469  ;;  %v1453_v60 = vmul.f32 %v5482_v4, %v1452_v55  ;;  %v1304_v63 = vand.u32 2147483648, %v5547_v26  ;;  %v1468_v22 = vmul.f32 %v5478_v25, %v1467_v9 }
 0xaa1   :  { %1493 = vmatpush.msrb.mxu3 %v1470_v33  ;;  %v1296_v31 = vmul.f32 %v5553_v41, %v1295_v53  ;;  %v1302_v24 = vand.u32 2147483647, %v5547_v26  ;;  %v1319_v39 = vand.u32 2147483648, %v5557_v47  ;;  %vm1313_vm12 = vweird.f32 %v5557_v47 }
 0xaa2   :  { %v1077_v12 = vmul.f32 %v4796_v43, %v1076_v7  ;;  %4472 = vmatmul.msk.f32.vlgmr.msrb.gmra.mxu3 %vm123_vm1, %v1453_v60  ;;  %v1305_v25 = vor.u32 1.1754944e-38, %v1304_v63  ;;  %v1567_v55 = vand.u32 2147483648, %v5559_v11  ;;  %vm1561_vm3 = vweird.f32 %v5559_v11 }
 0xaa3   :  { %v1297_v61 = vadd.f32 %v5553_v41, %v1296_v31  ;;  %vm1303_vm10 = vcmp.eq.f32.partialorder %v1302_v24, 8.507059e+37  ;;  %v1320_v49 = vor.u32 1.1754944e-38, %v1319_v39  ;;  %v1565_v56 = vand.u32 2147483647, %v5559_v11 }
 0xaa4   :  { %v4798_v4 = vpop.eup %4797  ;;  %v1078_v3 = vadd.f32 %v4796_v43, %v1077_v12  ;;  %v1568_v0 = vor.u32 1.1754944e-38, %v1567_v55 }
 0xaa5   :  { %v1309_v57 = vmul.f32 %v4798_v4, %v5557_v47  ;;  %v5579_v34 = vpop.xlane.xlu1 %1554  ;;  %v5585_v14 = vpop.eup %4799  ;;  %v1301_v29 = vsel %vm1300_vm9, %v5553_v41, %v1297_v61  ;;  %vm1314_vm11 = vweird.f32 %v4798_v4  ;;  %v1317_v41 = vand.u32 2147483647, %v5557_v47 }
 0xaa6   :  { %v5581_v8 = vpop.xlane.xlu2 %1668  ;;  %v1082_v19 = vsel %vm1081_vm4, %v4796_v43, %v1078_v3  ;;  %4801 = vrcp.f32 %v5579_v34  ;;  %v1557_v30 = vmul.f32 %v5585_v14, %v5559_v11  ;;  %vm1315_vm13 = vmor %vm1313_vm12, %vm1314_vm11  ;;  %vm1562_vm15 = vweird.f32 %v5585_v14 }
 0xaa7   :  { %v1310_v21 = vsub.f32 1.0, %v1309_v57  ;;  %v1087_v18 = vsel %vm1084_vm5, %v1086_v58, %v1082_v19  ;;  %4803 = vrcp.f32 %v5581_v8  ;;  %vm1318_vm14 = vcmp.eq.f32.partialorder %v1317_v41, 8.507059e+37  ;;  %vm1563_vm4 = vmor %vm1561_vm3, %vm1562_vm15 }
 0xaa8   :  { %v1088_v32 = vmul.f32 %v5489_v2, %v1087_v18  ;;  %v1306_v2 = vsel %vm1303_vm10, %v1305_v25, %v1301_v29  ;;  %v1558_v38 = vsub.f32 1.0, %v1557_v30  ;;  %vm1566_vm5 = vcmp.eq.f32.partialorder %v1565_v56, 8.507059e+37 }
 0xaa9   :  { %v1311_v36 = vmul.f32 %v4798_v4, %v1310_v21  ;;  %v1307_v40 = vmul.f32 %v5492_v17, %v1306_v2  ;;  %v1582_v3 = vand.u32 2147483648, %v5579_v34  ;;  %vm1576_vm8 = vweird.f32 %v5579_v34 }
 0xaaa   :  { %4473 = vmatmul.msk.f32.gmra.mxu3 %vm123_vm1, %v1468_v22  ;;  %4458 = vmatmul.msk.f32.gmra.mxu1 %vm123_vm1, %v1088_v32  ;;  %v1559_v43 = vmul.f32 %v5585_v14, %v1558_v38  ;;  %v1580_v57 = vand.u32 2147483647, %v5579_v34  ;;  %v1684_v58 = vand.u32 2147483648, %v5581_v8  ;;  %vm1678_vm11 = vweird.f32 %v5581_v8 }
 0xaab   :  { %v1312_v27 = vadd.f32 %v4798_v4, %v1311_v36 }
 0xaac   :  { %v4802_v6 = vpop.eup %4801  ;;  %v1560_v50 = vadd.f32 %v5585_v14, %v1559_v43  ;;  %v1685_v18 = vor.u32 1.1754944e-38, %v1684_v58 }
 0xaad   :  { %v5599_v26 = vpop.xlane.xlu1 %1785  ;;  %v5606_v42 = vpop.eup %4803  ;;  %v1572_v13 = vmul.f32 %v4802_v6, %v5579_v34  ;;  %v1316_v23 = vsel %vm1315_vm13, %v4798_v4, %v1312_v27  ;;  %vm1577_vm7 = vweird.f32 %v4802_v6  ;;  %vm1581_vm13 = vcmp.eq.f32.partialorder %v1580_v57, 8.507059e+37 }
 0xaae   :  { %v1587_v37 = vpop.permute.xlu2 %1586  ;;  %4805 = vrcp.f32 %v5599_v26  ;;  %v1674_v17 = vmul.f32 %v5606_v42, %v5581_v8  ;;  %v1321_v47 = vsel %vm1318_vm14, %v1320_v49, %v1316_v23  ;;  %v1564_v12 = vsel %vm1563_vm4, %v5585_v14, %v1560_v50  ;;  %vm1578_vm10 = vmor %vm1576_vm8, %vm1577_vm7 }
 0xaaf   :  { %1610 = vmatpush.msra.mxu1 %v1587_v37  ;;  %v1573_v53 = vsub.f32 1.0, %v1572_v13  ;;  %v1322_v60 = vmul.f32 %v5499_v45, %v1321_v47  ;;  %v1569_v4 = vsel %vm1566_vm5, %v1568_v0, %v1564_v12  ;;  %vm1679_vm9 = vweird.f32 %v5606_v42 }
 0xab0   :  { %v1675_v10 = vsub.f32 1.0, %v1674_v17  ;;  %v1570_v5 = vmul.f32 %v5501_v35, %v1569_v4  ;;  %v1682_v35 = vand.u32 2147483647, %v5581_v8  ;;  %v1583_v14 = vor.u32 1.1754944e-38, %v1582_v3  ;;  %vm1680_vm12 = vmor %vm1678_vm11, %vm1679_vm9 }
 0xab1   :  { %v1574_v44 = vmul.f32 %v4802_v6, %v1573_v53  ;;  %v1801_v32 = vand.u32 2147483648, %v5599_v26  ;;  %vm1795_vm3 = vweird.f32 %v5599_v26  ;;  %v1799_v29 = vand.u32 2147483647, %v5599_v26 }
 0xab2   :  { %4467 = vmatmul.msk.f32.vlgmr.msrb.gmra.mxu1 %vm123_vm1, %v1307_v40  ;;  %v1676_v1 = vmul.f32 %v5606_v42, %v1675_v10  ;;  %vm1683_vm15 = vcmp.eq.f32.partialorder %v1682_v35, 8.507059e+37 }
 0xab3   :  { %v1575_v31 = vadd.f32 %v4802_v6, %v1574_v44  ;;  %v1802_v2 = vor.u32 1.1754944e-38, %v1801_v32  ;;  %vm1800_vm5 = vcmp.eq.f32.partialorder %v1799_v29, 8.507059e+37 }
 0xab4   :  { %v5617_v33 = vpop.eup %4805  ;;  %v1677_v9 = vadd.f32 %v5606_v42, %v1676_v1 }
 0xab5   :  { %v5615_v7 = vpop.xlane.xlu1 %1788  ;;  %v1791_v20 = vmul.f32 %v5617_v33, %v5599_v26  ;;  %v1579_v19 = vsel %vm1578_vm10, %v4802_v6, %v1575_v31  ;;  %vm1796_vm14 = vweird.f32 %v5617_v33 }
 0xab6   :  { %v1821_v28 = vpop.permute.xlu2 %1820  ;;  %4807 = vrcp.f32 %v5615_v7  ;;  %v1681_v34 = vsel %vm1680_vm12, %v5606_v42, %v1677_v9  ;;  %v1584_v63 = vsel %vm1581_vm13, %v1583_v14, %v1579_v19  ;;  %vm1797_vm4 = vmor %vm1795_vm3, %vm1796_vm14  ;;  %vm1810_vm8 = vweird.f32 %v5615_v7 }
 0xab7   :  { %1844 = vmatpush.msrb.mxu1 %v1821_v28  ;;  %v1792_v11 = vsub.f32 1.0, %v1791_v20  ;;  %v1585_v8 = vmul.f32 %v5510_v54, %v1584_v63  ;;  %v1686_v30 = vsel %vm1683_vm15, %v1685_v18, %v1681_v34  ;;  %v1816_v54 = vand.u32 2147483648, %v5615_v7  ;;  %v4946_v63 = vld [vmem:[%s6584_s0] sm:$0xff] }
 0xab8   :  { %v1687_v27 = vmul.f32 %v5508_v51, %v1686_v30  ;;  %v1814_v41 = vand.u32 2147483647, %v5615_v7 }
 0xab9   :  { %v1793_v61 = vmul.f32 %v5617_v33, %v1792_v11  ;;  %v1817_v13 = vor.u32 1.1754944e-38, %v1816_v54 }
 0xaba   :  { %4468 = vmatmul.msk.f32.gmra.mxu1 %vm123_vm1, %v1322_v60  ;;  %vm1815_vm10 = vcmp.eq.f32.partialorder %v1814_v41, 8.507059e+37 }
 0xabb   :  { %v1794_v22 = vadd.f32 %v5617_v33, %v1793_v61  ;;  %v4945_v61 = vld [vmem:[%s6584_s0 + $0x8] sm:$0xff] }
 0xabc   :  { %v4808_v45 = vpop.eup %4807 }
 0xabd   :  { %v1806_v21 = vmul.f32 %v4808_v45, %v5615_v7  ;;  %v1798_v25 = vsel %vm1797_vm4, %v5617_v33, %v1794_v22  ;;  %vm1811_vm7 = vweird.f32 %v4808_v45 }
 0xabe   :  { %v1803_v26 = vsel %vm1800_vm5, %v1802_v2, %v1798_v25  ;;  %vm1812_vm9 = vmor %vm1810_vm8, %vm1811_vm7 }
 0xabf   :  { %v1807_v24 = vsub.f32 1.0, %v1806_v21  ;;  %v1804_v40 = vmul.f32 %v5519_v59, %v1803_v26 }
 0xac1   :  { %v1808_v37 = vmul.f32 %v4808_v45, %v1807_v24 }
 0xac2   :  { %4477 = vmatmul.msk.f32.vlgmr.msra.gmra.mxu1 %vm123_vm1, %v1570_v5 }
 0xac3   :  { %v1809_v6 = vadd.f32 %v4808_v45, %v1808_v37 }
 0xac5   :  { %v1813_v51 = vsel %vm1812_vm9, %v4808_v45, %v1809_v6 }
 0xac6   :  { %v1818_v28 = vsel %vm1815_vm10, %v1817_v13, %v1813_v51 }
 0xac7   :  { %v1819_v59 = vmul.f32 %v5523_v15, %v1818_v28 }
 0xaca   :  { %4478 = vmatmul.msk.f32.gmra.mxu1 %vm123_vm1, %v1585_v8 }
 0xacb   :  { %v1672_v36 = vpop.xlane.xlu0 %1671 }
 0xacc   :  { %4809 = vrcp.f32 %v1672_v36  ;;  %v1699_v23 = vand.u32 2147483648, %v1672_v36  ;;  %v1697_v17 = vand.u32 2147483647, %v1672_v36  ;;  %vm1693_vm12 = vweird.f32 %v1672_v36 }
 0xacd   :  { %v1704_v38 = vpop.permute.xlu1 %1703 }
 0xace   :  { %1727 = vmatpush.msra.mxu3 %v1704_v38  ;;  %v1700_v50 = vor.u32 1.1754944e-38, %v1699_v23  ;;  %vm1698_vm14 = vcmp.eq.f32.partialorder %v1697_v17, 8.507059e+37 }
 0xacf   :  { %4482 = vmatmul.msk.f32.vlgmr.msra.gmra.mxu3 %vm123_vm1, %v1687_v27 }
 0xad2   :  { %v4810_v39 = vpop.eup %4809  ;;  %4487 = vmatmul.msk.f32.vlgmr.msrb.gmra.mxu1 %vm123_vm1, %v1804_v40 }
 0xad3   :  { %v1689_v42 = vmul.f32 %v4810_v39, %v1672_v36  ;;  %vm1694_vm11 = vweird.f32 %v4810_v39  ;;  %v4947_v36 = vld [vmem:[%s6584_s0 + $0x10] sm:$0xff] }
 0xad4   :  { %vm1695_vm13 = vmor %vm1693_vm12, %vm1694_vm11 }
 0xad5   :  { %v1690_v43 = vsub.f32 1.0, %v1689_v42  ;;  %v1366_v31 = vpop.permute.xlu1 %1365  ;;  %v4996_v42 = vmov 32.0  }
 0xad6   :  { %4811 = vrcp.f32 %v4996_v42 }
 0xad7   :  { %v1691_v49 = vmul.f32 %v4810_v39, %v1690_v43 }
 0xad9   :  { %v1692_v47 = vadd.f32 %v4810_v39, %v1691_v49 }
 0xada   :  { %4488 = vmatmul.msk.f32.gmra.mxu1 %vm123_vm1, %v1819_v59 }
 0xadb   :  { %v1696_v53 = vsel %vm1695_vm13, %v4810_v39, %v1692_v47  ;;  %v4948_v39 = vld [vmem:[%s6584_s0 + $0x18] sm:$0xff] }
 0xadc   :  { %v1701_v7 = vsel %vm1698_vm14, %v1700_v50, %v1696_v53  ;;  %v4812_v51 = vpop.eup %4811 }
 0xadd   :  { %v1702_v33 = vmul.f32 %v5532_v16, %v1701_v7  ;;  %v1368_v5 = vpop.permute.xlu1 %1367  ;;  %v1891_v43 = vmul.f32 32.0, %v4812_v51  ;;  %vm1895_vm15 = vweird.f32 %v4812_v51 }
 0xadf   :  { %4483 = vmatmul.msk.f32.gmra.mxu3 %vm123_vm1, %v1702_v33  ;;  %v1892_v13 = vsub.f32 1.0, %v1891_v43 }
 0xae1   :  { %v1893_v23 = vmul.f32 %v4812_v51, %v1892_v13 }
 0xae3   :  { %v1894_v28 = vadd.f32 %v4812_v51, %v1893_v23 }
 0xae5   :  { %v5701_v49 = vsel %vm1895_vm15, %v4812_v51, %v1894_v28 }
 0xb16   :  { %v1115_v55 = vpop.f32.mrf.mxu1 }
 0xb17   :  { %1357 = vrot.lane.b32.xlu2 %v1115_v55, %s4988_s26 }
 0xb25   :  { %v1495_v10 = vpop.f32.mrf.mxu3 }
 0xb27   :  { %v1118_v56 = vpop.f32.mrf.mxu1 }
 0xb28   :  { %1359 = vrot.lane.b32.xlu2 %v1118_v56, %s4988_s26 }
 0xb2d   :  { %v1498_v16 = vpop.f32.mrf.mxu3 }
 0xb2f   :  { %v1349_v60 = vpop.f32.mrf.mxu1 }
 0xb30   :  { %1373 = vrot.lane.b32.xlu0 %v1349_v60, %s4991_s10 }
 0xb37   :  { %v1352_v15 = vpop.f32.mrf.mxu1 }
 0xb38   :  { %1375 = vrot.lane.b32.xlu2 %v1352_v15, %s4991_s10 }
 0xb3f   :  { %v1612_v12 = vpop.f32.mrf.mxu1 }
 0xb40   :  { %1854 = vrot.lane.b32.xlu1 %v1612_v12, %s4988_s26 }
 0xb47   :  { %v1615_v20 = vpop.f32.mrf.mxu1 }
 0xb48   :  { %1856 = vrot.lane.b32.xlu0 %v1615_v20, %s4988_s26 }
 0xb4f   :  { %v1846_v44 = vpop.f32.mrf.mxu1 }
 0xb50   :  { %1870 = vrot.lane.b32.xlu1 %v1846_v44, %s4991_s10 }
 0xb52   :  { %v1729_v0 = vpop.f32.mrf.mxu3 }
 0xb53   :  { %1862 = vrot.lane.b32.xlu2 %v1729_v0, %s4990_s28 }
 0xb57   :  { %v1849_v1 = vpop.f32.mrf.mxu1 }
 0xb58   :  { %1872 = vrot.lane.b32.xlu1 %v1849_v1, %s4991_s10 }
 0xb62   :  { %v1732_v4 = vpop.f32.mrf.mxu3 }
 0xb63   :  { %1864 = vrot.lane.b32.xlu2 %v1732_v4, %s4990_s28 }
 0xb71   :  { %v1358_v11 = vpop.permute.xlu2 %1357 }
 0xb72   :  { %v1379_v35 = vsel %vm123_vm1, %v5402_v48, %v1358_v11 }
 0xb82   :  { %v1360_v45 = vpop.permute.xlu2 %1359 }
 0xb83   :  { %v1380_v3 = vsel %vm123_vm1, %v5404_v52, %v1360_v45  ;;  %v1381_v52 = vsel %vm158_vm2, %v1379_v35, %v1366_v31  ;;  %v4949_v31 = vld [vmem:[%s6585_s1] sm:$0xff] }
 0xb84   :  { %v1382_v57 = vsel %vm158_vm2, %v1380_v3, %v1368_v5  ;;  %v5727_v45 = vadd.f32 %v4949_v31, %v5257_v62  ;;  %v4950_v5 = vld [vmem:[%s6585_s1 + $0x8] sm:$0xff]  ;;  %v2043_v35 = vld [vmem:[%s6590_s6] sm:$0xff] }
 0xb86   :  { %v1884_v3 = vsel %vm46_vm0, %v5727_v45, 0.0 }
 0xb92   :  { %v1376_v9 = vpop.permute.xlu2 %1375 }
 0xb93   :  { %v1384_v58 = vsel %vm487_vm6, %v1382_v57, %v1376_v9  ;;  %v5735_v57 = vadd.f32 %v4950_v5, %v5327_v46  ;;  %v2044_v46 = vld [vmem:[%s6590_s6 + $0x8] sm:$0xff] }
 0xb94   :  { %v1942_v21 = vadd.f32 %v4945_v61, %v1384_v58 }
 0xb95   :  { %v1887_v9 = vsel %vm46_vm0, %v5735_v57, 0.0 }
 0xb96   :  { %v1948_v19 = vsel %vm46_vm0, %v1942_v21, 0.0 }
 0xb97   :  { %1949 = vadd.xlane.f32.xlu2 %v1948_v19  ;;  %v2045_v19 = vld [vmem:[%s6590_s6 + $0x10] sm:$0xff] }
 0xba2   :  { %v1374_v14 = vpop.permute.xlu0 %1373 }
 0xba3   :  { %v1383_v34 = vsel %vm487_vm6, %v1381_v52, %v1374_v14 }
 0xba4   :  { %v1941_v18 = vadd.f32 %v4946_v63, %v1383_v34 }
 0xba6   :  { %v1945_v22 = vsel %vm46_vm0, %v1941_v18, 0.0 }
 0xba7   :  { %1946 = vadd.xlane.f32.xlu0 %v1945_v22 }
 0xbad   :  { %v1863_v32 = vpop.permute.xlu2 %1862 }
 0xbb2   :  { %v1855_v24 = vpop.permute.xlu1 %1854 }
 0xbb3   :  { %v1876_v29 = vsel %vm123_vm1, %v1495_v10, %v1855_v24 }
 0xbb4   :  { %v1878_v48 = vsel %vm158_vm2, %v1876_v29, %v1863_v32 }
 0xbba   :  { %v1857_v37 = vpop.permute.xlu0 %1856 }
 0xbbb   :  { %v1877_v27 = vsel %vm123_vm1, %v1498_v16, %v1857_v37 }
 0xbbd   :  { %v1865_v38 = vpop.permute.xlu2 %1864 }
 0xbbe   :  { %v1879_v26 = vsel %vm158_vm2, %v1877_v27, %v1865_v38  ;;  %v5756_v38 = vld [vmem:[%s6592_s8 + $0x8] sm:$0xff]  ;;  %v5761_v27 = vld [vmem:[%s6592_s8] sm:$0xff] }
 0xbc2   :  { %v1871_v8 = vpop.permute.xlu1 %1870 }
 0xbc3   :  { %v1880_v30 = vsel %vm487_vm6, %v1878_v48, %v1871_v8 }
 0xbc4   :  { %v1943_v25 = vadd.f32 %v4947_v36, %v1880_v30 }
 0xbc6   :  { %v1951_v2 = vsel %vm46_vm0, %v1943_v25, 0.0 }
 0xbc7   :  { %1952 = vadd.xlane.f32.xlu1 %v1951_v2 }
 0xbca   :  { %v1873_v6 = vpop.permute.xlu1 %1872 }
 0xbcb   :  { %v1881_v54 = vsel %vm487_vm6, %v1879_v26, %v1873_v6  ;;  %v5764_v26 = vperm.slane %v5761_v27, 7 }
 0xbcc   :  { %v1944_v40 = vadd.f32 %v4948_v39, %v1881_v54 }
 0xbce   :  { %v1954_v41 = vsel %vm46_vm0, %v1944_v40, 0.0 }
 0xbcf   :  { %1955 = vadd.xlane.f32.xlu0 %v1954_v41 }
 0xc0a   :  { %v1950_v17 = vpop.xlane.xlu2 %1949 }
 0xc0b   :  { %v1958_v47 = vmul.f32 %v1950_v17, %v5701_v49  ;;  %v2100_v17 = vld [vmem:[%s6591_s7 + $0x38] sm:$0xff] }
 0xc0c   :  { %2123 = vmatpush.msrb.mxu3 %v2100_v17 }
 0xc0d   :  { %v5704_v59 = vsub.f32 %v1942_v21, %v1958_v47  ;;  %v2046_v21 = vld [vmem:[%s6590_s6 + $0x18] sm:$0xff]  ;;  %v2099_v47 = vld [vmem:[%s6591_s7 + $0x30] sm:$0xff] }
 0xc0e   :  { %2072 = vmatpush.msra.mxu2 %v2046_v21  ;;  %2124 = vmatpush.msrb.mxu3 %v2099_v47 }
 0xc0f   :  { %v1966_v50 = vmul.f32 %v5704_v59, %v5704_v59 }
 0xc10   :  { %2073 = vmatpush.msra.mxu2 %v2045_v19 }
 0xc11   :  { %v1972_v53 = vsel %vm46_vm0, %v1966_v50, 0.0 }
 0xc12   :  { %1973 = vadd.xlane.f32.xlu1 %v1972_v53  ;;  %2074 = vmatpush.msra.mxu2 %v2044_v46 }
 0xc14   :  { %2075 = vmatpush.msra.mxu2 %v2043_v35 }
 0xc1a   :  { %v1947_v7 = vpop.xlane.xlu0 %1946 }
 0xc1b   :  { %v1957_v33 = vmul.f32 %v1947_v7, %v5701_v49  ;;  %v2097_v7 = vld [vmem:[%s6591_s7 + $0x20] sm:$0xff] }
 0xc1d   :  { %v1961_v55 = vsub.f32 %v1941_v18, %v1957_v33 }
 0xc1f   :  { %v1965_v56 = vmul.f32 %v1961_v55, %v1961_v55 }
 0xc21   :  { %v1969_v60 = vsel %vm46_vm0, %v1965_v56, 0.0  ;;  %v2096_v56 = vld [vmem:[%s6591_s7 + $0x18] sm:$0xff] }
 0xc22   :  { %1970 = vadd.xlane.f32.xlu2 %v1969_v60 }
 0xc3a   :  { %v1953_v15 = vpop.xlane.xlu1 %1952 }
 0xc3b   :  { %v1959_v10 = vmul.f32 %v1953_v15, %v5701_v49 }
 0xc3d   :  { %v5712_v12 = vsub.f32 %v1943_v25, %v1959_v10 }
 0xc3f   :  { %v1967_v20 = vmul.f32 %v5712_v12, %v5712_v12 }
 0xc41   :  { %v1975_v16 = vsel %vm46_vm0, %v1967_v20, 0.0 }
 0xc42   :  { %1976 = vadd.xlane.f32.xlu0 %v1975_v16  ;;  %v1956_v44 = vpop.xlane.xlu0 %1955 }
 0xc43   :  { %v1960_v0 = vmul.f32 %v1956_v44, %v5701_v49 }
 0xc45   :  { %v5718_v1 = vsub.f32 %v1944_v40, %v1960_v0  ;;  %v5768_v40 = vperm.slane %v5756_v38, 0 }
 0xc47   :  { %v1968_v4 = vmul.f32 %v5718_v1, %v5718_v1 }
 0xc49   :  { %v1978_v11 = vsel %vm46_vm0, %v1968_v4, 0.0 }
 0xc4a   :  { %1979 = vadd.xlane.f32.xlu2 %v1978_v11 }
 0xc52   :  { %1885 = vadd.xlane.f32.xlu2 %v1884_v3 }
 0xc5a   :  { %1888 = vadd.xlane.f32.xlu2 %v1887_v9 }
 0xc85   :  { %v1974_v58 = vpop.xlane.xlu1 %1973 }
 0xc86   :  { %v1982_v61 = vmul.f32 %v1974_v58, %v5701_v49 }
 0xc88   :  { %v1986_v62 = vadd.f32 1e-05, %v1982_v61 }
 0xc8a   :  { %4813 = vrsqrt.f32 %v1986_v62  ;;  %vm2005_vm8 = vweird.f32 %v1986_v62 }
 0xc90   :  { %v4814_v52 = vpop.eup %4813 }
 0xc91   :  { %v2000_v18 = vmul.f32 %v4814_v52, %v1986_v62  ;;  %vm2006_vm4 = vweird.f32 %v4814_v52 }
 0xc92   :  { %vm2007_vm9 = vmor %vm2005_vm8, %vm2006_vm4 }
 0xc93   :  { %v2001_v22 = vmul.f32 %v4814_v52, %v2000_v18 }
 0xc95   :  { %v1971_v14 = vpop.xlane.xlu2 %1970  ;;  %v2002_v32 = vmul.f32 0.5, %v2001_v22 }
 0xc96   :  { %v1981_v34 = vmul.f32 %v1971_v14, %v5701_v49 }
 0xc97   :  { %v2003_v48 = vsub.f32 1.5, %v2002_v32  ;;  %v2094_v32 = vld [vmem:[%s6591_s7 + $0x8] sm:$0xff] }
 0xc98   :  { %v1985_v63 = vadd.f32 1e-05, %v1981_v34 }
 0xc99   :  { %v2004_v25 = vmul.f32 %v4814_v52, %v2003_v48 }
 0xc9a   :  { %4815 = vrsqrt.f32 %v1985_v63  ;;  %vm1995_vm5 = vweird.f32 %v1985_v63 }
 0xc9b   :  { %v2008_v54 = vsel %vm2007_vm9, %v4814_v52, %v2004_v25  ;;  %v4509_v25 = vld [vmem:[%s6588_s4 + $0x30] sm:$0xff] }
 0xc9c   :  { %v2030_v42 = vmul.f32 %v2008_v54, %v5704_v59  ;;  %v2098_v59 = vld [vmem:[%s6591_s7 + $0x28] sm:$0xff] }
 0xc9d   :  { %2125 = vmatpush.msrb.mxu3 %v2098_v59 }
 0xc9e   :  { %v2035_v51 = vmul.f32 %v5764_v26, %v2030_v42 }
 0xc9f   :  { %2126 = vmatpush.msrb.mxu3 %v2097_v7 }
 0xca0   :  { %v4816_v24 = vpop.eup %4815  ;;  %v5779_v28 = vadd.f32 %v5768_v40, %v2035_v51 }
 0xca1   :  { %v1990_v29 = vmul.f32 %v4816_v24, %v1985_v63  ;;  %vm1996_vm3 = vweird.f32 %v4816_v24  ;;  %2127 = vmatpush.msrb.mxu3 %v2096_v56 }
 0xca2   :  { %vm1997_vm7 = vmor %vm1995_vm5, %vm1996_vm3  ;;  %vm2102_vm3 = vcmask 523264  }
 0xca3   :  { %v1991_v8 = vmul.f32 %v4816_v24, %v1990_v29  ;;  %v2047_v29 = vperm.slane %v5761_v27, 3 }
 0xca5   :  { %v1992_v30 = vmul.f32 0.5, %v1991_v8 }
 0xca7   :  { %v1993_v36 = vsub.f32 1.5, %v1992_v30  ;;  %v4510_v30 = vld [vmem:[%s6588_s4 + $0x38] sm:$0xff] }
 0xca8   :  { %2320 = vmatpush.msra.mxu1 %v4510_v30 }
 0xca9   :  { %v1994_v37 = vmul.f32 %v4816_v24, %v1993_v36 }
 0xcaa   :  { %2321 = vmatpush.msra.mxu1 %v4509_v25 }
 0xcab   :  { %v1998_v2 = vsel %vm1997_vm7, %v4816_v24, %v1994_v37  ;;  %v2095_v24 = vld [vmem:[%s6591_s7 + $0x10] sm:$0xff]  ;;  %v4508_v37 = vld [vmem:[%s6588_s4 + $0x28] sm:$0xff] }
 0xcac   :  { %v2029_v6 = vmul.f32 %v1998_v2, %v1961_v55  ;;  %2128 = vmatpush.msrb.mxu3 %v2095_v24  ;;  %2322 = vmatpush.msra.mxu1 %v4508_v37  ;;  %v5869_v24 = vld [vmem:[%s6592_s8 + $0x10] sm:$0xff] }
 0xcae   :  { %v2034_v39 = vmul.f32 %v5764_v26, %v2029_v6  ;;  %2129 = vmatpush.msrb.mxu3 %v2094_v32 }
 0xcb0   :  { %v5771_v41 = vadd.f32 %v5768_v40, %v2034_v39 }
 0xcb2   :  { %4489 = vmatmul.msk.f32.vlgmr.msra.gmra.mxu2 %vm46_vm0, %v5771_v41 }
 0xcb5   :  { %v1977_v43 = vpop.xlane.xlu0 %1976 }
 0xcb6   :  { %v1983_v13 = vmul.f32 %v1977_v43, %v5701_v49 }
 0xcb8   :  { %v1987_v23 = vadd.f32 1e-05, %v1983_v13 }
 0xcba   :  { %4817 = vrsqrt.f32 %v1987_v23  ;;  %4490 = vmatmul.msk.f32.gmra.mxu2 %vm46_vm0, %v5779_v28  ;;  %vm2015_vm11 = vweird.f32 %v1987_v23 }
 0xcbd   :  { %v1980_v50 = vpop.xlane.xlu2 %1979 }
 0xcbe   :  { %v1984_v53 = vmul.f32 %v1980_v50, %v5701_v49 }
 0xcc0   :  { %v4818_v33 = vpop.eup %4817  ;;  %v1988_v55 = vadd.f32 1e-05, %v1984_v53 }
 0xcc1   :  { %v2010_v60 = vmul.f32 %v4818_v33, %v1987_v23  ;;  %vm2016_vm10 = vweird.f32 %v4818_v33 }
 0xcc2   :  { %4819 = vrsqrt.f32 %v1988_v55  ;;  %vm2017_vm12 = vmor %vm2015_vm11, %vm2016_vm10  ;;  %vm2025_vm14 = vweird.f32 %v1988_v55 }
 0xcc3   :  { %v2011_v15 = vmul.f32 %v4818_v33, %v2010_v60 }
 0xcc5   :  { %v2012_v10 = vmul.f32 0.5, %v2011_v15  ;;  %v1886_v20 = vpop.xlane.xlu2 %1885 }
 0xcc6   :  { %v1897_v16 = vmul.f32 %v5701_v49, %v1886_v20 }
 0xcc7   :  { %v2013_v44 = vsub.f32 1.5, %v2012_v10 }
 0xcc8   :  { %v4820_v0 = vpop.eup %4819  ;;  %v5801_v4 = vsub.f32 %v5727_v45, %v1897_v16  ;;  %v1938_v16 = vperm.slane %v5761_v27, 6 }
 0xcc9   :  { %v2014_v11 = vmul.f32 %v4818_v33, %v2013_v44  ;;  %v2020_v31 = vmul.f32 %v4820_v0, %v1988_v55  ;;  %vm2026_vm13 = vweird.f32 %v4820_v0  ;;  %v1935_v55 = vperm.slane %v5761_v27, 5 }
 0xcca   :  { %v1901_v3 = vmul.f32 %v5801_v4, %v5801_v4  ;;  %vm2027_vm15 = vmor %vm2025_vm14, %vm2026_vm13 }
 0xccb   :  { %v2018_v5 = vsel %vm2017_vm12, %v4818_v33, %v2014_v11  ;;  %v2021_v9 = vmul.f32 %v4820_v0, %v2020_v31 }
 0xccc   :  { %v1903_v58 = vsel %vm46_vm0, %v1901_v3, 0.0  ;;  %v2031_v61 = vmul.f32 %v2018_v5, %v5712_v12 }
 0xccd   :  { %v2022_v62 = vmul.f32 0.5, %v2021_v9  ;;  %1904 = vadd.xlane.f32.xlu2 %v1903_v58  ;;  %v1889_v21 = vpop.xlane.xlu2 %1888 }
 0xcce   :  { %v1898_v19 = vmul.f32 %v5701_v49, %v1889_v21  ;;  %v2036_v45 = vmul.f32 %v5764_v26, %v2031_v61 }
 0xccf   :  { %v2023_v46 = vsub.f32 1.5, %v2022_v62 }
 0xcd0   :  { %v5810_v35 = vsub.f32 %v5735_v57, %v1898_v19  ;;  %v5813_v14 = vadd.f32 %v5768_v40, %v2036_v45  ;;  %v2101_v45 = vperm.slane %v5761_v27, 4  ;;  %v2301_v27 = vperm.slane %v5869_v24, 1 }
 0xcd1   :  { %v2024_v52 = vmul.f32 %v4820_v0, %v2023_v46 }
 0xcd2   :  { %4491 = vmatmul.msk.f32.gmra.mxu2 %vm46_vm0, %v5813_v14  ;;  %v1902_v12 = vmul.f32 %v5810_v35, %v5810_v35 }
 0xcd3   :  { %v2028_v34 = vsel %vm2027_vm15, %v4820_v0, %v2024_v52 }
 0xcd4   :  { %v1906_v63 = vsel %vm46_vm0, %v1902_v12, 0.0  ;;  %v2032_v18 = vmul.f32 %v2028_v34, %v5718_v1  ;;  %v2093_v1 = vld [vmem:[%s6591_s7] sm:$0xff] }
 0xcd5   :  { %1907 = vadd.xlane.f32.xlu2 %v1906_v63  ;;  %2130 = vmatpush.msrb.mxu3 %v2093_v1 }
 0xcd6   :  { %v2037_v57 = vmul.f32 %v5764_v26, %v2032_v18  ;;  %v4507_v26 = vld [vmem:[%s6588_s4 + $0x20] sm:$0xff] }
 0xcd7   :  { %2323 = vmatpush.msra.mxu1 %v4507_v26 }
 0xcd8   :  { %v5823_v22 = vadd.f32 %v5768_v40, %v2037_v57 }
 0xcda   :  { %4492 = vmatmul.msk.f32.gmra.mxu2 %vm46_vm0, %v5823_v22 }
 0xd35   :  { %v2077_v8 = vpop.f32.mrf.mxu2 }
 0xd36   :  { %v2078_v48 = vadd.f32 %v2077_v8, %v2047_v29 }
 0xd38   :  { %v2089_v36 = vmax.f32 %v2078_v48, 0.0 }
 0xd3a   :  { %4493 = vmatmul.msk.f32.vlgmr.msrb.gmra.mxu3 %vm2102_vm3, %v2089_v36 }
 0xd3d   :  { %v2080_v2 = vpop.f32.mrf.mxu2 }
 0xd3e   :  { %v2081_v6 = vadd.f32 %v2080_v2, %v2047_v29 }
 0xd40   :  { %v2090_v54 = vmax.f32 %v2081_v6, 0.0  ;;  %v1905_v39 = vpop.xlane.xlu2 %1904 }
 0xd41   :  { %v1909_v40 = vmul.f32 %v1905_v39, %v5701_v49 }
 0xd42   :  { %4494 = vmatmul.msk.f32.gmra.mxu3 %vm2102_vm3, %v2090_v54 }
 0xd43   :  { %v1911_v42 = vadd.f32 1e-05, %v1909_v40 }
 0xd45   :  { %4821 = vrsqrt.f32 %v1911_v42  ;;  %vm1919_vm5 = vweird.f32 %v1911_v42 }
 0xd48   :  { %v1908_v51 = vpop.xlane.xlu2 %1907 }
 0xd49   :  { %v1910_v43 = vmul.f32 %v1908_v51, %v5701_v49 }
 0xd4b   :  { %v4822_v13 = vpop.eup %4821  ;;  %v1912_v23 = vadd.f32 1e-05, %v1910_v43 }
 0xd4c   :  { %v1914_v17 = vmul.f32 %v4822_v13, %v1911_v42  ;;  %vm1920_vm4 = vweird.f32 %v4822_v13 }
 0xd4d   :  { %4823 = vrsqrt.f32 %v1912_v23  ;;  %vm1921_vm7 = vmor %vm1919_vm5, %vm1920_vm4  ;;  %vm1929_vm9 = vweird.f32 %v1912_v23 }
 0xd4e   :  { %v1915_v47 = vmul.f32 %v4822_v13, %v1914_v17 }
 0xd50   :  { %v1916_v59 = vmul.f32 0.5, %v1915_v47 }
 0xd52   :  { %v1917_v50 = vsub.f32 1.5, %v1916_v59 }
 0xd53   :  { %v4824_v53 = vpop.eup %4823 }
 0xd54   :  { %v1918_v7 = vmul.f32 %v4822_v13, %v1917_v50  ;;  %v1924_v33 = vmul.f32 %v4824_v53, %v1912_v23  ;;  %vm1930_vm8 = vweird.f32 %v4824_v53 }
 0xd55   :  { %v2083_v56 = vpop.f32.mrf.mxu2  ;;  %vm1931_vm10 = vmor %vm1929_vm9, %vm1930_vm8 }
 0xd56   :  { %v1922_v60 = vsel %vm1921_vm7, %v4822_v13, %v1918_v7  ;;  %v1925_v15 = vmul.f32 %v4824_v53, %v1924_v33  ;;  %v2084_v10 = vadd.f32 %v2083_v56, %v2047_v29  ;;  %v4502_v33 = vld [vmem:[%s6587_s3 + $0x38] sm:$0xff]  ;;  %v4500_v56 = vld [vmem:[%s6587_s3 + $0x28] sm:$0xff] }
 0xd57   :  { %v1933_v20 = vmul.f32 %v1922_v60, %v5801_v4  ;;  %2279 = vmatpush.msra.mxu0 %v4502_v33  ;;  %v4499_v60 = vld [vmem:[%s6587_s3 + $0x20] sm:$0xff] }
 0xd58   :  { %v1926_v44 = vmul.f32 0.5, %v1925_v15  ;;  %v2091_v0 = vmax.f32 %v2084_v10, 0.0 }
 0xd59   :  { %v1936_v11 = vmul.f32 %v1935_v55, %v1933_v20 }
 0xd5a   :  { %v1927_v31 = vsub.f32 1.5, %v1926_v44  ;;  %4495 = vmatmul.msk.f32.gmra.mxu3 %vm2102_vm3, %v2091_v0 }
 0xd5b   :  { %v1939_v3 = vadd.f32 %v1938_v16, %v1936_v11 }
 0xd5c   :  { %v1928_v5 = vmul.f32 %v4824_v53, %v1927_v31 }
 0xd5d   :  { %v2086_v9 = vpop.f32.mrf.mxu2  ;;  %4511 = vmatmul.msk.f32.vlgmr.msra.gmra.mxu1 %vm46_vm0, %v1939_v3 }
 0xd5e   :  { %v1932_v58 = vsel %vm1931_vm10, %v4824_v53, %v1928_v5  ;;  %v2087_v61 = vadd.f32 %v2086_v9, %v2047_v29 }
 0xd5f   :  { %v1934_v4 = vmul.f32 %v1932_v58, %v5810_v35 }
 0xd60   :  { %v2092_v62 = vmax.f32 %v2087_v61, 0.0 }
 0xd61   :  { %v1937_v21 = vmul.f32 %v1935_v55, %v1934_v4  ;;  %v4501_v55 = vld [vmem:[%s6587_s3 + $0x30] sm:$0xff] }
 0xd62   :  { %4496 = vmatmul.msk.f32.gmra.mxu3 %vm2102_vm3, %v2092_v62  ;;  %2280 = vmatpush.msra.mxu0 %v4501_v55  ;;  %v2236_v62 = vperm.slane %v5756_v38, 1 }
 0xd63   :  { %v1940_v19 = vadd.f32 %v1938_v16, %v1937_v21 }
 0xd64   :  { %2281 = vmatpush.msra.mxu0 %v4500_v56 }
 0xd65   :  { %4512 = vmatmul.msk.f32.gmra.mxu1 %vm46_vm0, %v1940_v19 }
 0xd66   :  { %2282 = vmatpush.msra.mxu0 %v4499_v60 }
 0xdbd   :  { %v2132_v46 = vpop.f32.mrf.mxu3 }
 0xdbe   :  { %v2133_v52 = vadd.f32 %v2132_v46, %v2101_v45  ;;  %v2241_v46 = vperm.slane %v5756_v38, 2 }
 0xdc0   :  { %v2144_v12 = vadd.f32 %v2133_v52, %v5771_v41 }
 0xdc2   :  { %v2148_v34 = vsel %vm46_vm0, %v2144_v12, 0.0 }
 0xdc3   :  { %2149 = vadd.xlane.f32.xlu1 %v2148_v34 }
 0xdc5   :  { %v2135_v63 = vpop.f32.mrf.mxu3 }
 0xdc6   :  { %v2136_v18 = vadd.f32 %v2135_v63, %v2101_v45 }
 0xdc8   :  { %v2145_v35 = vadd.f32 %v2136_v18, %v5779_v28 }
 0xdca   :  { %v2151_v57 = vsel %vm46_vm0, %v2145_v35, 0.0 }
 0xdcb   :  { %2152 = vadd.xlane.f32.xlu0 %v2151_v57 }
 0xdda   :  { %v2325_v32 = vpop.f32.mrf.mxu1 }
 0xddb   :  { %v5874_v41 = vadd.f32 %v2325_v32, %v2301_v27 }
 0xddd   :  { %v2138_v1 = vpop.f32.mrf.mxu3  ;;  %2415 = vrot.lane.b32.xlu2 %v5874_v41, %s4982_s14 }
 0xdde   :  { %v2139_v28 = vadd.f32 %v2138_v1, %v2101_v45 }
 0xde0   :  { %v2146_v29 = vadd.f32 %v2139_v28, %v5813_v14 }
 0xde2   :  { %v2154_v8 = vsel %vm46_vm0, %v2146_v29, 0.0 }
 0xde3   :  { %2155 = vadd.xlane.f32.xlu1 %v2154_v8 }
 0xde5   :  { %v2141_v48 = vpop.f32.mrf.mxu3 }
 0xde6   :  { %v2142_v30 = vadd.f32 %v2141_v48, %v2101_v45 }
 0xde8   :  { %v2147_v36 = vadd.f32 %v2142_v30, %v5823_v22 }
 0xdea   :  { %v2157_v25 = vsel %vm46_vm0, %v2147_v36, 0.0 }
 0xdeb   :  { %2158 = vadd.xlane.f32.xlu0 %v2157_v25 }
 0xe36   :  { %v2150_v37 = vpop.xlane.xlu1 %2149 }
 0xe37   :  { %v2160_v2 = vmul.f32 %v2150_v37, %v5701_v49 }
 0xe39   :  { %v2164_v26 = vsub.f32 %v2144_v12, %v2160_v2 }
 0xe3b   :  { %v2168_v6 = vmul.f32 %v2164_v26, %v2164_v26 }
 0xe3d   :  { %v2172_v54 = vsel %vm46_vm0, %v2168_v6, 0.0 }
 0xe3e   :  { %v2153_v39 = vpop.xlane.xlu0 %2152  ;;  %2173 = vadd.xlane.f32.xlu1 %v2172_v54 }
 0xe3f   :  { %v2161_v14 = vmul.f32 %v2153_v39, %v5701_v49 }
 0xe41   :  { %v2165_v40 = vsub.f32 %v2145_v35, %v2161_v14 }
 0xe43   :  { %v2169_v42 = vmul.f32 %v2165_v40, %v2165_v40 }
 0xe45   :  { %v2175_v51 = vsel %vm46_vm0, %v2169_v42, 0.0 }
 0xe46   :  { %2176 = vadd.xlane.f32.xlu0 %v2175_v51 }
 0xe56   :  { %v2156_v22 = vpop.xlane.xlu1 %2155 }
 0xe57   :  { %v2162_v43 = vmul.f32 %v2156_v22, %v5701_v49 }
 0xe59   :  { %v5887_v13 = vsub.f32 %v2146_v29, %v2162_v43 }
 0xe5b   :  { %v2170_v23 = vmul.f32 %v5887_v13, %v5887_v13 }
 0xe5d   :  { %v2178_v17 = vsel %vm46_vm0, %v2170_v23, 0.0 }
 0xe5e   :  { %2179 = vadd.xlane.f32.xlu1 %v2178_v17  ;;  %v2159_v47 = vpop.xlane.xlu0 %2158 }
 0xe5f   :  { %v2163_v59 = vmul.f32 %v2159_v47, %v5701_v49 }
 0xe61   :  { %v5893_v50 = vsub.f32 %v2147_v36, %v2163_v59 }
 0xe63   :  { %v2171_v53 = vmul.f32 %v5893_v50, %v5893_v50 }
 0xe65   :  { %v2181_v7 = vsel %vm46_vm0, %v2171_v53, 0.0 }
 0xe66   :  { %2182 = vadd.xlane.f32.xlu0 %v2181_v7 }
 0xeb1   :  { %v2174_v15 = vpop.xlane.xlu1 %2173 }
 0xeb2   :  { %v2184_v10 = vmul.f32 %v2174_v15, %v5701_v49 }
 0xeb4   :  { %v2188_v20 = vadd.f32 1e-05, %v2184_v10 }
 0xeb6   :  { %4825 = vrsqrt.f32 %v2188_v20  ;;  %vm2198_vm12 = vweird.f32 %v2188_v20 }
 0xeb9   :  { %v2177_v16 = vpop.xlane.xlu0 %2176 }
 0xeba   :  { %v2185_v44 = vmul.f32 %v2177_v16, %v5701_v49 }
 0xebc   :  { %v4826_v0 = vpop.eup %4825  ;;  %v2189_v11 = vadd.f32 1e-05, %v2185_v44 }
 0xebd   :  { %v2193_v31 = vmul.f32 %v4826_v0, %v2188_v20  ;;  %vm2199_vm11 = vweird.f32 %v4826_v0 }
 0xebe   :  { %4827 = vrsqrt.f32 %v2189_v11  ;;  %vm2200_vm13 = vmor %vm2198_vm12, %vm2199_vm11  ;;  %vm2208_vm15 = vweird.f32 %v2189_v11 }
 0xebf   :  { %v2194_v3 = vmul.f32 %v4826_v0, %v2193_v31 }
 0xec1   :  { %v2195_v5 = vmul.f32 0.5, %v2194_v3 }
 0xec3   :  { %v2196_v9 = vsub.f32 1.5, %v2195_v5 }
 0xec4   :  { %v4828_v58 = vpop.eup %4827 }
 0xec5   :  { %v2197_v61 = vmul.f32 %v4826_v0, %v2196_v9  ;;  %v2203_v4 = vmul.f32 %v4828_v58, %v2189_v11  ;;  %vm2209_vm14 = vweird.f32 %v4828_v58 }
 0xec6   :  { %vm2210_vm4 = vmor %vm2208_vm15, %vm2209_vm14 }
 0xec7   :  { %v2201_v21 = vsel %vm2200_vm13, %v4826_v0, %v2197_v61  ;;  %v2204_v19 = vmul.f32 %v4828_v58, %v2203_v4 }
 0xec8   :  { %v2232_v45 = vmul.f32 %v2201_v21, %v2164_v26 }
 0xec9   :  { %v2205_v52 = vmul.f32 0.5, %v2204_v19  ;;  %v4952_v19 = vld [vmem:[%s6586_s2] ss:$0 sm:$0xff] }
 0xeca   :  { %v2237_v12 = vmul.f32 %v2236_v62, %v2232_v45 }
 0xecb   :  { %v2206_v34 = vsub.f32 1.5, %v2205_v52 }
 0xecc   :  { %v5914_v63 = vadd.f32 %v2241_v46, %v2237_v12 }
 0xecd   :  { %v2207_v18 = vmul.f32 %v4828_v58, %v2206_v34 }
 0xece   :  { %4503 = vmatmul.msk.f32.vlgmr.msra.gmra.mxu0 %vm46_vm0, %v5914_v63 }
 0xecf   :  { %v2211_v35 = vsel %vm2210_vm4, %v4828_v58, %v2207_v18 }
 0xed0   :  { %v2233_v57 = vmul.f32 %v2211_v35, %v2165_v40 }
 0xed1   :  { %v2180_v32 = vpop.xlane.xlu1 %2179 }
 0xed2   :  { %v2186_v1 = vmul.f32 %v2180_v32, %v5701_v49  ;;  %v2238_v28 = vmul.f32 %v2236_v62, %v2233_v57 }
 0xed4   :  { %v2190_v29 = vadd.f32 1e-05, %v2186_v1  ;;  %v5919_v38 = vadd.f32 %v2241_v46, %v2238_v28 }
 0xed6   :  { %4829 = vrsqrt.f32 %v2190_v29  ;;  %4504 = vmatmul.msk.f32.gmra.mxu0 %vm46_vm0, %v5919_v38  ;;  %vm2218_vm7 = vweird.f32 %v2190_v29 }
 0xed9   :  { %v2183_v8 = vpop.xlane.xlu0 %2182 }
 0xeda   :  { %v2187_v48 = vmul.f32 %v2183_v8, %v5701_v49 }
 0xedc   :  { %v4830_v30 = vpop.eup %4829  ;;  %v2191_v36 = vadd.f32 1e-05, %v2187_v48 }
 0xedd   :  { %v2213_v25 = vmul.f32 %v4830_v30, %v2190_v29  ;;  %vm2219_vm5 = vweird.f32 %v4830_v30 }
 0xede   :  { %4831 = vrsqrt.f32 %v2191_v36  ;;  %vm2220_vm8 = vmor %vm2218_vm7, %vm2219_vm5  ;;  %vm2228_vm10 = vweird.f32 %v2191_v36 }
 0xedf   :  { %v2214_v37 = vmul.f32 %v4830_v30, %v2213_v25 }
 0xee1   :  { %v2215_v2 = vmul.f32 0.5, %v2214_v37 }
 0xee3   :  { %v2216_v26 = vsub.f32 1.5, %v2215_v2 }
 0xee4   :  { %v4832_v6 = vpop.eup %4831 }
 0xee5   :  { %v2217_v54 = vmul.f32 %v4830_v30, %v2216_v26  ;;  %v2223_v39 = vmul.f32 %v4832_v6, %v2191_v36  ;;  %vm2229_vm9 = vweird.f32 %v4832_v6 }
 0xee6   :  { %vm2230_vm11 = vmor %vm2228_vm10, %vm2229_vm9 }
 0xee7   :  { %v2221_v14 = vsel %vm2220_vm8, %v4830_v30, %v2217_v54  ;;  %v2224_v40 = vmul.f32 %v4832_v6, %v2223_v39 }
 0xee8   :  { %v2234_v42 = vmul.f32 %v2221_v14, %v5887_v13  ;;  %v2254_v13 = vperm.slane %v5869_v24, 0 }
 0xee9   :  { %v2225_v51 = vmul.f32 0.5, %v2224_v40 }
 0xeea   :  { %v2239_v22 = vmul.f32 %v2236_v62, %v2234_v42 }
 0xeeb   :  { %v2226_v43 = vsub.f32 1.5, %v2225_v51 }
 0xeec   :  { %v5925_v23 = vadd.f32 %v2241_v46, %v2239_v22 }
 0xeed   :  { %v2227_v17 = vmul.f32 %v4832_v6, %v2226_v43 }
 0xeee   :  { %4505 = vmatmul.msk.f32.gmra.mxu0 %vm46_vm0, %v5925_v23 }
 0xeef   :  { %v2231_v47 = vsel %vm2230_vm11, %v4832_v6, %v2227_v17 }
 0xef0   :  { %v2235_v59 = vmul.f32 %v2231_v47, %v5893_v50  ;;  %v2328_v50 = vpop.f32.mrf.mxu1 }
 0xef1   :  { %v2329_v10 = vadd.f32 %v2328_v50, %v2301_v27 }
 0xef2   :  { %v2240_v53 = vmul.f32 %v2236_v62, %v2235_v59 }
 0xef4   :  { %v5930_v7 = vadd.f32 %v2241_v46, %v2240_v53  ;;  %v4953_v53 = vld [vmem:[%s6586_s2 + $0x1] ss:$0 sm:$0xff] }
 0xef6   :  { %4506 = vmatmul.msk.f32.gmra.mxu0 %vm46_vm0, %v5930_v7 }
 0xf4b   :  { %v2284_v33 = vpop.f32.mrf.mxu0 }
 0xf4c   :  { %v5935_v55 = vadd.f32 %v2284_v33, %v2254_v13 }
 0xf4e   :  { %2417 = vrot.lane.b32.xlu0 %v5935_v55, %s4982_s14  ;;  %2591 = vrot.lane.b32.xlu2 %v5935_v55, %s4985_s17 }
 0xf53   :  { %v2287_v56 = vpop.f32.mrf.mxu0 }
 0xf54   :  { %v5941_v60 = vadd.f32 %v2287_v56, %v2254_v13 }
 0xf56   :  { %2504 = vrot.lane.b32.xlu0 %v5935_v55, %s4986_s18  ;;  %2419 = vrot.lane.b32.xlu1 %v5941_v60, %s4982_s14  ;;  %v5982_v24 = vpack.i.bf16 %v5935_v55, %v5941_v60 }
 0xf57   :  { %4513 = vmatpush.xpose.msk.msrb.mxu1 %vm123_vm1, %v5941_v60 }
 0xf5b   :  { %4514 = vmatpush.xpose.msk.msrb.mxu1 %vm123_vm1, %v5935_v55 }
 0xf5e   :  { %4515 = vmatmul.msk.f32.vlgmr.msrb.gmra.mxu1 %vm123_vm1, %v5874_v41  ;;  %2506 = vrot.lane.b32.xlu0 %v5941_v60, %s4986_s18 }
 0xf5f   :  { %2593 = vrot.lane.b32.xlu1 %v5941_v60, %s4985_s17 }
 0xf66   :  { %2589 = vrot.lane.b32.xlu0 %v5874_v41, %s4985_s17 }
 0xf67   :  { %2502 = vrot.lane.b32.xlu1 %v5874_v41, %s4986_s18  ;;  %v2416_v41 = vpop.permute.xlu2 %2415 }
 0xf6b   :  { %v2290_v15 = vpop.f32.mrf.mxu0 }
 0xf6c   :  { %v5963_v20 = vadd.f32 %v2290_v15, %v2254_v13 }
 0xf6e   :  { %2775 = vrot.lane.b32.xlu0 %v2329_v10, %s4982_s14 }
 0xf6f   :  { %2777 = vrot.lane.b32.xlu1 %v5963_v20, %s4982_s14 }
 0xf73   :  { %v2293_v16 = vpop.f32.mrf.mxu0 }
 0xf74   :  { %v5968_v44 = vadd.f32 %v2293_v16, %v2254_v13 }
 0xf76   :  { %2779 = vrot.lane.b32.xlu2 %v5968_v44, %s4982_s14  ;;  %2864 = vrot.lane.b32.xlu0 %v5963_v20, %s4986_s18 }
 0xf77   :  { %2953 = vrot.lane.b32.xlu1 %v5968_v44, %s4985_s17 }
 0xf7e   :  { %2866 = vrot.lane.b32.xlu2 %v5968_v44, %s4986_s18  ;;  %2949 = vrot.lane.b32.xlu0 %v2329_v10, %s4985_s17 }
 0xf7f   :  { %2862 = vrot.lane.b32.xlu1 %v2329_v10, %s4986_s18 }
 0xf86   :  { %2951 = vrot.lane.b32.xlu2 %v5963_v20, %s4985_s17  ;;  %4669 = vrot.lane.b32.xlu0 %v5982_v24, %s4983_s15 }
 0xf87   :  { %4674 = vrot.lane.b32.xlu1 %v5982_v24, %s4984_s16 }
 0xfa8   :  { %v2592_v31 = vpop.permute.xlu2 %2591 }
 0xfc0   :  { %v2418_v27 = vpop.permute.xlu0 %2417 }
 0xfc8   :  { %v2420_v0 = vpop.permute.xlu1 %2419  ;;  %v2505_v11 = vpop.permute.xlu0 %2504 }
 0xfc9   :  { %4517 = vmatpush.xpose.msk.msra.mxu3 %vm123_vm1, %v2420_v0 }
 0xfcd   :  { %4518 = vmatpush.xpose.msk.msra.mxu3 %vm123_vm1, %v2418_v27 }
 0xfd0   :  { %v2507_v3 = vpop.permute.xlu0 %2506  ;;  %4519 = vmatmul.msk.f32.vlgmr.msra.gmra.mxu3 %vm123_vm1, %v2416_v41  ;;  %v2780_v9 = vpop.permute.xlu2 %2779 }
 0xfd1   :  { %v2594_v5 = vpop.permute.xlu1 %2593  ;;  %4521 = vmatpush.xpose.msk.msra.mxu1 %vm123_vm1, %v2507_v3 }
 0xfd2   :  { %4525 = vmatpush.xpose.msk.msrb.mxu3 %vm123_vm1, %v2594_v5 }
 0xfd5   :  { %4522 = vmatpush.xpose.msk.msra.mxu1 %vm123_vm1, %v2505_v11 }
 0xfd6   :  { %4526 = vmatpush.xpose.msk.msrb.mxu3 %vm123_vm1, %v2592_v31 }
 0xfd8   :  { %v2590_v58 = vpop.permute.xlu0 %2589  ;;  %v2867_v4 = vpop.permute.xlu2 %2866 }
 0xfd9   :  { %4529 = vmatpush.xpose.msk.msrb.mxu1 %vm123_vm1, %v5968_v44  ;;  %v2503_v61 = vpop.permute.xlu1 %2502  ;;  %4527 = vmatmul.msk.f32.vlgmr.msrb.gmra.mxu3 %vm123_vm1, %v2590_v58 }
 0xfda   :  { %4533 = vmatpush.xpose.msk.msra.mxu3 %vm123_vm1, %v2780_v9  ;;  %4523 = vmatmul.msk.f32.vlgmr.msra.gmra.mxu1 %vm123_vm1, %v2503_v61 }
 0xfdb   :  { %v2357_v62 = vpop.f32.mrf.mxu1 }
 0xfdc   :  { %v2360_v21 = vmul.f32 0.35355338, %v2357_v62 }
 0xfdd   :  { %4530 = vmatpush.xpose.msk.msrb.mxu1 %vm123_vm1, %v5963_v20 }
 0xfde   :  { %v2361_v45 = vadd.f32 %v4952_v19, %v2360_v21 }
 0xfe0   :  { %v2362_v46 = vsel %vm158_vm2, %v2361_v45, -inf  ;;  %v2776_v52 = vpop.permute.xlu0 %2775  ;;  %v2952_v35 = vpop.permute.xlu2 %2951 }
 0xfe1   :  { %4537 = vmatpush.xpose.msk.msra.mxu1 %vm123_vm1, %v2867_v4  ;;  %v2778_v12 = vpop.permute.xlu1 %2777  ;;  %2363 = vmax.xlane.f32.xlu2 %v2362_v46 }
 0xfe2   :  { %4531 = vmatmul.msk.f32.vlgmr.msrb.gmra.mxu1 %vm123_vm1, %v2329_v10  ;;  %4534 = vmatpush.xpose.msk.msra.mxu3 %vm123_vm1, %v2778_v12 }
 0xfe5   :  { %4535 = vmatmul.msk.f32.vlgmr.msra.gmra.mxu3 %vm123_vm1, %v2776_v52 }
 0xfe8   :  { %v2865_v34 = vpop.permute.xlu0 %2864 }
 0xfe9   :  { %v2954_v18 = vpop.permute.xlu1 %2953  ;;  %4538 = vmatpush.xpose.msk.msra.mxu1 %vm123_vm1, %v2865_v34 }
 0xfea   :  { %4541 = vmatpush.xpose.msk.msrb.mxu3 %vm123_vm1, %v2954_v18 }
 0xfee   :  { %4542 = vmatpush.xpose.msk.msrb.mxu3 %vm123_vm1, %v2952_v35 }
 0xff0   :  { %v2950_v57 = vpop.permute.xlu0 %2949 }
 0xff1   :  { %v2863_v32 = vpop.permute.xlu1 %2862  ;;  %4543 = vmatmul.msk.f32.vlgmr.msrb.gmra.mxu3 %vm123_vm1, %v2950_v57 }
 0xff2   :  { %4539 = vmatmul.msk.f32.vlgmr.msra.gmra.mxu1 %vm123_vm1, %v2863_v32 }
 0xff8   :  { %v4670_v1 = vpop.permute.xlu0 %4669 }
 0xff9   :  { %v4675_v28 = vpop.permute.xlu1 %4674  ;;  %v4671_v29 = vunpack.i.l.bf16 %v4670_v1  ;;  %v4672_v48 = vunpack.i.h.bf16 %v4670_v1 }
 0xffa   :  { %v4676_v8 = vunpack.i.l.bf16 %v4675_v28  ;;  %v4677_v30 = vunpack.i.h.bf16 %v4675_v28 }
 0xffb   :  { %2409 = vmatpush.msrb.mxu2 %v4671_v29 }
 0xffc   :  { %2496 = vmatpush.msrb.mxu0 %v4676_v8 }
 0xffd   :  { %2410 = vmatpush.msrb.mxu2 %v4672_v48 }
 0xffe   :  { %2497 = vmatpush.msrb.mxu0 %v4677_v30 }
0x1053   :  { %v2444_v36 = vpop.f32.mrf.mxu3 }
0x1054   :  { %v2447_v25 = vmul.f32 0.35355338, %v2444_v36  ;;  %v2364_v37 = vpop.xlane.xlu2 %2363 }
0x1055   :  { %v2365_v2 = vsub.f32 %v2361_v45, %v2364_v37 }
0x1056   :  { %v2448_v26 = vadd.f32 %v4952_v19, %v2447_v25 }
0x1057   :  { %v2366_v6 = vmul.f32 1.442695, %v2365_v2  ;;  %v2531_v54 = vpop.f32.mrf.mxu1 }
0x1058   :  { %v2534_v39 = vmul.f32 0.35355338, %v2531_v54  ;;  %v2449_v14 = vsel %vm158_vm2, %v2448_v26, -inf }
0x1059   :  { %4833 = vpow2.f32 %v2366_v6  ;;  %2450 = vmax.xlane.f32.xlu1 %v2449_v14 }
0x105a   :  { %v2535_v40 = vadd.f32 %v4952_v19, %v2534_v39 }
0x105c   :  { %v2536_v42 = vsel %vm158_vm2, %v2535_v40, -inf  ;;  %v2618_v51 = vpop.f32.mrf.mxu3 }
0x105d   :  { %2537 = vmax.xlane.f32.xlu0 %v2536_v42  ;;  %v2621_v17 = vmul.f32 0.35355338, %v2618_v51 }
0x105f   :  { %v6019_v22 = vpop.eup %4833  ;;  %v2717_v43 = vpop.f32.mrf.mxu1  ;;  %v2622_v33 = vadd.f32 %v4952_v19, %v2621_v17 }
0x1060   :  { %v2720_v47 = vmul.f32 0.35355338, %v2717_v43  ;;  %v2368_v59 = vsel %vm158_vm2, %v6019_v22, 0.0 }
0x1061   :  { %2369 = vadd.xlane.f32.xlu2 %v2368_v59  ;;  %v2623_v15 = vsel %vm158_vm2, %v2622_v33, -inf }
0x1062   :  { %v2721_v13 = vadd.f32 %v4953_v53, %v2720_v47 }
0x1064   :  { %v2722_v56 = vsel %vm158_vm2, %v2721_v13, -inf }
0x1065   :  { %2723 = vmax.xlane.f32.xlu1 %v2722_v56 }
0x1068   :  { %v2804_v50 = vpop.f32.mrf.mxu3 }
0x1069   :  { %v2807_v10 = vmul.f32 0.35355338, %v2804_v50  ;;  %2624 = vmax.xlane.f32.xlu2 %v2623_v15 }
0x106b   :  { %v6028_v16 = vadd.f32 %v4953_v53, %v2807_v10  ;;  %v4688_v10 = vpack.i.bf16 %v5963_v20, %v5968_v44 }
0x106d   :  { %v2809_v0 = vsel %vm158_vm2, %v6028_v16, -inf }
0x106f   :  { %v2891_v27 = vpop.f32.mrf.mxu1 }
0x1070   :  { %v2894_v41 = vmul.f32 0.35355338, %v2891_v27 }
0x1071   :  { %2810 = vmax.xlane.f32.xlu2 %v2809_v0 }
0x1072   :  { %v2895_v11 = vadd.f32 %v4953_v53, %v2894_v41 }
0x1074   :  { %v2896_v31 = vsel %vm158_vm2, %v2895_v11, -inf  ;;  %v2978_v3 = vpop.f32.mrf.mxu3 }
0x1075   :  { %2897 = vmax.xlane.f32.xlu0 %v2896_v31  ;;  %v2981_v5 = vmul.f32 0.35355338, %v2978_v3 }
0x1077   :  { %v2982_v9 = vadd.f32 %v4953_v53, %v2981_v5 }
0x1079   :  { %v2983_v58 = vsel %vm158_vm2, %v2982_v9, -inf }
0x107a   :  { %2984 = vmax.xlane.f32.xlu1 %v2983_v58 }
0x1089   :  { %4684 = vrot.lane.b32.xlu0 %v5982_v24, %s4987_s25  ;;  %4679 = vrot.lane.b32.xlu2 %v5982_v24, %s4989_s27 }
0x10cc   :  { %v2451_v61 = vpop.xlane.xlu1 %2450 }
0x10cd   :  { %v2452_v4 = vsub.f32 %v2448_v26, %v2451_v61 }
0x10cf   :  { %v2453_v62 = vmul.f32 1.442695, %v2452_v4 }
0x10d0   :  { %v2538_v21 = vpop.xlane.xlu0 %2537 }
0x10d1   :  { %4835 = vpow2.f32 %v2453_v62  ;;  %v2539_v19 = vsub.f32 %v2535_v40, %v2538_v21 }
0x10d3   :  { %v2540_v45 = vmul.f32 1.442695, %v2539_v19 }
0x10d4   :  { %v2370_v46 = vpop.xlane.xlu2 %2369 }
0x10d5   :  { %4837 = vpow2.f32 %v2540_v45  ;;  %v2382_v30 = vand.u32 2147483648, %v2370_v46  ;;  %v2380_v25 = vand.u32 2147483647, %v2370_v46  ;;  %vm2376_vm13 = vweird.f32 %v2370_v46 }
0x10d6   :  { %4839 = vrcp.f32 %v2370_v46 }
0x10d7   :  { %v6038_v52 = vpop.eup %4835  ;;  %v2383_v26 = vor.u32 1.1754944e-38, %v2382_v30  ;;  %vm2381_vm15 = vcmp.eq.f32.partialorder %v2380_v25, 8.507059e+37 }
0x10d8   :  { %v2724_v12 = vpop.xlane.xlu1 %2723  ;;  %v2455_v34 = vsel %vm158_vm2, %v6038_v52, 0.0 }
0x10d9   :  { %v2725_v18 = vsub.f32 %v2721_v13, %v2724_v12  ;;  %2456 = vadd.xlane.f32.xlu0 %v2455_v34 }
0x10db   :  { %v6042_v35 = vpop.eup %4837  ;;  %v2726_v24 = vmul.f32 1.442695, %v2725_v18 }
0x10dc   :  { %v4840_v57 = vpop.eup %4839  ;;  %v2625_v32 = vpop.xlane.xlu2 %2624  ;;  %v2542_v1 = vsel %vm158_vm2, %v6042_v35, 0.0 }
0x10dd   :  { %v2372_v28 = vmul.f32 %v4840_v57, %v2370_v46  ;;  %4841 = vpow2.f32 %v2726_v24  ;;  %v2626_v29 = vsub.f32 %v2622_v33, %v2625_v32  ;;  %2543 = vadd.xlane.f32.xlu1 %v2542_v1  ;;  %vm2377_vm12 = vweird.f32 %v4840_v57 }
0x10de   :  { %vm2378_vm14 = vmor %vm2376_vm13, %vm2377_vm12 }
0x10df   :  { %v2373_v8 = vsub.f32 1.0, %v2372_v28  ;;  %v2627_v48 = vmul.f32 1.442695, %v2626_v29 }
0x10e1   :  { %v2374_v36 = vmul.f32 %v4840_v57, %v2373_v8  ;;  %4843 = vpow2.f32 %v2627_v48 }
0x10e3   :  { %v6046_v37 = vpop.eup %4841  ;;  %v2375_v2 = vadd.f32 %v4840_v57, %v2374_v36 }
0x10e4   :  { %v2811_v6 = vpop.xlane.xlu2 %2810  ;;  %v2728_v54 = vsel %vm158_vm2, %v6046_v37, 0.0 }
0x10e5   :  { %v2379_v39 = vsel %vm2378_vm14, %v4840_v57, %v2375_v2  ;;  %2729 = vadd.xlane.f32.xlu0 %v2728_v54  ;;  %v2812_v3 = vsub.f32 %v6028_v16, %v2811_v6 }
0x10e6   :  { %v2384_v14 = vsel %vm2381_vm15, %v2383_v26, %v2379_v39 }
0x10e7   :  { %v6050_v40 = vpop.eup %4843  ;;  %v2385_v42 = vmul.f32 %v6019_v22, %v2384_v14  ;;  %v2813_v5 = vmul.f32 1.442695, %v2812_v3 }
0x10e8   :  { %v2898_v51 = vpop.xlane.xlu0 %2897  ;;  %v2629_v43 = vsel %vm158_vm2, %v6050_v40, 0.0 }
0x10e9   :  { %v2899_v17 = vsub.f32 %v2895_v11, %v2898_v51  ;;  %4516 = vmatmul.msk.f32.vlgmr.msrb.gmra.mxu2 %vm158_vm2, %v2385_v42  ;;  %2630 = vadd.xlane.f32.xlu2 %v2629_v43 }
0x10eb   :  { %v2900_v47 = vmul.f32 1.442695, %v2899_v17 }
0x10ec   :  { %v4680_v59 = vpop.permute.xlu2 %4679 }
0x10ed   :  { %4845 = vpow2.f32 %v2900_v47  ;;  %v4681_v53 = vunpack.i.l.bf16 %v4680_v59  ;;  %v2985_v13 = vpop.xlane.xlu1 %2984  ;;  %v4682_v56 = vunpack.i.h.bf16 %v4680_v59 }
0x10ee   :  { %v2986_v33 = vsub.f32 %v2982_v9, %v2985_v13 }
0x10ef   :  { %2583 = vmatpush.msra.mxu2 %v4681_v53 }
0x10f0   :  { %v2987_v50 = vmul.f32 1.442695, %v2986_v33 }
0x10f1   :  { %2584 = vmatpush.msra.mxu2 %v4682_v56 }
0x10f2   :  { %4847 = vpow2.f32 %v2987_v50 }
0x10f3   :  { %v6056_v22 = vpop.eup %4845  ;;  %4849 = vpow2.f32 %v2813_v5 }
0x10f4   :  { %v2902_v15 = vsel %vm158_vm2, %v6056_v22, 0.0 }
0x10f5   :  { %2903 = vadd.xlane.f32.xlu2 %v2902_v15 }
0x10f6   :  { %4689 = vrot.lane.b32.xlu1 %v4688_v10, %s4983_s15 }
0x10f8   :  { %v6063_v27 = vpop.eup %4847 }
0x10f9   :  { %v2989_v41 = vsel %vm158_vm2, %v6063_v27, 0.0  ;;  %v6070_v9 = vpop.eup %4849 }
0x10fa   :  { %2990 = vadd.xlane.f32.xlu0 %v2989_v41  ;;  %v2815_v58 = vsel %vm158_vm2, %v6070_v9, 0.0 }
0x10fb   :  { %v4685_v0 = vpop.permute.xlu0 %4684 }
0x10fc   :  { %v4686_v11 = vunpack.i.l.bf16 %v4685_v0  ;;  %v4687_v31 = vunpack.i.h.bf16 %v4685_v0 }
0x10fe   :  { %2670 = vmatpush.msra.mxu0 %v4686_v11 }
0x1100   :  { %2671 = vmatpush.msra.mxu0 %v4687_v31 }
0x110d   :  { %4694 = vrot.lane.b32.xlu2 %v4688_v10, %s4984_s16 }
0x110e   :  { %4699 = vrot.lane.b32.xlu0 %v4688_v10, %s4989_s27 }
0x1120   :  { %2816 = vadd.xlane.f32.xlu1 %v2815_v58 }
0x1139   :  { %4704 = vrot.lane.b32.xlu1 %v4688_v10, %s4987_s25 }
0x114c   :  { %v2457_v61 = vpop.xlane.xlu0 %2456 }
0x114d   :  { %4851 = vrcp.f32 %v2457_v61  ;;  %v2467_v45 = vand.u32 2147483647, %v2457_v61  ;;  %v2469_v46 = vand.u32 2147483648, %v2457_v61  ;;  %vm2463_vm5 = vweird.f32 %v2457_v61 }
0x114f   :  { %vm2468_vm8 = vcmp.eq.f32.partialorder %v2467_v45, 8.507059e+37  ;;  %v2470_v32 = vor.u32 1.1754944e-38, %v2469_v46 }
0x1150   :  { %v2544_v4 = vpop.xlane.xlu1 %2543 }
0x1151   :  { %4853 = vrcp.f32 %v2544_v4  ;;  %v2556_v1 = vand.u32 2147483648, %v2544_v4  ;;  %v2554_v8 = vand.u32 2147483647, %v2544_v4  ;;  %vm2550_vm10 = vweird.f32 %v2544_v4 }
0x1153   :  { %v4852_v62 = vpop.eup %4851  ;;  %v2557_v26 = vor.u32 1.1754944e-38, %v2556_v1  ;;  %vm2555_vm12 = vcmp.eq.f32.partialorder %v2554_v8, 8.507059e+37 }
0x1154   :  { %v2459_v21 = vmul.f32 %v4852_v62, %v2457_v61  ;;  %vm2464_vm4 = vweird.f32 %v4852_v62 }
0x1155   :  { %vm2465_vm7 = vmor %vm2463_vm5, %vm2464_vm4 }
0x1156   :  { %v2460_v19 = vsub.f32 1.0, %v2459_v21 }
0x1157   :  { %v4854_v16 = vpop.eup %4853 }
0x1158   :  { %v2461_v12 = vmul.f32 %v4852_v62, %v2460_v19  ;;  %v2546_v34 = vmul.f32 %v4854_v16, %v2544_v4  ;;  %v2730_v18 = vpop.xlane.xlu0 %2729  ;;  %vm2551_vm9 = vweird.f32 %v4854_v16 }
0x1159   :  { %4855 = vrcp.f32 %v2730_v18  ;;  %vm2552_vm11 = vmor %vm2550_vm10, %vm2551_vm9  ;;  %v2740_v43 = vand.u32 2147483647, %v2730_v18  ;;  %v2742_v17 = vand.u32 2147483648, %v2730_v18  ;;  %vm2736_vm14 = vweird.f32 %v2730_v18 }
0x115a   :  { %v2462_v24 = vadd.f32 %v4852_v62, %v2461_v12  ;;  %v2547_v57 = vsub.f32 1.0, %v2546_v34 }
0x115b   :  { %vm2741_vm4 = vcmp.eq.f32.partialorder %v2740_v43, 8.507059e+37  ;;  %v2743_v13 = vor.u32 1.1754944e-38, %v2742_v17 }
0x115c   :  { %v2466_v28 = vsel %vm2465_vm7, %v4852_v62, %v2462_v24  ;;  %v2548_v29 = vmul.f32 %v4854_v16, %v2547_v57  ;;  %v2631_v48 = vpop.xlane.xlu2 %2630 }
0x115d   :  { %v2471_v30 = vsel %vm2468_vm8, %v2470_v32, %v2466_v28  ;;  %4857 = vrcp.f32 %v2631_v48  ;;  %v2643_v33 = vand.u32 2147483648, %v2631_v48  ;;  %v2641_v15 = vand.u32 2147483647, %v2631_v48 }
0x115e   :  { %v2549_v36 = vadd.f32 %v4854_v16, %v2548_v29  ;;  %v2472_v25 = vmul.f32 %v6038_v52, %v2471_v30  ;;  %vm2637_vm7 = vweird.f32 %v2631_v48 }
0x115f   :  { %v4856_v2 = vpop.eup %4855  ;;  %v2644_v31 = vor.u32 1.1754944e-38, %v2643_v33  ;;  %vm2642_vm9 = vcmp.eq.f32.partialorder %v2641_v15, 8.507059e+37 }
0x1160   :  { %v2553_v6 = vsel %vm2552_vm11, %v4854_v16, %v2549_v36  ;;  %v2732_v54 = vmul.f32 %v4856_v2, %v2730_v18  ;;  %4520 = vmatmul.msk.f32.vlgmr.msrb.gmra.mxu0 %vm158_vm2, %v2472_v25  ;;  %vm2737_vm13 = vweird.f32 %v4856_v2 }
0x1161   :  { %v2558_v39 = vsel %vm2555_vm12, %v2557_v26, %v2553_v6  ;;  %vm2738_vm15 = vmor %vm2736_vm14, %vm2737_vm13 }
0x1162   :  { %v2733_v14 = vsub.f32 1.0, %v2732_v54  ;;  %v2559_v42 = vmul.f32 %v6042_v35, %v2558_v39 }
0x1163   :  { %v4858_v51 = vpop.eup %4857 }
0x1164   :  { %v2734_v47 = vmul.f32 %v4856_v2, %v2733_v14  ;;  %v2633_v59 = vmul.f32 %v4858_v51, %v2631_v48  ;;  %4524 = vmatmul.msk.f32.vlgmr.msra.gmra.mxu2 %vm158_vm2, %v2559_v42  ;;  %vm2638_vm5 = vweird.f32 %v4858_v51 }
0x1165   :  { %vm2639_vm8 = vmor %vm2637_vm7, %vm2638_vm5 }
0x1166   :  { %v2735_v52 = vadd.f32 %v4856_v2, %v2734_v47  ;;  %v2634_v53 = vsub.f32 1.0, %v2633_v59 }
0x1168   :  { %v2739_v56 = vsel %vm2738_vm15, %v4856_v2, %v2735_v52  ;;  %v2635_v50 = vmul.f32 %v4858_v51, %v2634_v53  ;;  %v4690_v35 = vpop.permute.xlu1 %4689  ;;  %v2904_v10 = vpop.xlane.xlu2 %2903 }
0x1169   :  { %v2744_v41 = vsel %vm2741_vm4, %v2743_v13, %v2739_v56  ;;  %v4691_v0 = vunpack.i.l.bf16 %v4690_v35  ;;  %4859 = vrcp.f32 %v2904_v10  ;;  %v4692_v3 = vunpack.i.h.bf16 %v4690_v35 }
0x116a   :  { %v2636_v11 = vadd.f32 %v4858_v51, %v2635_v50  ;;  %v2745_v58 = vmul.f32 %v6046_v37, %v2744_v41  ;;  %v2916_v37 = vand.u32 2147483648, %v2904_v10  ;;  %vm2910_vm11 = vweird.f32 %v2904_v10 }
0x116b   :  { %2769 = vmatpush.msrb.mxu2 %v4691_v0  ;;  %v2914_v24 = vand.u32 2147483647, %v2904_v10 }
0x116c   :  { %v2640_v5 = vsel %vm2639_vm8, %v4858_v51, %v2636_v11  ;;  %v2917_v32 = vor.u32 1.1754944e-38, %v2916_v37  ;;  %v2412_v41 = vpop.f32.mrf.mxu2 }
0x116d   :  { %v2645_v61 = vsel %vm2642_vm9, %v2644_v31, %v2640_v5  ;;  %2770 = vmatpush.msrb.mxu2 %v4692_v3  ;;  %v2991_v34 = vpop.xlane.xlu0 %2990  ;;  %vm2915_vm13 = vcmp.eq.f32.partialorder %v2914_v24, 8.507059e+37 }
0x116e   :  { %4532 = vmatmul.msk.f32.vlgmr.msrb.gmra.mxu2 %vm158_vm2, %v2745_v58  ;;  %v2646_v62 = vmul.f32 %v6050_v40, %v2645_v61  ;;  %4861 = vrcp.f32 %v2991_v34  ;;  %v3003_v52 = vand.u32 2147483648, %v2991_v34  ;;  %vm2997_vm8 = vweird.f32 %v2991_v34  ;;  %v4548_v58 = vld [vmem:[%s6589_s5 + $0x38] sm:$0xff]  ;;  %v4547_v61 = vld [vmem:[%s6589_s5 + $0x30] sm:$0xff] }
0x116f   :  { %v4860_v4 = vpop.eup %4859  ;;  %v3001_v53 = vand.u32 2147483647, %v2991_v34  ;;  %3075 = vmatpush.msrb.mxu1 %v4548_v58 }
0x1170   :  { %v2906_v21 = vmul.f32 %v4860_v4, %v2904_v10  ;;  %v4695_v19 = vpop.permute.xlu2 %4694  ;;  %4528 = vmatmul.msk.f32.vlgmr.msra.gmra.mxu0 %vm158_vm2, %v2646_v62  ;;  %vm2911_vm10 = vweird.f32 %v4860_v4  ;;  %v3004_v33 = vor.u32 1.1754944e-38, %v3003_v52  ;;  %v4545_v62 = vld [vmem:[%s6589_s5 + $0x20] sm:$0xff] }
0x1171   :  { %v4696_v16 = vunpack.i.l.bf16 %v4695_v19  ;;  %v4697_v46 = vunpack.i.h.bf16 %v4695_v19  ;;  %vm2912_vm12 = vmor %vm2910_vm11, %vm2911_vm10  ;;  %vm3002_vm10 = vcmp.eq.f32.partialorder %v3001_v53, 8.507059e+37  ;;  %3076 = vmatpush.msrb.mxu1 %v4547_v61 }
0x1172   :  { %v2907_v45 = vsub.f32 1.0, %v2906_v21 }
0x1173   :  { %2856 = vmatpush.msrb.mxu0 %v4696_v16 }
0x1174   :  { %v2908_v12 = vmul.f32 %v4860_v4, %v2907_v45  ;;  %v4862_v30 = vpop.eup %4861 }
0x1175   :  { %2857 = vmatpush.msrb.mxu0 %v4697_v46  ;;  %v2993_v36 = vmul.f32 %v4862_v30, %v2991_v34  ;;  %vm2998_vm7 = vweird.f32 %v4862_v30 }
0x1176   :  { %v2909_v18 = vadd.f32 %v4860_v4, %v2908_v12  ;;  %vm2999_vm9 = vmor %vm2997_vm8, %vm2998_vm7 }
0x1177   :  { %v2994_v26 = vsub.f32 1.0, %v2993_v36 }
0x1178   :  { %v2913_v57 = vsel %vm2912_vm12, %v4860_v4, %v2909_v18  ;;  %v4546_v4 = vld [vmem:[%s6589_s5 + $0x28] sm:$0xff] }
0x1179   :  { %v2918_v1 = vsel %vm2915_vm13, %v2917_v32, %v2913_v57  ;;  %v2995_v42 = vmul.f32 %v4862_v30, %v2994_v26  ;;  %3077 = vmatpush.msrb.mxu1 %v4546_v4 }
0x117a   :  { %v2919_v8 = vmul.f32 %v6056_v22, %v2918_v1 }
0x117b   :  { %v2996_v47 = vadd.f32 %v4862_v30, %v2995_v42  ;;  %3078 = vmatpush.msrb.mxu1 %v4545_v62 }
0x117d   :  { %v3000_v13 = vsel %vm2999_vm9, %v4862_v30, %v2996_v47 }
0x117e   :  { %v3005_v50 = vsel %vm3002_vm10, %v3004_v33, %v3000_v13 }
0x117f   :  { %v3006_v10 = vmul.f32 %v6063_v27, %v3005_v50 }
0x1180   :  { %v4700_v40 = vpop.permute.xlu0 %4699 }
0x1181   :  { %v4701_v28 = vunpack.i.l.bf16 %v4700_v40  ;;  %v4702_v29 = vunpack.i.h.bf16 %v4700_v40  ;;  %v4954_v40 = vld [vmem:[%s6592_s8 + $0x10] sm:$0xff] }
0x1182   :  { %v3056_v1 = vperm.slane %v4954_v40, 2 }
0x1183   :  { %2943 = vmatpush.msra.mxu2 %v4701_v28 }
0x1185   :  { %2944 = vmatpush.msra.mxu2 %v4702_v29 }
0x1186   :  { %4540 = vmatmul.msk.f32.vlgmr.msra.gmra.mxu2 %vm158_vm2, %v2919_v8 }
0x1193   :  { %v2817_v48 = vpop.xlane.xlu1 %2816 }
0x1194   :  { %4863 = vrcp.f32 %v2817_v48  ;;  %v2829_v54 = vand.u32 2147483648, %v2817_v48  ;;  %v2827_v14 = vand.u32 2147483647, %v2817_v48  ;;  %vm2823_vm15 = vweird.f32 %v2817_v48 }
0x1196   :  { %v2830_v22 = vor.u32 1.1754944e-38, %v2829_v54  ;;  %vm2828_vm5 = vcmp.eq.f32.partialorder %v2827_v14, 8.507059e+37 }
0x119a   :  { %v4864_v25 = vpop.eup %4863 }
0x119b   :  { %v2819_v2 = vmul.f32 %v4864_v25, %v2817_v48  ;;  %vm2824_vm14 = vweird.f32 %v4864_v25 }
0x119c   :  { %vm2825_vm4 = vmor %vm2823_vm15, %vm2824_vm14 }
0x119d   :  { %v2820_v6 = vsub.f32 1.0, %v2819_v2 }
0x119f   :  { %v2821_v39 = vmul.f32 %v4864_v25, %v2820_v6 }
0x11a1   :  { %v2822_v51 = vadd.f32 %v4864_v25, %v2821_v39 }
0x11a3   :  { %v2826_v43 = vsel %vm2825_vm4, %v4864_v25, %v2822_v51 }
0x11a4   :  { %v2831_v17 = vsel %vm2828_vm5, %v2830_v22, %v2826_v43 }
0x11a5   :  { %v2832_v59 = vmul.f32 %v6070_v9, %v2831_v17 }
0x11a7   :  { %4536 = vmatmul.msk.f32.vlgmr.msrb.gmra.mxu0 %vm158_vm2, %v2832_v59 }
0x11ab   :  { %v4705_v56 = vpop.permute.xlu1 %4704 }
0x11ac   :  { %v4706_v15 = vunpack.i.l.bf16 %v4705_v56  ;;  %v4707_v35 = vunpack.i.h.bf16 %v4705_v56 }
0x11ae   :  { %3030 = vmatpush.msra.mxu0 %v4706_v15 }
0x11b0   :  { %3031 = vmatpush.msra.mxu0 %v4707_v35 }
0x11b1   :  { %4544 = vmatmul.msk.f32.vlgmr.msra.gmra.mxu0 %vm158_vm2, %v3006_v10 }
0x11dd   :  { %v2499_v9 = vpop.f32.mrf.mxu0 }
0x11de   :  { %2677 = vrot.lane.b32.xlu2 %v2499_v9, %s4988_s26 }
0x11e7   :  { %v2586_v0 = vpop.f32.mrf.mxu2 }
0x11e8   :  { %2681 = vrot.lane.b32.xlu0 %v2586_v0, %s4990_s28 }
0x11ed   :  { %v2673_v11 = vpop.f32.mrf.mxu0 }
0x11ee   :  { %2685 = vrot.lane.b32.xlu1 %v2673_v11, %s4991_s10 }
0x11f1   :  { %v2772_v31 = vpop.f32.mrf.mxu2 }
0x1209   :  { %v2946_v3 = vpop.f32.mrf.mxu2 }
0x120a   :  { %3041 = vrot.lane.b32.xlu0 %v2946_v3, %s4990_s28 }
0x1212   :  { %3088 = vrot.lane.b32.xlu0 %v5941_v60, %s4992_s24 }
0x1224   :  { %v2859_v27 = vpop.f32.mrf.mxu0 }
0x1225   :  { %3037 = vrot.lane.b32.xlu2 %v2859_v27, %s4988_s26 }
0x122d   :  { %3086 = vrot.lane.b32.xlu2 %v5935_v55, %s4992_s24 }
0x122e   :  { %v3033_v5 = vpop.f32.mrf.mxu0 }
0x122f   :  { %3045 = vrot.lane.b32.xlu1 %v3033_v5, %s4991_s10 }
0x1235   :  { %3202 = vrot.lane.b32.xlu2 %v5935_v55, %s4993_s29 }
0x1238   :  { %v2678_v21 = vpop.permute.xlu2 %2677 }
0x1239   :  { %v2688_v16 = vsel %vm123_vm1, %v2412_v41, %v2678_v21 }
0x123d   :  { %3204 = vrot.lane.b32.xlu2 %v5941_v60, %s4993_s29 }
0x1245   :  { %3436 = vrot.lane.b32.xlu2 %v5935_v55, %s4995_s11 }
0x124d   :  { %3585 = vrot.lane.b32.xlu2 %v5968_v44, %s4992_s24 }
0x125a   :  { %v2682_v19 = vpop.permute.xlu0 %2681 }
0x125b   :  { %v2689_v45 = vsel %vm158_vm2, %v2688_v16, %v2682_v19 }
0x1260   :  { %v2686_v46 = vpop.permute.xlu1 %2685 }
0x1261   :  { %v2690_v12 = vsel %vm487_vm6, %v2689_v45, %v2686_v46 }
0x1262   :  { %4549 = vmatmul.msk.f32.vlgmr.msrb.gmra.mxu1 %vm46_vm0, %v2690_v12 }
0x127c   :  { %v3042_v37 = vpop.permute.xlu0 %3041 }
0x127f   :  { %v3038_v34 = vpop.permute.xlu2 %3037 }
0x1280   :  { %v3048_v18 = vsel %vm123_vm1, %v2772_v31, %v3038_v34 }
0x1281   :  { %v3049_v57 = vsel %vm158_vm2, %v3048_v18, %v3042_v37 }
0x1284   :  { %v3089_v48 = vpop.permute.xlu0 %3088 }
0x1287   :  { %v3087_v8 = vpop.permute.xlu2 %3086 }
0x128f   :  { %v3203_v36 = vpop.permute.xlu2 %3202 }
0x12a1   :  { %v3046_v24 = vpop.permute.xlu1 %3045 }
0x12a2   :  { %v3050_v32 = vsel %vm487_vm6, %v3049_v57, %v3046_v24 }
0x12a3   :  { %4550 = vmatmul.msk.f32.gmra.mxu1 %vm46_vm0, %v3050_v32 }
0x12df   :  { %v3080_v28 = vpop.f32.mrf.mxu1 }
0x12e0   :  { %v6130_v29 = vadd.f32 %v3080_v28, %v3056_v1 }
0x12e2   :  { %3206 = vrot.lane.b32.xlu1 %v6130_v29, %s4982_s14  ;;  %4551 = vmatpush.xpose.msk.msrb.mxu2 %vm123_vm1, %v6130_v29 }
0x12e3   :  { %3323 = vrot.lane.b32.xlu0 %v6130_v29, %s4986_s18 }
0x12e5   :  { %4552 = vmatmul.msk.f32.vlgmr.msrb.gmra.mxu2 %vm123_vm1, %v3087_v8 }
0x12ea   :  { %3319 = vrot.lane.b32.xlu1 %v5935_v55, %s4994_s30 }
0x12eb   :  { %3321 = vrot.lane.b32.xlu0 %v5941_v60, %s4994_s30 }
0x12ed   :  { %4553 = vmatmul.msk.f32.gmra.mxu2 %vm123_vm1, %v3089_v48 }
0x12f2   :  { %3440 = vrot.lane.b32.xlu1 %v6130_v29, %s4985_s17 }
0x12f3   :  { %3583 = vrot.lane.b32.xlu0 %v5963_v20, %s4992_s24 }
0x12fa   :  { %3438 = vrot.lane.b32.xlu1 %v5941_v60, %s4995_s11 }
0x1302   :  { %3699 = vrot.lane.b32.xlu1 %v5963_v20, %s4993_s29 }
0x130a   :  { %3701 = vrot.lane.b32.xlu1 %v5968_v44, %s4993_s29 }
0x1312   :  { %3933 = vrot.lane.b32.xlu1 %v5963_v20, %s4995_s11 }
0x131a   :  { %3404 = vrot.lane.b32.xlu1 %v6130_v29, %s4989_s27 }
0x1320   :  { %v3083_v55 = vpop.f32.mrf.mxu1 }
0x1321   :  { %v6158_v30 = vadd.f32 %v3083_v55, %v3056_v1 }
0x1323   :  { %3820 = vrot.lane.b32.xlu2 %v6158_v30, %s4986_s18  ;;  %3703 = vrot.lane.b32.xlu0 %v6158_v30, %s4982_s14  ;;  %v4708_v60 = vpack.i.bf16 %v6158_v30, %v6130_v29  ;;  %s4998_s18 = smov 128  }
0x132b   :  { %3818 = vrot.lane.b32.xlu2 %v5968_v44, %s4994_s30  ;;  %3816 = vrot.lane.b32.xlu0 %v5963_v20, %s4994_s30 }
0x1333   :  { %3935 = vrot.lane.b32.xlu2 %v5968_v44, %s4995_s11  ;;  %3937 = vrot.lane.b32.xlu0 %v6158_v30, %s4985_s17  ;;  %v3205_v44 = vpop.permute.xlu2 %3204 }
0x133b   :  { %3287 = vrot.lane.b32.xlu2 %v6130_v29, %s4984_s16  ;;  %4709 = vrot.lane.b32.xlu0 %v4708_v60, %s4983_s15  ;;  %v3437_v54 = vpop.permute.xlu2 %3436  ;;  %s4396_s15 = sshll.u32 %s6593_s9, 4  ;;  %s4397_s15 = int_to_ptr.hbm [resolvable:$true] %s4396_s15 }
0x1343   :  { %v3586_v59 = vpop.permute.xlu2 %3585 }
0x1354   :  { %v3207_v25 = vpop.permute.xlu1 %3206 }
0x1355   :  { %v3324_v2 = vpop.permute.xlu0 %3323  ;;  %4556 = vmatpush.xpose.msk.msrb.mxu0 %vm123_vm1, %v3207_v25 }
0x1356   :  { %4561 = vmatpush.xpose.msk.msra.mxu2 %vm123_vm1, %v3324_v2 }
0x1358   :  { %4557 = vmatmul.msk.f32.vlgmr.msrb.gmra.mxu0 %vm123_vm1, %v3203_v36 }
0x135a   :  { %4571 = vmatpush.xpose.msk.msrb.mxu2 %vm123_vm1, %v6158_v30 }
0x135c   :  { %v3320_v20 = vpop.permute.xlu1 %3319 }
0x135d   :  { %4562 = vmatmul.msk.f32.vlgmr.msra.gmra.mxu2 %vm123_vm1, %v3320_v20  ;;  %v3322_v26 = vpop.permute.xlu0 %3321 }
0x1360   :  { %4558 = vmatmul.msk.f32.gmra.mxu0 %vm123_vm1, %v3205_v44 }
0x1364   :  { %v3441_v6 = vpop.permute.xlu1 %3440 }
0x1365   :  { %4563 = vmatmul.msk.f32.gmra.mxu2 %vm123_vm1, %v3322_v26  ;;  %4566 = vmatpush.xpose.msk.msra.mxu0 %vm123_vm1, %v3441_v6  ;;  %v3584_v51 = vpop.permute.xlu0 %3583 }
0x1368   :  { %v3114_v39 = vpop.f32.mrf.mxu2  ;;  %4567 = vmatmul.msk.f32.vlgmr.msra.gmra.mxu0 %vm123_vm1, %v3437_v54 }
0x1369   :  { %v3120_v14 = vmul.f32 0.35355338, %v3114_v39 }
0x136b   :  { %v3122_v42 = vsel %vm123_vm1, %v3120_v14, -inf }
0x136c   :  { %3123 = vmax.xlane.f32.xlu0 %v3122_v42  ;;  %v3439_v22 = vpop.permute.xlu1 %3438 }
0x136d   :  { %4572 = vmatmul.msk.f32.vlgmr.msrb.gmra.mxu2 %vm123_vm1, %v3584_v51 }
0x1370   :  { %v3117_v43 = vpop.f32.mrf.mxu2  ;;  %4568 = vmatmul.msk.f32.gmra.mxu0 %vm123_vm1, %v3439_v22 }
0x1371   :  { %v3121_v17 = vmul.f32 0.35355338, %v3117_v43 }
0x1373   :  { %v3125_v47 = vsel %vm123_vm1, %v3121_v17, -inf }
0x1374   :  { %3126 = vmax.xlane.f32.xlu2 %v3125_v47  ;;  %v3700_v33 = vpop.permute.xlu1 %3699 }
0x1375   :  { %4573 = vmatmul.msk.f32.gmra.mxu2 %vm123_vm1, %v3586_v59 }
0x137c   :  { %v3702_v15 = vpop.permute.xlu1 %3701 }
0x137d   :  { %v3821_v52 = vpop.permute.xlu2 %3820 }
0x137e   :  { %4581 = vmatpush.xpose.msk.msra.mxu2 %vm123_vm1, %v3821_v52 }
0x1384   :  { %v3934_v9 = vpop.permute.xlu1 %3933 }
0x1385   :  { %v3819_v53 = vpop.permute.xlu2 %3818 }
0x138c   :  { %v3405_v11 = vpop.permute.xlu1 %3404 }
0x138d   :  { %v3936_v13 = vpop.permute.xlu2 %3935 }
0x1395   :  { %v3288_v56 = vpop.permute.xlu2 %3287  ;;  %v3704_v50 = vpop.permute.xlu0 %3703 }
0x1396   :  { %3311 = vmatpush.msra.mxu1 %v3288_v56  ;;  %4576 = vmatpush.xpose.msk.msrb.mxu0 %vm123_vm1, %v3704_v50 }
0x1399   :  { %4577 = vmatmul.msk.f32.vlgmr.msrb.gmra.mxu0 %vm123_vm1, %v3700_v33 }
0x139d   :  { %v3817_v35 = vpop.permute.xlu0 %3816 }
0x139e   :  { %4582 = vmatmul.msk.f32.vlgmr.msra.gmra.mxu2 %vm123_vm1, %v3817_v35 }
0x13a1   :  { %4578 = vmatmul.msk.f32.gmra.mxu0 %vm123_vm1, %v3702_v15 }
0x13a5   :  { %v3938_v10 = vpop.permute.xlu0 %3937 }
0x13a6   :  { %4583 = vmatmul.msk.f32.gmra.mxu2 %vm123_vm1, %v3819_v53  ;;  %4586 = vmatpush.xpose.msk.msra.mxu0 %vm123_vm1, %v3938_v10 }
0x13a9   :  { %4587 = vmatmul.msk.f32.vlgmr.msra.gmra.mxu0 %vm123_vm1, %v3934_v9 }
0x13ad   :  { %v6200_v41 = vpop.permute.xlu0 %4709 }
0x13ae   :  { %v4711_v0 = vunpack.i.l.bf16 %v6200_v41 }
0x13b0   :  { %3194 = vmatpush.msra.mxu3 %v4711_v0 }
0x13b1   :  { %4588 = vmatmul.msk.f32.gmra.mxu0 %vm123_vm1, %v3936_v13 }
0x13b2   :  { %3428 = vmatpush.msrb.mxu3 %v3405_v11 }
0x13d5   :  { %v3231_v31 = vpop.f32.mrf.mxu0 }
0x13d6   :  { %v6204_v3 = vmul.f32 0.35355338, %v3231_v31 }
0x13d8   :  { %v3239_v27 = vsel %vm123_vm1, %v6204_v3, -inf }
0x13d9   :  { %3240 = vmax.xlane.f32.xlu1 %v3239_v27 }
0x13dd   :  { %v3234_v5 = vpop.f32.mrf.mxu0 }
0x13de   :  { %v6208_v58 = vmul.f32 0.35355338, %v3234_v5 }
0x13df   :  { %v3124_v61 = vpop.xlane.xlu0 %3123 }
0x13e0   :  { %v3128_v4 = vsub.f32 %v3120_v14, %v3124_v61  ;;  %v3348_v62 = vpop.f32.mrf.mxu2  ;;  %v3242_v21 = vsel %vm123_vm1, %v6208_v58, -inf }
0x13e1   :  { %v6212_v19 = vmul.f32 0.35355338, %v3348_v62  ;;  %3243 = vmax.xlane.f32.xlu0 %v3242_v21 }
0x13e2   :  { %v3130_v16 = vmul.f32 1.442695, %v3128_v4 }
0x13e3   :  { %v3356_v45 = vsel %vm123_vm1, %v6212_v19, -inf }
0x13e4   :  { %4865 = vpow2.f32 %v3130_v16  ;;  %3357 = vmax.xlane.f32.xlu2 %v3356_v45 }
0x13e5   :  { %v3465_v46 = vpop.f32.mrf.mxu0 }
0x13e6   :  { %v6216_v12 = vmul.f32 0.35355338, %v3465_v46 }
0x13e7   :  { %v3127_v34 = vpop.xlane.xlu2 %3126 }
0x13e8   :  { %v3351_v18 = vpop.f32.mrf.mxu2  ;;  %v3473_v37 = vsel %vm123_vm1, %v6216_v12, -inf  ;;  %v3129_v32 = vsub.f32 %v3121_v17, %v3127_v34 }
0x13e9   :  { %v6220_v24 = vmul.f32 0.35355338, %v3351_v18  ;;  %3474 = vmax.xlane.f32.xlu1 %v3473_v37 }
0x13ea   :  { %v6222_v57 = vpop.eup %4865  ;;  %v3132_v8 = vmul.f32 1.442695, %v3129_v32 }
0x13eb   :  { %v3359_v40 = vsel %vm123_vm1, %v6220_v24, -inf  ;;  %v3134_v1 = vsel %vm123_vm1, %v6222_v57, 0.0 }
0x13ec   :  { %3360 = vmax.xlane.f32.xlu0 %v3359_v40  ;;  %3135 = vadd.xlane.f32.xlu2 %v3134_v1  ;;  %4867 = vpow2.f32 %v3132_v8 }
0x13ed   :  { %v3468_v28 = vpop.f32.mrf.mxu0 }
0x13ee   :  { %v6228_v48 = vmul.f32 0.35355338, %v3468_v28 }
0x13f0   :  { %v3611_v55 = vpop.f32.mrf.mxu2  ;;  %v3476_v25 = vsel %vm123_vm1, %v6228_v48, -inf }
0x13f1   :  { %v6230_v60 = vmul.f32 0.35355338, %v3611_v55 }
0x13f2   :  { %v6236_v2 = vpop.eup %4867 }
0x13f3   :  { %v3619_v36 = vsel %vm123_vm1, %v6230_v60, -inf  ;;  %v3137_v6 = vsel %vm123_vm1, %v6236_v2, 0.0 }
0x13f4   :  { %3620 = vmax.xlane.f32.xlu1 %v3619_v36  ;;  %3477 = vmax.xlane.f32.xlu2 %v3476_v25 }
0x13f8   :  { %v3614_v20 = vpop.f32.mrf.mxu2 }
0x13f9   :  { %v6238_v44 = vmul.f32 0.35355338, %v3614_v20 }
0x13fb   :  { %v3622_v26 = vsel %vm123_vm1, %v6238_v44, -inf }
0x13fc   :  { %3623 = vmax.xlane.f32.xlu2 %v3622_v26  ;;  %3138 = vadd.xlane.f32.xlu1 %v3137_v6 }
0x1416   :  { %v3728_v54 = vpop.f32.mrf.mxu0 }
0x1417   :  { %v6244_v39 = vmul.f32 0.35355338, %v3728_v54 }
0x1419   :  { %v3736_v14 = vsel %vm123_vm1, %v6244_v39, -inf }
0x141a   :  { %3737 = vmax.xlane.f32.xlu0 %v3736_v14 }
0x141e   :  { %v3731_v42 = vpop.f32.mrf.mxu0 }
0x141f   :  { %v6248_v51 = vmul.f32 0.35355338, %v3731_v42 }
0x1421   :  { %v3845_v22 = vpop.f32.mrf.mxu2  ;;  %v3739_v43 = vsel %vm123_vm1, %v6248_v51, -inf }
0x1422   :  { %v6252_v17 = vmul.f32 0.35355338, %v3845_v22  ;;  %3740 = vmax.xlane.f32.xlu1 %v3739_v43 }
0x1424   :  { %v3853_v47 = vsel %vm123_vm1, %v6252_v17, -inf }
0x1425   :  { %3854 = vmax.xlane.f32.xlu0 %v3853_v47 }
0x1426   :  { %v3962_v59 = vpop.f32.mrf.mxu0 }
0x1427   :  { %v6256_v52 = vmul.f32 0.35355338, %v3962_v59 }
0x1429   :  { %v3848_v53 = vpop.f32.mrf.mxu2  ;;  %v3970_v13 = vsel %vm123_vm1, %v6256_v52, -inf }
0x142a   :  { %v6260_v33 = vmul.f32 0.35355338, %v3848_v53  ;;  %3971 = vmax.xlane.f32.xlu1 %v3970_v13 }
0x142c   :  { %v3856_v56 = vsel %vm123_vm1, %v6260_v33, -inf }
0x142d   :  { %3857 = vmax.xlane.f32.xlu0 %v3856_v56 }
0x142e   :  { %v3965_v50 = vpop.f32.mrf.mxu0 }
0x142f   :  { %v6264_v15 = vmul.f32 0.35355338, %v3965_v50 }
0x1431   :  { %v3973_v35 = vsel %vm123_vm1, %v6264_v15, -inf }
0x1435   :  { %3974 = vmax.xlane.f32.xlu0 %v3973_v35 }
0x144c   :  { %v3241_v10 = vpop.xlane.xlu1 %3240 }
0x144d   :  { %v3245_v9 = vsub.f32 %v6204_v3, %v3241_v10  ;;  %v4712_v10 = vunpack.i.h.bf16 %v6200_v41 }
0x144f   :  { %v3247_v0 = vmul.f32 1.442695, %v3245_v9 }
0x1451   :  { %4869 = vpow2.f32 %v3247_v0 }
0x1454   :  { %v3244_v11 = vpop.xlane.xlu0 %3243 }
0x1455   :  { %v3246_v31 = vsub.f32 %v6208_v58, %v3244_v11 }
0x1457   :  { %v6270_v27 = vpop.eup %4869  ;;  %v3249_v5 = vmul.f32 1.442695, %v3246_v31  ;;  %v3358_v61 = vpop.xlane.xlu2 %3357 }
0x1458   :  { %v3362_v4 = vsub.f32 %v6212_v19, %v3358_v61  ;;  %v3251_v62 = vsel %vm123_vm1, %v6270_v27, 0.0 }
0x1459   :  { %4871 = vpow2.f32 %v3249_v5  ;;  %3252 = vadd.xlane.f32.xlu2 %v3251_v62 }
0x145a   :  { %v3364_v21 = vmul.f32 1.442695, %v3362_v4 }
0x145c   :  { %4873 = vpow2.f32 %v3364_v21  ;;  %v3475_v16 = vpop.xlane.xlu1 %3474 }
0x145d   :  { %v3479_v3 = vsub.f32 %v6216_v12, %v3475_v16 }
0x145f   :  { %v6276_v45 = vpop.eup %4871  ;;  %v3481_v46 = vmul.f32 1.442695, %v3479_v3  ;;  %v3361_v58 = vpop.xlane.xlu0 %3360 }
0x1460   :  { %v3136_v34 = vpop.xlane.xlu2 %3135  ;;  %v3363_v18 = vsub.f32 %v6220_v24, %v3361_v58  ;;  %v3254_v19 = vsel %vm123_vm1, %v6276_v45, 0.0 }
0x1461   :  { %4875 = vrcp.f32 %v3136_v34  ;;  %3255 = vadd.xlane.f32.xlu2 %v3254_v19  ;;  %v3151_v6 = vand.u32 2147483648, %v3136_v34  ;;  %v3149_v22 = vand.u32 2147483647, %v3136_v34  ;;  %vm3145_vm12 = vweird.f32 %v3136_v34 }
0x1462   :  { %4877 = vpow2.f32 %v3481_v46  ;;  %v6281_v37 = vpop.eup %4873  ;;  %v3366_v32 = vmul.f32 1.442695, %v3363_v18 }
0x1463   :  { %v3368_v40 = vsel %vm123_vm1, %v6281_v37, 0.0  ;;  %vm3150_vm14 = vcmp.eq.f32.partialorder %v3149_v22, 8.507059e+37 }
0x1464   :  { %4879 = vpow2.f32 %v3366_v32  ;;  %3369 = vadd.xlane.f32.xlu1 %v3368_v40 }
0x1467   :  { %v4876_v12 = vpop.eup %4875  ;;  %v3621_v8 = vpop.xlane.xlu1 %3620 }
0x1468   :  { %v6285_v1 = vpop.eup %4877  ;;  %v3141_v28 = vmul.f32 %v4876_v12, %v3136_v34  ;;  %v3478_v24 = vpop.xlane.xlu2 %3477  ;;  %v3625_v55 = vsub.f32 %v6230_v60, %v3621_v8  ;;  %vm3146_vm11 = vweird.f32 %v4876_v12 }
0x1469   :  { %v3480_v36 = vsub.f32 %v6228_v48, %v3478_v24  ;;  %v3485_v25 = vsel %vm123_vm1, %v6285_v1, 0.0  ;;  %vm3147_vm13 = vmor %vm3145_vm12, %vm3146_vm11  ;;  %v3152_v48 = vor.u32 1.1754944e-38, %v3151_v6 }
0x146a   :  { %v3142_v20 = vsub.f32 1.0, %v3141_v28  ;;  %v6291_v26 = vpop.eup %4879  ;;  %v3627_v54 = vmul.f32 1.442695, %v3625_v55  ;;  %3486 = vadd.xlane.f32.xlu2 %v3485_v25 }
0x146b   :  { %v3483_v14 = vmul.f32 1.442695, %v3480_v36  ;;  %v3371_v43 = vsel %vm123_vm1, %v6291_v26, 0.0 }
0x146c   :  { %v3143_v42 = vmul.f32 %v4876_v12, %v3142_v20  ;;  %4881 = vpow2.f32 %v3627_v54  ;;  %3372 = vadd.xlane.f32.xlu1 %v3371_v43 }
0x146d   :  { %4883 = vpow2.f32 %v3483_v14 }
0x146e   :  { %v3144_v60 = vadd.f32 %v4876_v12, %v3143_v42 }
0x146f   :  { %v3139_v59 = vpop.xlane.xlu1 %3138 }
0x1470   :  { %v3148_v47 = vsel %vm3147_vm13, %v4876_v12, %v3144_v60  ;;  %v3624_v53 = vpop.xlane.xlu2 %3623  ;;  %4885 = vrcp.f32 %v3139_v59  ;;  %v3166_v61 = vand.u32 2147483648, %v3139_v59  ;;  %v3164_v62 = vand.u32 2147483647, %v3139_v59 }
0x1471   :  { %v3153_v13 = vsel %vm3150_vm14, %v3152_v48, %v3148_v47  ;;  %v3626_v56 = vsub.f32 %v6238_v44, %v3624_v53  ;;  %vm3160_vm4 = vweird.f32 %v3139_v59 }
0x1472   :  { %v3154_v50 = vmul.f32 %v6222_v57, %v3153_v13  ;;  %v6297_v35 = vpop.eup %4881  ;;  %v3167_v3 = vor.u32 1.1754944e-38, %v3166_v61  ;;  %vm3165_vm7 = vcmp.eq.f32.partialorder %v3164_v62, 8.507059e+37 }
0x1473   :  { %v6300_v9 = vpop.eup %4883  ;;  %v3629_v0 = vmul.f32 1.442695, %v3626_v56  ;;  %v3631_v11 = vsel %vm123_vm1, %v6297_v35, 0.0 }
0x1474   :  { %4554 = vmatmul.msk.f32.vlgmr.msra.gmra.mxu3 %vm123_vm1, %v3154_v50  ;;  %3632 = vadd.xlane.f32.xlu0 %v3631_v11  ;;  %v3488_v31 = vsel %vm123_vm1, %v6300_v9, 0.0 }
0x1475   :  { %3691 = vmatpush.msra.mxu3 %v4712_v10  ;;  %4887 = vpow2.f32 %v3629_v0  ;;  %3489 = vadd.xlane.f32.xlu1 %v3488_v31 }
0x1476   :  { %v4886_v57 = vpop.eup %4885 }
0x1477   :  { %v3156_v44 = vmul.f32 %v4886_v57, %v3139_v59  ;;  %vm3161_vm15 = vweird.f32 %v4886_v57 }
0x1478   :  { %vm3162_vm5 = vmor %vm3160_vm4, %vm3161_vm15 }
0x1479   :  { %v3157_v5 = vsub.f32 1.0, %v3156_v44 }
0x147b   :  { %v6307_v41 = vpop.eup %4887  ;;  %v3158_v4 = vmul.f32 %v4886_v57, %v3157_v5 }
0x147c   :  { %v3634_v21 = vsel %vm123_vm1, %v6307_v41, 0.0 }
0x147d   :  { %3635 = vadd.xlane.f32.xlu1 %v3634_v21  ;;  %v3159_v16 = vadd.f32 %v4886_v57, %v3158_v4 }
0x147f   :  { %v3163_v46 = vsel %vm3162_vm5, %v4886_v57, %v3159_v16 }
0x1480   :  { %v3168_v58 = vsel %vm3165_vm7, %v3167_v3, %v3163_v46 }
0x1481   :  { %v3169_v34 = vmul.f32 %v6236_v2, %v3168_v58 }
0x1483   :  { %4555 = vmatmul.msk.f32.gmra.mxu3 %vm123_vm1, %v3169_v34 }
0x1488   :  { %3521 = vrot.lane.b32.xlu0 %v6130_v29, %s4987_s25 }
0x148d   :  { %v3738_v18 = vpop.xlane.xlu0 %3737 }
0x148e   :  { %v3742_v19 = vsub.f32 %v6244_v39, %v3738_v18 }
0x1490   :  { %v3744_v32 = vmul.f32 1.442695, %v3742_v19 }
0x1492   :  { %4889 = vpow2.f32 %v3744_v32 }
0x1495   :  { %v3741_v14 = vpop.xlane.xlu1 %3740 }
0x1496   :  { %v3743_v42 = vsub.f32 %v6248_v51, %v3741_v14 }
0x1498   :  { %v6316_v40 = vpop.eup %4889  ;;  %v3855_v12 = vpop.xlane.xlu0 %3854  ;;  %v3746_v22 = vmul.f32 1.442695, %v3743_v42 }
0x1499   :  { %v3748_v28 = vsel %vm123_vm1, %v6316_v40, 0.0  ;;  %v3859_v2 = vsub.f32 %v6252_v17, %v3855_v12 }
0x149a   :  { %3749 = vadd.xlane.f32.xlu2 %v3748_v28 }
0x149b   :  { %v3861_v36 = vmul.f32 1.442695, %v3859_v2 }
0x149d   :  { %v3972_v43 = vpop.xlane.xlu1 %3971 }
0x149e   :  { %v3976_v48 = vsub.f32 %v6256_v52, %v3972_v43 }
0x14a0   :  { %v3858_v8 = vpop.xlane.xlu0 %3857  ;;  %v3978_v59 = vmul.f32 1.442695, %v3976_v48 }
0x14a1   :  { %v3860_v24 = vsub.f32 %v6260_v33, %v3858_v8 }
0x14a3   :  { %v3863_v55 = vmul.f32 1.442695, %v3860_v24 }
0x14a5   :  { %4891 = vpow2.f32 %v3863_v55 }
0x14a6   :  { %4893 = vpow2.f32 %v3861_v36 }
0x14a8   :  { %v3975_v29 = vpop.xlane.xlu0 %3974 }
0x14a9   :  { %v3977_v39 = vsub.f32 %v6264_v15, %v3975_v29 }
0x14ab   :  { %v6323_v25 = vpop.eup %4891  ;;  %v3980_v20 = vmul.f32 1.442695, %v3977_v39 }
0x14ac   :  { %v3868_v6 = vsel %vm123_vm1, %v6323_v25, 0.0  ;;  %v6327_v54 = vpop.eup %4893 }
0x14ad   :  { %4895 = vpow2.f32 %v3980_v20  ;;  %3869 = vadd.xlane.f32.xlu1 %v3868_v6  ;;  %v3865_v17 = vsel %vm123_vm1, %v6327_v54, 0.0 }
0x14b2   :  { %3784 = vrot.lane.b32.xlu2 %v6158_v30, %s4984_s16  ;;  %3866 = vadd.xlane.f32.xlu0 %v3865_v17  ;;  %s4997_s16 = smov [#allocation2]  }
0x14b3   :  { %v6333_v33 = vpop.eup %4895  ;;  %s4394_s17 = sshll.u32 %s4997_s16, 4  ;;  %s4395_s17 = int_to_ptr.vmem [resolvable:$true] %s4394_s17 }
0x14b4   :  { %v3985_v15 = vsel %vm123_vm1, %v6333_v33, 0.0 }
0x14b5   :  { %3986 = vadd.xlane.f32.xlu1 %v3985_v15 }
0x14cc   :  { %v3253_v60 = vpop.xlane.xlu2 %3252 }
0x14cd   :  { %4897 = vrcp.f32 %v3253_v60  ;;  %v3268_v51 = vand.u32 2147483648, %v3253_v60  ;;  %v3266_v11 = vand.u32 2147483647, %v3253_v60  ;;  %vm3262_vm9 = vweird.f32 %v3253_v60 }
0x14ce   :  { %3901 = vrot.lane.b32.xlu1 %v6158_v30, %s4989_s27  ;;  %4899 = vpow2.f32 %v3746_v22 }
0x14cf   :  { %v3269_v57 = vor.u32 1.1754944e-38, %v3268_v51  ;;  %vm3267_vm11 = vcmp.eq.f32.partialorder %v3266_v11, 8.507059e+37 }
0x14d3   :  { %v4898_v47 = vpop.eup %4897 }
0x14d4   :  { %v3258_v53 = vmul.f32 %v4898_v47, %v3253_v60  ;;  %v3256_v13 = vpop.xlane.xlu2 %3255  ;;  %v6341_v56 = vpop.eup %4899  ;;  %vm3263_vm8 = vweird.f32 %v4898_v47 }
0x14d5   :  { %4901 = vrcp.f32 %v3256_v13  ;;  %v3751_v31 = vsel %vm123_vm1, %v6341_v56, 0.0  ;;  %vm3264_vm10 = vmor %vm3262_vm9, %vm3263_vm8  ;;  %v3281_v18 = vand.u32 2147483647, %v3256_v13  ;;  %v3283_v19 = vand.u32 2147483648, %v3256_v13 }
0x14d6   :  { %v3259_v50 = vsub.f32 1.0, %v3258_v53  ;;  %4903 = vpow2.f32 %v3978_v59  ;;  %vm3277_vm13 = vweird.f32 %v3256_v13 }
0x14d7   :  { %v3370_v10 = vpop.xlane.xlu1 %3369  ;;  %vm3282_vm4 = vcmp.eq.f32.partialorder %v3281_v18, 8.507059e+37  ;;  %v3284_v36 = vor.u32 1.1754944e-38, %v3283_v19 }
0x14d8   :  { %v3260_v0 = vmul.f32 %v4898_v47, %v3259_v50  ;;  %4905 = vrcp.f32 %v3370_v10  ;;  %v3385_v8 = vand.u32 2147483648, %v3370_v10  ;;  %v3383_v24 = vand.u32 2147483647, %v3370_v10 }
0x14d9   :  { %vm3379_vm5 = vweird.f32 %v3370_v10 }
0x14da   :  { %v3261_v52 = vadd.f32 %v4898_v47, %v3260_v0  ;;  %v3386_v17 = vor.u32 1.1754944e-38, %v3385_v8  ;;  %vm3384_vm8 = vcmp.eq.f32.partialorder %v3383_v24, 8.507059e+37 }
0x14db   :  { %3752 = vadd.xlane.f32.xlu2 %v3751_v31  ;;  %v4902_v44 = vpop.eup %4901 }
0x14dc   :  { %v3265_v5 = vsel %vm3264_vm10, %v4898_v47, %v3261_v52  ;;  %v6345_v61 = vpop.eup %4903  ;;  %v3273_v62 = vmul.f32 %v4902_v44, %v3256_v13  ;;  %vm3278_vm12 = vweird.f32 %v4902_v44 }
0x14dd   :  { %v3270_v4 = vsel %vm3267_vm11, %v3269_v57, %v3265_v5  ;;  %v6347_v21 = vpop.xlane.xlu2 %3486  ;;  %v3982_v28 = vsel %vm123_vm1, %v6345_v61, 0.0  ;;  %vm3279_vm15 = vmor %vm3277_vm13, %vm3278_vm12 }
0x14de   :  { %v4906_v16 = vpop.eup %4905  ;;  %v3271_v3 = vmul.f32 %v6270_v27, %v3270_v4  ;;  %4907 = vrcp.f32 %v6347_v21  ;;  %v3274_v46 = vsub.f32 1.0, %v3273_v62  ;;  %v3502_v62 = vand.u32 2147483648, %v6347_v21 }
0x14df   :  { %v3375_v58 = vmul.f32 %v4906_v16, %v3370_v10  ;;  %v3373_v34 = vpop.xlane.xlu1 %3372  ;;  %vm3380_vm14 = vweird.f32 %v4906_v16 }
0x14e0   :  { %4909 = vrcp.f32 %v3373_v34  ;;  %4559 = vmatmul.msk.f32.vlgmr.msra.gmra.mxu1 %vm123_vm1, %v3271_v3  ;;  %v3275_v32 = vmul.f32 %v4902_v44, %v3274_v46  ;;  %vm3381_vm7 = vmor %vm3379_vm5, %vm3380_vm14  ;;  %v3400_v53 = vand.u32 2147483648, %v3373_v34  ;;  %v3398_v51 = vand.u32 2147483647, %v3373_v34 }
0x14e1   :  { %v3376_v12 = vsub.f32 1.0, %v3375_v58  ;;  %vm3394_vm10 = vweird.f32 %v3373_v34  ;;  %vm3496_vm14 = vweird.f32 %v6347_v21  ;;  %v3500_v3 = vand.u32 2147483647, %v6347_v21 }
0x14e2   :  { %v3276_v27 = vadd.f32 %v4902_v44, %v3275_v32  ;;  %v3401_v11 = vor.u32 1.1754944e-38, %v3400_v53  ;;  %vm3399_vm12 = vcmp.eq.f32.partialorder %v3398_v51, 8.507059e+37 }
0x14e3   :  { %3983 = vadd.xlane.f32.xlu2 %v3982_v28  ;;  %v3377_v2 = vmul.f32 %v4906_v16, %v3376_v12  ;;  %v3503_v28 = vor.u32 1.1754944e-38, %v3502_v62 }
0x14e4   :  { %v6354_v55 = vpop.eup %4907  ;;  %v3280_v20 = vsel %vm3279_vm15, %v4902_v44, %v3276_v27 }
0x14e5   :  { %v3378_v29 = vadd.f32 %v4906_v16, %v3377_v2  ;;  %v3492_v39 = vmul.f32 %v6354_v55, %v6347_v21  ;;  %v3285_v15 = vsel %vm3282_vm4, %v3284_v36, %v3280_v20  ;;  %vm3497_vm13 = vweird.f32 %v6354_v55 }
0x14e6   :  { %v4910_v6 = vpop.eup %4909  ;;  %v3286_v43 = vmul.f32 %v6276_v45, %v3285_v15  ;;  %vm3498_vm15 = vmor %vm3496_vm14, %vm3497_vm13 }
0x14e7   :  { %v3382_v14 = vsel %vm3381_vm7, %v4906_v16, %v3378_v29  ;;  %v3390_v42 = vmul.f32 %v4910_v6, %v3373_v34  ;;  %v3633_v22 = vpop.xlane.xlu0 %3632  ;;  %v3493_v48 = vsub.f32 1.0, %v3492_v39  ;;  %vm3395_vm9 = vweird.f32 %v4910_v6 }
0x14e8   :  { %v3387_v60 = vsel %vm3384_vm8, %v3386_v17, %v3382_v14  ;;  %4911 = vrcp.f32 %v3633_v22  ;;  %v6359_v47 = vpop.xlane.xlu1 %3489  ;;  %4560 = vmatmul.msk.f32.gmra.mxu1 %vm123_vm1, %v3286_v43  ;;  %vm3396_vm11 = vmor %vm3394_vm10, %vm3395_vm9  ;;  %v3648_v46 = vand.u32 2147483648, %v3633_v22  ;;  %v3646_v19 = vand.u32 2147483647, %v3633_v22 }
0x14e9   :  { %v3391_v59 = vsub.f32 1.0, %v3390_v42  ;;  %4913 = vrcp.f32 %v6359_v47  ;;  %v3388_v50 = vmul.f32 %v6281_v37, %v3387_v60  ;;  %v3494_v10 = vmul.f32 %v6354_v55, %v3493_v48 }
0x14ea   :  { %vm3642_vm5 = vweird.f32 %v3633_v22  ;;  %vm3501_vm7 = vcmp.eq.f32.partialorder %v3500_v3, 8.507059e+37  ;;  %v3649_v21 = vor.u32 1.1754944e-38, %v3648_v46  ;;  %vm3647_vm9 = vcmp.eq.f32.partialorder %v3646_v19, 8.507059e+37 }
0x14eb   :  { %v3392_v13 = vmul.f32 %v4910_v6, %v3391_v59  ;;  %4564 = vmatmul.msk.f32.vlgmr.msrb.gmra.mxu3 %vm123_vm1, %v3388_v50  ;;  %v3495_v44 = vadd.f32 %v6354_v55, %v3494_v10  ;;  %v3517_v39 = vand.u32 2147483648, %v6359_v47 }
0x14ed   :  { %v3393_v45 = vadd.f32 %v4910_v6, %v3392_v13  ;;  %v3499_v32 = vsel %vm3498_vm15, %v6354_v55, %v3495_v44  ;;  %v3518_v43 = vor.u32 1.1754944e-38, %v3517_v39 }
0x14ee   :  { %v4912_v0 = vpop.eup %4911  ;;  %v3504_v2 = vsel %vm3501_vm7, %v3503_v28, %v3499_v32 }
0x14ef   :  { %v6366_v31 = vpop.eup %4913  ;;  %v3638_v52 = vmul.f32 %v4912_v0, %v3633_v22  ;;  %v3397_v57 = vsel %vm3396_vm11, %v4910_v6, %v3393_v45  ;;  %vm3643_vm4 = vweird.f32 %v4912_v0  ;;  %v3505_v20 = vmul.f32 %v6285_v1, %v3504_v2 }
0x14f0   :  { %v3507_v37 = vmul.f32 %v6366_v31, %v6359_v47  ;;  %v3636_v5 = vpop.xlane.xlu1 %3635  ;;  %v3402_v4 = vsel %vm3399_vm12, %v3401_v11, %v3397_v57  ;;  %vm3644_vm8 = vmor %vm3642_vm5, %vm3643_vm4  ;;  %vm3512_vm10 = vweird.f32 %v6366_v31  ;;  %vm3511_vm11 = vweird.f32 %v6359_v47 }
0x14f1   :  { %v3639_v16 = vsub.f32 1.0, %v3638_v52  ;;  %4915 = vrcp.f32 %v3636_v5  ;;  %v3403_v34 = vmul.f32 %v6291_v26, %v3402_v4  ;;  %v3515_v6 = vand.u32 2147483647, %v6359_v47  ;;  %vm6388_vm12 = vmor %vm3511_vm11, %vm3512_vm10 }
0x14f2   :  { %v3508_v58 = vsub.f32 1.0, %v3507_v37  ;;  %v3663_v42 = vand.u32 2147483648, %v3636_v5  ;;  %v3661_v22 = vand.u32 2147483647, %v3636_v5  ;;  %vm3657_vm15 = vweird.f32 %v3636_v5 }
0x14f3   :  { %v3640_v18 = vmul.f32 %v4912_v0, %v3639_v16  ;;  %4565 = vmatmul.msk.f32.gmra.mxu3 %vm123_vm1, %v3403_v34  ;;  %vm3516_vm14 = vcmp.eq.f32.partialorder %v3515_v6, 8.507059e+37 }
0x14f4   :  { %v3509_v12 = vmul.f32 %v6366_v31, %v3508_v58  ;;  %v3664_v60 = vor.u32 1.1754944e-38, %v3663_v42  ;;  %vm3662_vm5 = vcmp.eq.f32.partialorder %v3661_v22, 8.507059e+37 }
0x14f5   :  { %v3641_v8 = vadd.f32 %v4912_v0, %v3640_v18 }
0x14f6   :  { %v3510_v36 = vadd.f32 %v6366_v31, %v3509_v12 }
0x14f7   :  { %v4916_v27 = vpop.eup %4915  ;;  %v3645_v24 = vsel %vm3644_vm8, %v4912_v0, %v3641_v8 }
0x14f8   :  { %v3650_v26 = vsel %vm3647_vm9, %v3649_v21, %v3645_v24  ;;  %v3653_v55 = vmul.f32 %v4916_v27, %v3636_v5  ;;  %vm3658_vm13 = vweird.f32 %v4916_v27  ;;  %v3514_v1 = vsel %vm6388_vm12, %v6366_v31, %v3510_v36 }
0x14f9   :  { %v3651_v29 = vmul.f32 %v6297_v35, %v3650_v26  ;;  %vm3659_vm4 = vmor %vm3657_vm15, %vm3658_vm13  ;;  %v3519_v48 = vsel %vm3516_vm14, %v3518_v43, %v3514_v1 }
0x14fa   :  { %v3654_v17 = vsub.f32 1.0, %v3653_v55  ;;  %v3522_v15 = vpop.permute.xlu0 %3521  ;;  %v3520_v13 = vmul.f32 %v6300_v9, %v3519_v48 }
0x14fb   :  { %4018 = vrot.lane.b32.xlu2 %v6158_v30, %s4987_s25  ;;  %3545 = vmatpush.msrb.mxu1 %v3522_v15 }
0x14fc   :  { %v3655_v35 = vmul.f32 %v4916_v27, %v3654_v17  ;;  %4569 = vmatmul.msk.f32.vlgmr.msrb.gmra.mxu1 %vm123_vm1, %v3505_v20  ;;  %4574 = vmatmul.msk.f32.vlgmr.msra.gmra.mxu3 %vm123_vm1, %v3651_v29 }
0x14fe   :  { %v3656_v30 = vadd.f32 %v4916_v27, %v3655_v35 }
0x1500   :  { %v3660_v47 = vsel %vm3659_vm4, %v4916_v27, %v3656_v30 }
0x1501   :  { %v3665_v59 = vsel %vm3662_vm5, %v3664_v60, %v3660_v47 }
0x1502   :  { %v3666_v53 = vmul.f32 %v6307_v41, %v3665_v59 }
0x1504   :  { %4570 = vmatmul.msk.f32.gmra.mxu1 %vm123_vm1, %v3520_v13  ;;  %4575 = vmatmul.msk.f32.gmra.mxu3 %vm123_vm1, %v3666_v53 }
0x150d   :  { %v3750_v50 = vpop.xlane.xlu2 %3749 }
0x150e   :  { %4917 = vrcp.f32 %v3750_v50  ;;  %v3765_v11 = vand.u32 2147483648, %v3750_v50  ;;  %v3763_v52 = vand.u32 2147483647, %v3750_v50  ;;  %vm3759_vm8 = vweird.f32 %v3750_v50 }
0x1510   :  { %v3766_v41 = vor.u32 1.1754944e-38, %v3765_v11  ;;  %vm3764_vm10 = vcmp.eq.f32.partialorder %v3763_v52, 8.507059e+37 }
0x1514   :  { %v4918_v51 = vpop.eup %4917 }
0x1515   :  { %v3755_v10 = vmul.f32 %v4918_v51, %v3750_v50  ;;  %v3785_v45 = vpop.permute.xlu2 %3784  ;;  %vm3760_vm7 = vweird.f32 %v4918_v51 }
0x1516   :  { %3808 = vmatpush.msra.mxu1 %v3785_v45  ;;  %vm3761_vm9 = vmor %vm3759_vm8, %vm3760_vm7 }
0x1517   :  { %v3756_v0 = vsub.f32 1.0, %v3755_v10 }
0x1519   :  { %v3757_v31 = vmul.f32 %v4918_v51, %v3756_v0  ;;  %v6413_v0 = vpop.f32.mrf.mxu3 }
0x151b   :  { %v3758_v57 = vadd.f32 %v4918_v51, %v3757_v31 }
0x151d   :  { %v3762_v9 = vsel %vm3761_vm9, %v4918_v51, %v3758_v57 }
0x151e   :  { %v3767_v44 = vsel %vm3764_vm10, %v3766_v41, %v3762_v9 }
0x151f   :  { %v3768_v37 = vmul.f32 %v6316_v40, %v3767_v44 }
0x1520   :  { %v3870_v5 = vpop.xlane.xlu1 %3869 }
0x1521   :  { %4579 = vmatmul.msk.f32.vlgmr.msra.gmra.mxu1 %vm123_vm1, %v3768_v37  ;;  %v3897_v24 = vand.u32 2147483648, %v3870_v5  ;;  %vm3891_vm4 = vweird.f32 %v3870_v5  ;;  %v3895_v26 = vand.u32 2147483647, %v3870_v5 }
0x1523   :  { %v3898_v39 = vor.u32 1.1754944e-38, %v3897_v24  ;;  %vm3896_vm7 = vcmp.eq.f32.partialorder %v3895_v26, 8.507059e+37 }
0x1525   :  { %v3867_v4 = vpop.xlane.xlu0 %3866 }
0x1526   :  { %4919 = vrcp.f32 %v3867_v4  ;;  %v3882_v32 = vand.u32 2147483648, %v3867_v4  ;;  %vm3876_vm12 = vweird.f32 %v3867_v4  ;;  %v3880_v12 = vand.u32 2147483647, %v3867_v4 }
0x1527   :  { %4921 = vrcp.f32 %v3870_v5 }
0x1528   :  { %v6403_v28 = vpop.xlane.xlu1 %3986  ;;  %v3883_v21 = vor.u32 1.1754944e-38, %v3882_v32  ;;  %vm3881_vm14 = vcmp.eq.f32.partialorder %v3880_v12, 8.507059e+37 }
0x152c   :  { %v4920_v62 = vpop.eup %4919 }
0x152d   :  { %v3872_v16 = vmul.f32 %v4920_v62, %v3867_v4  ;;  %v4922_v3 = vpop.eup %4921  ;;  %vm3877_vm11 = vweird.f32 %v4920_v62  ;;  %v4012_v4 = vand.u32 2147483647, %v6403_v28 }
0x152e   :  { %v3887_v58 = vmul.f32 %v4922_v3, %v3870_v5  ;;  %vm3878_vm13 = vmor %vm3876_vm12, %vm3877_vm11  ;;  %vm3892_vm15 = vweird.f32 %v4922_v3  ;;  %v4014_v5 = vand.u32 2147483648, %v6403_v28 }
0x152f   :  { %v3873_v46 = vsub.f32 1.0, %v3872_v16  ;;  %vm3893_vm5 = vmor %vm3891_vm4, %vm3892_vm15  ;;  %v3199_v16 = vpop.f32.mrf.mxu3 }
0x1530   :  { %v3888_v18 = vsub.f32 1.0, %v3887_v58 }
0x1531   :  { %v3874_v34 = vmul.f32 %v4920_v62, %v3873_v46  ;;  %v4015_v46 = vor.u32 1.1754944e-38, %v4014_v5 }
0x1532   :  { %v3889_v40 = vmul.f32 %v4922_v3, %v3888_v18 }
0x1533   :  { %v3875_v19 = vadd.f32 %v4920_v62, %v3874_v34 }
0x1534   :  { %v3890_v2 = vadd.f32 %v4922_v3, %v3889_v40 }
0x1535   :  { %v3879_v8 = vsel %vm3878_vm13, %v4920_v62, %v3875_v19 }
0x1536   :  { %v3884_v27 = vsel %vm3881_vm14, %v3883_v21, %v3879_v8  ;;  %v3894_v29 = vsel %vm3893_vm5, %v4922_v3, %v3890_v2  ;;  %vm4008_vm5 = vweird.f32 %v6403_v28 }
0x1537   :  { %v3885_v36 = vmul.f32 %v6327_v54, %v3884_v27  ;;  %v3899_v20 = vsel %vm3896_vm7, %v3898_v39, %v3894_v29 }
0x1538   :  { %v3900_v6 = vmul.f32 %v6323_v25, %v3899_v20 }
0x1540   :  { %v3902_v55 = vpop.permute.xlu1 %3901 }
0x1541   :  { %3925 = vmatpush.msrb.mxu3 %v3902_v55 }
0x1542   :  { %4584 = vmatmul.msk.f32.vlgmr.msrb.gmra.mxu3 %vm123_vm1, %v3885_v36 }
0x154a   :  { %4585 = vmatmul.msk.f32.gmra.mxu3 %vm123_vm1, %v3900_v6 }
0x154e   :  { %v3753_v17 = vpop.xlane.xlu2 %3752 }
0x154f   :  { %4923 = vrcp.f32 %v3753_v17  ;;  %v3780_v22 = vand.u32 2147483648, %v3753_v17  ;;  %v3778_v30 = vand.u32 2147483647, %v3753_v17  ;;  %vm3774_vm9 = vweird.f32 %v3753_v17 }
0x1550   :  { %4925 = vrcp.f32 %v6403_v28 }
0x1551   :  { %v3781_v48 = vor.u32 1.1754944e-38, %v3780_v22  ;;  %vm3779_vm11 = vcmp.eq.f32.partialorder %v3778_v30, 8.507059e+37 }
0x1555   :  { %v4924_v15 = vpop.eup %4923 }
0x1556   :  { %v3770_v14 = vmul.f32 %v4924_v15, %v3753_v17  ;;  %v3984_v54 = vpop.xlane.xlu2 %3983  ;;  %v4926_v42 = vpop.eup %4925  ;;  %vm3775_vm8 = vweird.f32 %v4924_v15 }
0x1557   :  { %4927 = vrcp.f32 %v3984_v54  ;;  %v4004_v1 = vmul.f32 %v4926_v42, %v6403_v28  ;;  %vm3776_vm10 = vmor %vm3774_vm9, %vm3775_vm8  ;;  %v3999_v11 = vand.u32 2147483648, %v3984_v54  ;;  %v3997_v57 = vand.u32 2147483647, %v3984_v54 }
0x1558   :  { %v3771_v35 = vsub.f32 1.0, %v3770_v14  ;;  %vm3993_vm13 = vweird.f32 %v3984_v54  ;;  %vm4009_vm15 = vweird.f32 %v4926_v42  ;;  %vm4013_vm8 = vcmp.eq.f32.partialorder %v4012_v4, 8.507059e+37 }
0x1559   :  { %v4005_v47 = vsub.f32 1.0, %v4004_v1  ;;  %v4000_v9 = vor.u32 1.1754944e-38, %v3999_v11  ;;  %vm3998_vm4 = vcmp.eq.f32.partialorder %v3997_v57, 8.507059e+37  ;;  %vm4010_vm7 = vmor %vm4008_vm5, %vm4009_vm15 }
0x155a   :  { %v3772_v43 = vmul.f32 %v4924_v15, %v3771_v35 }
0x155b   :  { %v4006_v31 = vmul.f32 %v4926_v42, %v4005_v47 }
0x155c   :  { %v3773_v60 = vadd.f32 %v4924_v15, %v3772_v43 }
0x155d   :  { %v4928_v25 = vpop.eup %4927  ;;  %v3313_v53 = vpop.f32.mrf.mxu1  ;;  %v4007_v44 = vadd.f32 %v4926_v42, %v4006_v31 }
0x155e   :  { %v3989_v59 = vmul.f32 %v4928_v25, %v3984_v54  ;;  %v4019_v13 = vpop.permute.xlu2 %4018  ;;  %v3777_v50 = vsel %vm3776_vm10, %v4924_v15, %v3773_v60  ;;  %3555 = vrot.lane.b32.xlu0 %v3313_v53, %s4988_s26  ;;  %vm3994_vm12 = vweird.f32 %v4928_v25 }
0x155f   :  { %4042 = vmatpush.msrb.mxu1 %v4019_v13  ;;  %v3782_v51 = vsel %vm3779_vm11, %v3781_v48, %v3777_v50  ;;  %vm3995_vm14 = vmor %vm3993_vm13, %vm3994_vm12  ;;  %v4011_v3 = vsel %vm4010_vm7, %v4926_v42, %v4007_v44 }
0x1560   :  { %v3990_v10 = vsub.f32 1.0, %v3989_v59  ;;  %v3783_v45 = vmul.f32 %v6341_v56, %v3782_v51  ;;  %v4016_v58 = vsel %vm4013_vm8, %v4015_v46, %v4011_v3 }
0x1561   :  { %v4017_v34 = vmul.f32 %v6333_v33, %v4016_v58 }
0x1562   :  { %v3991_v52 = vmul.f32 %v4928_v25, %v3990_v10  ;;  %4580 = vmatmul.msk.f32.gmra.mxu1 %vm123_vm1, %v3783_v45 }
0x1564   :  { %v3992_v41 = vadd.f32 %v4928_v25, %v3991_v52 }
0x1565   :  { %v3316_v19 = vpop.f32.mrf.mxu1 }
0x1566   :  { %v3996_v37 = vsel %vm3995_vm14, %v4928_v25, %v3992_v41 }
0x1567   :  { %v4001_v56 = vsel %vm3998_vm4, %v4000_v9, %v3996_v37 }
0x1568   :  { %v4002_v62 = vmul.f32 %v6345_v61, %v4001_v56 }
0x156a   :  { %4589 = vmatmul.msk.f32.vlgmr.msrb.gmra.mxu1 %vm123_vm1, %v4002_v62 }
0x156e   :  { %v3430_v18 = vpop.f32.mrf.mxu3 }
0x156f   :  { %3563 = vrot.lane.b32.xlu2 %v3430_v18, %s4990_s28 }
0x1572   :  { %4590 = vmatmul.msk.f32.gmra.mxu1 %vm123_vm1, %v4017_v34 }
0x1576   :  { %v3433_v61 = vpop.f32.mrf.mxu3 }
0x1577   :  { %3557 = vrot.lane.b32.xlu2 %v3316_v19, %s4988_s26 }
0x1579   :  { %v3547_v32 = vpop.f32.mrf.mxu1 }
0x157a   :  { %3571 = vrot.lane.b32.xlu1 %v3547_v32, %s4991_s10 }
0x157f   :  { %v3693_v33 = vpop.f32.mrf.mxu3 }
0x1581   :  { %v3550_v12 = vpop.f32.mrf.mxu1 }
0x1582   :  { %3565 = vrot.lane.b32.xlu1 %v3433_v61, %s4990_s28  ;;  %3573 = vrot.lane.b32.xlu2 %v3550_v12, %s4991_s10 }
0x1587   :  { %v3696_v40 = vpop.f32.mrf.mxu3 }
0x159e   :  { %v3810_v28 = vpop.f32.mrf.mxu1 }
0x159f   :  { %4052 = vrot.lane.b32.xlu0 %v3810_v28, %s4988_s26  ;;  %v4594_v28 = vld [vmem:[%s6590_s6 + $0x38] sm:$0xff] }
0x15a0   :  { %4212 = vmatpush.msrb.mxu2 %v4594_v28  ;;  %v4601_v28 = vld [vmem:[%s6591_s7 + $0x50] sm:$0xff] }
0x15c5   :  { %v3927_v8 = vpop.f32.mrf.mxu3 }
0x15c6   :  { %4060 = vrot.lane.b32.xlu1 %v3927_v8, %s4990_s28  ;;  %v4591_v8 = vld [vmem:[%s6590_s6 + $0x20] sm:$0xff] }
0x15c9   :  { %v3564_v2 = vpop.permute.xlu2 %3563 }
0x15cd   :  { %v3930_v21 = vpop.f32.mrf.mxu3 }
0x15ce   :  { %4062 = vrot.lane.b32.xlu1 %v3930_v21, %s4990_s28 }
0x15d0   :  { %v3556_v54 = vpop.permute.xlu0 %3555 }
0x15d1   :  { %v3558_v36 = vpop.permute.xlu2 %3557  ;;  %v3577_v42 = vsel %vm123_vm1, %v6413_v0, %v3556_v54 }
0x15d2   :  { %v3578_v29 = vsel %vm123_vm1, %v3199_v16, %v3558_v36  ;;  %v3579_v35 = vsel %vm158_vm2, %v3577_v42, %v3564_v2  ;;  %v6492_v42 = vld [vmem:[%s6592_s8 + $0x18] sm:$0xff] }
0x15dc   :  { %v3574_v20 = vpop.permute.xlu2 %3573 }
0x15df   :  { %v3813_v27 = vpop.f32.mrf.mxu1 }
0x15e0   :  { %4054 = vrot.lane.b32.xlu0 %v3813_v27, %s4988_s26 }
0x15e7   :  { %v4044_v24 = vpop.f32.mrf.mxu1 }
0x15e8   :  { %4068 = vrot.lane.b32.xlu2 %v4044_v24, %s4991_s10 }
0x15ec   :  { %v3572_v26 = vpop.permute.xlu1 %3571 }
0x15ed   :  { %v3581_v22 = vsel %vm487_vm6, %v3579_v35, %v3572_v26 }
0x15ee   :  { %v4080_v1 = vadd.f32 %v3581_v22, %v5914_v63  ;;  %v6497_v22 = vld [vmem:[%s6592_s8 + $0x10] sm:$0xff] }
0x15ef   :  { %v4047_v55 = vpop.f32.mrf.mxu1 }
0x15f0   :  { %4070 = vrot.lane.b32.xlu2 %v4047_v55, %s4991_s10  ;;  %v4084_v43 = vsel %vm46_vm0, %v4080_v1, 0.0 }
0x15f4   :  { %v3566_v39 = vpop.permute.xlu1 %3565 }
0x15f5   :  { %v3580_v6 = vsel %vm158_vm2, %v3578_v29, %v3566_v39 }
0x15f6   :  { %v3582_v17 = vsel %vm487_vm6, %v3580_v6, %v3574_v20 }
0x15f7   :  { %v4081_v15 = vadd.f32 %v3582_v17, %v5919_v38 }
0x15f9   :  { %v4087_v14 = vsel %vm46_vm0, %v4081_v15, 0.0 }
0x15fa   :  { %4088 = vadd.xlane.f32.xlu1 %v4087_v14 }
0x160a   :  { %4085 = vadd.xlane.f32.xlu0 %v4084_v43 }
0x1611   :  { %v4053_v30 = vpop.permute.xlu0 %4052 }
0x1612   :  { %v4074_v38 = vsel %vm123_vm1, %v3693_v33, %v4053_v30  ;;  %v4593_v33 = vld [vmem:[%s6590_s6 + $0x30] sm:$0xff] }
0x1613   :  { %4213 = vmatpush.msrb.mxu2 %v4593_v33  ;;  %v4600_v33 = vld [vmem:[%s6591_s7 + $0x48] sm:$0xff] }
0x1638   :  { %v4061_v60 = vpop.permute.xlu1 %4060 }
0x1639   :  { %v4076_v25 = vsel %vm158_vm2, %v4074_v38, %v4061_v60  ;;  %v4177_v60 = vperm.slane %v6492_v42, 0 }
0x1640   :  { %v4063_v50 = vpop.permute.xlu1 %4062 }
0x1642   :  { %v4069_v48 = vpop.permute.xlu2 %4068 }
0x1643   :  { %v4078_v47 = vsel %vm487_vm6, %v4076_v25, %v4069_v48 }
0x1644   :  { %v4082_v59 = vadd.f32 %v4078_v47, %v5925_v23 }
0x1646   :  { %v4090_v53 = vsel %vm46_vm0, %v4082_v59, 0.0 }
0x1647   :  { %4091 = vadd.xlane.f32.xlu2 %v4090_v53 }
0x164a   :  { %v4071_v51 = vpop.permute.xlu2 %4070 }
0x1652   :  { %v4055_v13 = vpop.permute.xlu0 %4054 }
0x1653   :  { %v4075_v63 = vsel %vm123_vm1, %v3696_v40, %v4055_v13  ;;  %v4592_v40 = vld [vmem:[%s6590_s6 + $0x28] sm:$0xff] }
0x1654   :  { %v4077_v10 = vsel %vm158_vm2, %v4075_v63, %v4063_v50  ;;  %4214 = vmatpush.msrb.mxu2 %v4592_v40  ;;  %v4599_v40 = vld [vmem:[%s6591_s7 + $0x40] sm:$0xff] }
0x1655   :  { %v4079_v45 = vsel %vm487_vm6, %v4077_v10, %v4071_v51 }
0x1656   :  { %v4083_v0 = vadd.f32 %v4079_v45, %v5930_v7  ;;  %4215 = vmatpush.msrb.mxu2 %v4591_v8  ;;  %v4606_v45 = vld [vmem:[%s6591_s7 + $0x78] sm:$0xff] }
0x1657   :  { %4263 = vmatpush.msra.mxu3 %v4606_v45 }
0x1658   :  { %v4093_v11 = vsel %vm46_vm0, %v4083_v0, 0.0 }
0x1659   :  { %4094 = vadd.xlane.f32.xlu0 %v4093_v11 }
0x166d   :  { %v4089_v31 = vpop.xlane.xlu1 %4088 }
0x166e   :  { %v4097_v23 = vmul.f32 %v4089_v31, %v5701_v49  ;;  %v4604_v31 = vld [vmem:[%s6591_s7 + $0x68] sm:$0xff] }
0x1670   :  { %v6456_v52 = vsub.f32 %v4081_v15, %v4097_v23 }
0x1672   :  { %v4105_v57 = vmul.f32 %v6456_v52, %v6456_v52 }
0x1674   :  { %v4111_v41 = vsel %vm46_vm0, %v4105_v57, 0.0 }
0x1675   :  { %4112 = vadd.xlane.f32.xlu2 %v4111_v41  ;;  %v4603_v41 = vld [vmem:[%s6591_s7 + $0x60] sm:$0xff] }
0x167d   :  { %v4086_v9 = vpop.xlane.xlu0 %4085 }
0x167e   :  { %v4096_v44 = vmul.f32 %v4086_v9, %v5701_v49 }
0x1680   :  { %v4100_v37 = vsub.f32 %v4080_v1, %v4096_v44  ;;  %v4172_v1 = vperm.slane %v6497_v22, 7 }
0x1682   :  { %v4104_v5 = vmul.f32 %v4100_v37, %v4100_v37 }
0x1684   :  { %v4108_v7 = vsel %vm46_vm0, %v4104_v5, 0.0 }
0x1685   :  { %4109 = vadd.xlane.f32.xlu1 %v4108_v7 }
0x16ba   :  { %v4092_v56 = vpop.xlane.xlu2 %4091 }
0x16bb   :  { %v4098_v4 = vmul.f32 %v4092_v56, %v5701_v49 }
0x16bd   :  { %v6464_v62 = vsub.f32 %v4082_v59, %v4098_v4 }
0x16bf   :  { %v4106_v16 = vmul.f32 %v6464_v62, %v6464_v62 }
0x16c1   :  { %v4114_v3 = vsel %vm46_vm0, %v4106_v16, 0.0 }
0x16c2   :  { %4115 = vadd.xlane.f32.xlu0 %v4114_v3 }
0x16cc   :  { %v4095_v46 = vpop.xlane.xlu0 %4094 }
0x16cd   :  { %v4099_v58 = vmul.f32 %v4095_v46, %v5701_v49 }
0x16cf   :  { %v6470_v34 = vsub.f32 %v4083_v0, %v4099_v58  ;;  %v4605_v0 = vld [vmem:[%s6591_s7 + $0x70] sm:$0xff] }
0x16d0   :  { %4264 = vmatpush.msra.mxu3 %v4605_v0 }
0x16d1   :  { %v4107_v18 = vmul.f32 %v6470_v34, %v6470_v34 }
0x16d2   :  { %4265 = vmatpush.msra.mxu3 %v4604_v31 }
0x16d3   :  { %v4117_v19 = vsel %vm46_vm0, %v4107_v18, 0.0 }
0x16d4   :  { %4118 = vadd.xlane.f32.xlu1 %v4117_v19  ;;  %4266 = vmatpush.msra.mxu3 %v4603_v41 }
0x16e8   :  { %v4113_v32 = vpop.xlane.xlu2 %4112 }
0x16e9   :  { %v4121_v61 = vmul.f32 %v4113_v32, %v5701_v49 }
0x16eb   :  { %v4125_v12 = vadd.f32 1e-05, %v4121_v61 }
0x16ed   :  { %4929 = vrsqrt.f32 %v4125_v12  ;;  %vm4144_vm10 = vweird.f32 %v4125_v12 }
0x16f3   :  { %v4930_v27 = vpop.eup %4929 }
0x16f4   :  { %v4139_v26 = vmul.f32 %v4930_v27, %v4125_v12  ;;  %vm4145_vm2 = vweird.f32 %v4930_v27 }
0x16f5   :  { %vm4146_vm11 = vmor %vm4144_vm10, %vm4145_vm2 }
0x16f6   :  { %v4140_v36 = vmul.f32 %v4930_v27, %v4139_v26 }
0x16f8   :  { %v4110_v21 = vpop.xlane.xlu1 %4109  ;;  %v4141_v29 = vmul.f32 0.5, %v4140_v36 }
0x16f9   :  { %v4120_v2 = vmul.f32 %v4110_v21, %v5701_v49 }
0x16fa   :  { %v4142_v6 = vsub.f32 1.5, %v4141_v29 }
0x16fb   :  { %v4124_v24 = vadd.f32 1e-05, %v4120_v2 }
0x16fc   :  { %v4143_v14 = vmul.f32 %v4930_v27, %v4142_v6 }
0x16fd   :  { %4931 = vrsqrt.f32 %v4124_v24  ;;  %vm4134_vm6 = vweird.f32 %v4124_v24 }
0x16fe   :  { %v4147_v30 = vsel %vm4146_vm11, %v4930_v27, %v4143_v14 }
0x16ff   :  { %v4169_v25 = vmul.f32 %v4147_v30, %v6456_v52 }
0x1701   :  { %v4174_v47 = vmul.f32 %v4172_v1, %v4169_v25 }
0x1703   :  { %v4932_v55 = vpop.eup %4931  ;;  %v6506_v59 = vadd.f32 %v4177_v60, %v4174_v47 }
0x1704   :  { %v4129_v39 = vmul.f32 %v4932_v55, %v4124_v24  ;;  %vm4135_vm1 = vweird.f32 %v4932_v55 }
0x1705   :  { %vm4136_vm9 = vmor %vm4134_vm6, %vm4135_vm1 }
0x1706   :  { %v4130_v20 = vmul.f32 %v4932_v55, %v4129_v39 }
0x1708   :  { %v4131_v17 = vmul.f32 0.5, %v4130_v20 }
0x170a   :  { %v4132_v15 = vsub.f32 1.5, %v4131_v17  ;;  %v4242_v17 = vperm.slane %v6497_v22, 4 }
0x170c   :  { %v4133_v54 = vmul.f32 %v4932_v55, %v4132_v15 }
0x170e   :  { %v4137_v35 = vsel %vm4136_vm9, %v4932_v55, %v4133_v54 }
0x170f   :  { %v4168_v43 = vmul.f32 %v4137_v35, %v4100_v37  ;;  %v4602_v37 = vld [vmem:[%s6591_s7 + $0x58] sm:$0xff] }
0x1710   :  { %4267 = vmatpush.msra.mxu3 %v4602_v37 }
0x1711   :  { %v4173_v38 = vmul.f32 %v4172_v1, %v4168_v43 }
0x1712   :  { %4268 = vmatpush.msra.mxu3 %v4601_v28 }
0x1713   :  { %v6502_v48 = vadd.f32 %v4177_v60, %v4173_v38 }
0x1714   :  { %4269 = vmatpush.msra.mxu3 %v4600_v33 }
0x1715   :  { %4595 = vmatmul.msk.f32.vlgmr.msrb.gmra.mxu2 %vm46_vm0, %v6502_v48 }
0x1716   :  { %4270 = vmatpush.msra.mxu3 %v4599_v40 }
0x171d   :  { %4596 = vmatmul.msk.f32.gmra.mxu2 %vm46_vm0, %v6506_v59 }
0x1735   :  { %v4116_v53 = vpop.xlane.xlu0 %4115 }
0x1736   :  { %v4122_v13 = vmul.f32 %v4116_v53, %v5701_v49 }
0x1738   :  { %v4126_v50 = vadd.f32 1e-05, %v4122_v13 }
0x173a   :  { %4933 = vrsqrt.f32 %v4126_v50  ;;  %vm4154_vm13 = vweird.f32 %v4126_v50 }
0x1740   :  { %v4934_v63 = vpop.eup %4933 }
0x1741   :  { %v4149_v51 = vmul.f32 %v4934_v63, %v4126_v50  ;;  %vm4155_vm12 = vweird.f32 %v4934_v63 }
0x1742   :  { %vm4156_vm14 = vmor %vm4154_vm13, %vm4155_vm12 }
0x1743   :  { %v4150_v10 = vmul.f32 %v4934_v63, %v4149_v51 }
0x1745   :  { %v4151_v11 = vmul.f32 0.5, %v4150_v10 }
0x1747   :  { %v4152_v23 = vsub.f32 1.5, %v4151_v11  ;;  %v4119_v52 = vpop.xlane.xlu1 %4118 }
0x1748   :  { %v4123_v57 = vmul.f32 %v4119_v52, %v5701_v49 }
0x1749   :  { %v4153_v9 = vmul.f32 %v4934_v63, %v4152_v23 }
0x174a   :  { %v4127_v44 = vadd.f32 1e-05, %v4123_v57 }
0x174b   :  { %v4157_v5 = vsel %vm4156_vm14, %v4934_v63, %v4153_v9 }
0x174c   :  { %v4170_v7 = vmul.f32 %v4157_v5, %v6464_v62  ;;  %4935 = vrsqrt.f32 %v4127_v44  ;;  %vm4164_vm4 = vweird.f32 %v4127_v44 }
0x174e   :  { %v4175_v56 = vmul.f32 %v4172_v1, %v4170_v7 }
0x1750   :  { %v4180_v4 = vadd.f32 %v4177_v60, %v4175_v56 }
0x1752   :  { %v4936_v16 = vpop.eup %4935  ;;  %4597 = vmatmul.msk.f32.gmra.mxu2 %vm46_vm0, %v4180_v4 }
0x1753   :  { %v4159_v3 = vmul.f32 %v4936_v16, %v4127_v44  ;;  %vm4165_vm15 = vweird.f32 %v4936_v16 }
0x1754   :  { %vm4166_vm5 = vmor %vm4164_vm4, %vm4165_vm15 }
0x1755   :  { %v4160_v46 = vmul.f32 %v4936_v16, %v4159_v3 }
0x1757   :  { %v4161_v58 = vmul.f32 0.5, %v4160_v46 }
0x1759   :  { %v4162_v18 = vsub.f32 1.5, %v4161_v58 }
0x175b   :  { %v4163_v19 = vmul.f32 %v4936_v16, %v4162_v18 }
0x175d   :  { %v4167_v32 = vsel %vm4166_vm5, %v4936_v16, %v4163_v19 }
0x175e   :  { %v4171_v61 = vmul.f32 %v4167_v32, %v6470_v34  ;;  %v4187_v34 = vperm.slane %v6497_v22, 3 }
0x1760   :  { %v4176_v12 = vmul.f32 %v4172_v1, %v4171_v61 }
0x1762   :  { %v4181_v62 = vadd.f32 %v4177_v60, %v4176_v12 }
0x1764   :  { %4598 = vmatmul.msk.f32.gmra.mxu2 %vm46_vm0, %v4181_v62 }
0x1798   :  { %v4217_v8 = vpop.f32.mrf.mxu2 }
0x1799   :  { %v4218_v21 = vadd.f32 %v4217_v8, %v4187_v34 }
0x179b   :  { %v4229_v27 = vmax.f32 %v4218_v21, 0.0  ;;  %v4376_v21 = vperm.slane %v6492_v42, 1 }
0x179d   :  { %4607 = vmatmul.msk.f32.vlgmr.msra.gmra.mxu3 %vm2102_vm3, %v4229_v27 }
0x17a0   :  { %v4220_v2 = vpop.f32.mrf.mxu2 }
0x17a1   :  { %v4221_v24 = vadd.f32 %v4220_v2, %v4187_v34 }
0x17a3   :  { %v4230_v26 = vmax.f32 %v4221_v24, 0.0  ;;  %v4381_v24 = vperm.slane %v6492_v42, 2 }
0x17a5   :  { %4608 = vmatmul.msk.f32.gmra.mxu3 %vm2102_vm3, %v4230_v26 }
0x17d5   :  { %v4223_v36 = vpop.f32.mrf.mxu2 }
0x17d6   :  { %v4224_v55 = vadd.f32 %v4223_v36, %v4187_v34 }
0x17d8   :  { %v4231_v29 = vmax.f32 %v4224_v55, 0.0 }
0x17da   :  { %4609 = vmatmul.msk.f32.gmra.mxu3 %vm2102_vm3, %v4231_v29 }
0x17e7   :  { %v4226_v39 = vpop.f32.mrf.mxu2 }
0x17e8   :  { %v4227_v20 = vadd.f32 %v4226_v39, %v4187_v34 }
0x17ea   :  { %v4232_v6 = vmax.f32 %v4227_v20, 0.0 }
0x17ec   :  { %4610 = vmatmul.msk.f32.gmra.mxu3 %vm2102_vm3, %v4232_v6 }
0x1820   :  { %v4272_v15 = vpop.f32.mrf.mxu3 }
0x1821   :  { %v4273_v14 = vadd.f32 %v4272_v15, %v4242_v17 }
0x1823   :  { %v4284_v54 = vadd.f32 %v4273_v14, %v6502_v48 }
0x1825   :  { %v4288_v35 = vsel %vm46_vm0, %v4284_v54, 0.0 }
0x1826   :  { %4289 = vadd.xlane.f32.xlu2 %v4288_v35 }
0x1828   :  { %v4275_v1 = vpop.f32.mrf.mxu3 }
0x1829   :  { %v4276_v43 = vadd.f32 %v4275_v1, %v4242_v17 }
0x182b   :  { %v4285_v30 = vadd.f32 %v4276_v43, %v6506_v59 }
0x182d   :  { %v4291_v60 = vsel %vm46_vm0, %v4285_v30, 0.0 }
0x182e   :  { %4292 = vadd.xlane.f32.xlu0 %v4291_v60 }
0x185d   :  { %v4278_v38 = vpop.f32.mrf.mxu3 }
0x185e   :  { %v4279_v25 = vadd.f32 %v4278_v38, %v4242_v17 }
0x1860   :  { %v4286_v47 = vadd.f32 %v4279_v25, %v4180_v4 }
0x1862   :  { %v4294_v53 = vsel %vm46_vm0, %v4286_v47, 0.0 }
0x1863   :  { %4295 = vadd.xlane.f32.xlu1 %v4294_v53 }
0x186f   :  { %v4281_v22 = vpop.f32.mrf.mxu3 }
0x1870   :  { %v4282_v13 = vadd.f32 %v4281_v22, %v4242_v17 }
0x1872   :  { %v4287_v50 = vadd.f32 %v4282_v13, %v4181_v62 }
0x1874   :  { %v4297_v48 = vsel %vm46_vm0, %v4287_v50, 0.0 }
0x1875   :  { %4298 = vadd.xlane.f32.xlu2 %v4297_v48 }
0x1899   :  { %v4290_v63 = vpop.xlane.xlu2 %4289 }
0x189a   :  { %v4300_v51 = vmul.f32 %v4290_v63, %v5701_v49 }
0x189c   :  { %v4304_v10 = vsub.f32 %v4284_v54, %v4300_v51 }
0x189e   :  { %v4308_v59 = vmul.f32 %v4304_v10, %v4304_v10 }
0x18a0   :  { %v4312_v45 = vsel %vm46_vm0, %v4308_v59, 0.0 }
0x18a1   :  { %v4293_v0 = vpop.xlane.xlu0 %4292  ;;  %4313 = vadd.xlane.f32.xlu0 %v4312_v45 }
0x18a2   :  { %v4301_v11 = vmul.f32 %v4293_v0, %v5701_v49 }
0x18a4   :  { %v4305_v31 = vsub.f32 %v4285_v30, %v4301_v11 }
0x18a6   :  { %v4309_v23 = vmul.f32 %v4305_v31, %v4305_v31 }
0x18a8   :  { %v4315_v52 = vsel %vm46_vm0, %v4309_v23, 0.0 }
0x18a9   :  { %4316 = vadd.xlane.f32.xlu1 %v4315_v52 }
0x18d6   :  { %v4296_v57 = vpop.xlane.xlu1 %4295 }
0x18d7   :  { %v4302_v41 = vmul.f32 %v4296_v57, %v5701_v49 }
0x18d9   :  { %v6557_v9 = vsub.f32 %v4286_v47, %v4302_v41 }
0x18db   :  { %v4310_v44 = vmul.f32 %v6557_v9, %v6557_v9 }
0x18dd   :  { %v4318_v37 = vsel %vm46_vm0, %v4310_v44, 0.0 }
0x18de   :  { %4319 = vadd.xlane.f32.xlu2 %v4318_v37 }
0x18e8   :  { %v4299_v5 = vpop.xlane.xlu2 %4298 }
0x18e9   :  { %v4303_v7 = vmul.f32 %v4299_v5, %v5701_v49 }
0x18eb   :  { %v6563_v56 = vsub.f32 %v4287_v50, %v4303_v7 }
0x18ed   :  { %v4311_v4 = vmul.f32 %v6563_v56, %v6563_v56 }
0x18ef   :  { %v4321_v16 = vsel %vm46_vm0, %v4311_v4, 0.0 }
0x18f0   :  { %4322 = vadd.xlane.f32.xlu0 %v4321_v16 }
0x1914   :  { %v4314_v3 = vpop.xlane.xlu0 %4313 }
0x1915   :  { %v4324_v46 = vmul.f32 %v4314_v3, %v5701_v49 }
0x1917   :  { %v4328_v58 = vadd.f32 1e-05, %v4324_v46 }
0x1919   :  { %4937 = vrsqrt.f32 %v4328_v58  ;;  %vm4338_vm7 = vweird.f32 %v4328_v58 }
0x191c   :  { %v4317_v18 = vpop.xlane.xlu1 %4316 }
0x191d   :  { %v4325_v19 = vmul.f32 %v4317_v18, %v5701_v49 }
0x191f   :  { %v4938_v32 = vpop.eup %4937  ;;  %v4329_v61 = vadd.f32 1e-05, %v4325_v19 }
0x1920   :  { %v4333_v12 = vmul.f32 %v4938_v32, %v4328_v58  ;;  %vm4339_vm3 = vweird.f32 %v4938_v32 }
0x1921   :  { %4939 = vrsqrt.f32 %v4329_v61  ;;  %vm4340_vm8 = vmor %vm4338_vm7, %vm4339_vm3  ;;  %vm4348_vm2 = vweird.f32 %v4329_v61 }
0x1922   :  { %v4334_v62 = vmul.f32 %v4938_v32, %v4333_v12 }
0x1924   :  { %v4335_v28 = vmul.f32 0.5, %v4334_v62 }
0x1926   :  { %v4336_v33 = vsub.f32 1.5, %v4335_v28 }
0x1927   :  { %v4940_v40 = vpop.eup %4939 }
0x1928   :  { %v4337_v34 = vmul.f32 %v4938_v32, %v4336_v33  ;;  %v4343_v8 = vmul.f32 %v4940_v40, %v4329_v61  ;;  %vm4349_vm1 = vweird.f32 %v4940_v40 }
0x1929   :  { %vm4350_vm6 = vmor %vm4348_vm2, %vm4349_vm1 }
0x192a   :  { %v4341_v27 = vsel %vm4340_vm8, %v4938_v32, %v4337_v34  ;;  %v4344_v2 = vmul.f32 %v4940_v40, %v4343_v8 }
0x192b   :  { %v4372_v26 = vmul.f32 %v4341_v27, %v4304_v10 }
0x192c   :  { %v4345_v36 = vmul.f32 0.5, %v4344_v2 }
0x192d   :  { %v4377_v55 = vmul.f32 %v4376_v21, %v4372_v26 }
0x192e   :  { %v4346_v29 = vsub.f32 1.5, %v4345_v36 }
0x192f   :  { %v4382_v39 = vadd.f32 %v4381_v24, %v4377_v55 }
0x1930   :  { %v4347_v20 = vmul.f32 %v4940_v40, %v4346_v29 }
0x1931   :  { %4386 = vst.msk [vmem:[#allocation2] sm:$0xff] %vm46_vm0, %v4382_v39 }
0x1932   :  { %v4351_v6 = vsel %vm4350_vm6, %v4940_v40, %v4347_v20 }
0x1933   :  { %v4373_v17 = vmul.f32 %v4351_v6, %v4305_v31 }
0x1935   :  { %v4378_v15 = vmul.f32 %v4376_v21, %v4373_v17 }
0x1937   :  { %v4383_v14 = vadd.f32 %v4381_v24, %v4378_v15 }
0x1939   :  { %4387 = vst.msk [vmem:[#allocation2 + $0x8] sm:$0xff] %vm46_vm0, %v4383_v14 }
0x1951   :  { %v4320_v54 = vpop.xlane.xlu2 %4319 }
0x1952   :  { %v4326_v42 = vmul.f32 %v4320_v54, %v5701_v49 }
0x1954   :  { %v4330_v35 = vadd.f32 1e-05, %v4326_v42 }
0x1956   :  { %4941 = vrsqrt.f32 %v4330_v35  ;;  %vm4358_vm10 = vweird.f32 %v4330_v35 }
0x195c   :  { %v4942_v1 = vpop.eup %4941 }
0x195d   :  { %v4353_v43 = vmul.f32 %v4942_v1, %v4330_v35  ;;  %vm4359_vm9 = vweird.f32 %v4942_v1 }
0x195e   :  { %vm4360_vm11 = vmor %vm4358_vm10, %vm4359_vm9 }
0x195f   :  { %v4354_v30 = vmul.f32 %v4942_v1, %v4353_v43 }
0x1961   :  { %v4355_v60 = vmul.f32 0.5, %v4354_v30 }
0x1963   :  { %v4356_v38 = vsub.f32 1.5, %v4355_v60  ;;  %v4323_v25 = vpop.xlane.xlu0 %4322 }
0x1964   :  { %v4327_v47 = vmul.f32 %v4323_v25, %v5701_v49 }
0x1965   :  { %v4357_v53 = vmul.f32 %v4942_v1, %v4356_v38 }
0x1966   :  { %v4331_v22 = vadd.f32 1e-05, %v4327_v47 }
0x1967   :  { %v4361_v13 = vsel %vm4360_vm11, %v4942_v1, %v4357_v53 }
0x1968   :  { %v4374_v50 = vmul.f32 %v4361_v13, %v6557_v9  ;;  %4943 = vrsqrt.f32 %v4331_v22  ;;  %vm4368_vm13 = vweird.f32 %v4331_v22 }
0x196a   :  { %v4379_v48 = vmul.f32 %v4376_v21, %v4374_v50 }
0x196c   :  { %v4384_v63 = vadd.f32 %v4381_v24, %v4379_v48 }
0x196e   :  { %v4944_v51 = vpop.eup %4943  ;;  %4388 = vst.msk [vmem:[#allocation2 + $0x10] sm:$0xff] %vm46_vm0, %v4384_v63 }
0x196f   :  { %v4363_v10 = vmul.f32 %v4944_v51, %v4331_v22  ;;  %vm4369_vm12 = vweird.f32 %v4944_v51 }
0x1970   :  { %vm4370_vm14 = vmor %vm4368_vm13, %vm4369_vm12 }
0x1971   :  { %v4364_v59 = vmul.f32 %v4944_v51, %v4363_v10 }
0x1973   :  { %v4365_v45 = vmul.f32 0.5, %v4364_v59 }
0x1975   :  { %v4366_v0 = vsub.f32 1.5, %v4365_v45 }
0x1977   :  { %v4367_v11 = vmul.f32 %v4944_v51, %v4366_v0 }
0x1979   :  { %v4371_v49 = vsel %vm4370_vm14, %v4944_v51, %v4367_v11 }
0x197a   :  { %v4375_v31 = vmul.f32 %v4371_v49, %v6563_v56 }
0x197c   :  { %v4380_v23 = vmul.f32 %v4376_v21, %v4375_v31 }
0x197e   :  { %v4385_v52 = vadd.f32 %v4381_v24, %v4380_v23 }
0x1980   :  { %4389 = vst.msk [vmem:[#allocation2 + $0x18] sm:$0xff] %vm46_vm0, %v4385_v52 }
0x1981   :  { %4402 = dma.vmem_to_hbm [thread:$0]  %s4395_s17, 512, %s4397_s15, [#allocation3], %s4998_s18, %s4998_s18, %s4988_s26  }
0x1982   :  { %4980 = dma.done.wait [#allocation3], 512  }
0x1983   :  { %4981 = vsyncadd [#allocation3], 4294966784 }
0x1984   :  { %4407 = vsyncpa [#allocation3], 1 }

</bundles_post_ra>
